<compile_context>
chip_gen: v7x
topology: tpu7x:2x2x1
jax: 0.10.0
libtpu: 0.0.40
codegen_flags: <defaults>
</compile_context>

<pallas_src>
import jax
import jax.numpy as jnp
from jax.experimental import pallas as pl
from jax.experimental.pallas import tpu as pltpu  # noqa: F401  (TPU backend assumed)

HIDDEN = 32           # hidden_size
SEQ_LEN = 32          # torch.split(x, 32) chunk length
NUM_CLASSES = 1
GATES = 4 * HIDDEN    # 128: exactly one lane dimension

# Row layout of the packed parameter array, shape (HIDDEN + 4, GATES):
ROW_WHH = 0                 # rows [0, HIDDEN): w_hh (pre-transposed, (H, 4H)), i/f/o cols * 0.5
ROW_WIH = HIDDEN            # row HIDDEN:       w_ih (1, 4H), i/f/o cols * 0.5   (input_size == 1)
ROW_B = HIDDEN + 1          # row HIDDEN+1:     b_ih + b_hh (1, 4H), i/f/o cols * 0.5
ROW_WOUT = HIDDEN + 2       # row HIDDEN+2:     fc_out.weight in lanes [0, H)
ROW_BOUT = HIDDEN + 3       # row HIDDEN+3:     fc_out.bias in lane 0


def _lstm_p_kernel(x_ref, p_ref, y_ref):
    """32-step, B=1 LSTM recurrence + fc_out, fully resident in vregs/VMEM."""
    H = HIDDEN
    T = x_ref.shape[0]                                   # 32 (static)

    # Input projection + bias for all T steps, kept in vregs (4 f32 vregs).
    # i/f/o columns of w_ih and bias are pre-scaled by 0.5 at pack time.
    w_ih = p_ref[ROW_WIH:ROW_WIH + 1, :]                 # (1, 4H)
    bias = p_ref[ROW_B:ROW_B + 1, :]                     # (1, 4H)
    xb = x_ref[...] * w_ih + bias                        # (T, 4H), stays in vregs

    # Recurrent weights (i/f/o columns pre-scaled by 0.5 in f32 BEFORE this
    # single bf16 cast, so rounding is applied only once).
    w_hh = p_ref[ROW_WHH:ROW_WHH + H, :].astype(jnp.bfloat16)   # (H, 4H)

    def gates_to_state(gates, c):
        # sigmoid(z) == 0.5 * tanh(z / 2) + 0.5; the /2 is folded into the i/f/o
        # columns of the packed weights, so ONE full-vreg tanh covers all four
        # gates; tanh(c_new) is the only other EUP op per step.
        tg = jnp.tanh(gates)                             # (1, 4H), single EUP pass
        i = 0.5 * tg[:, 0 * H:1 * H] + 0.5
        f = 0.5 * tg[:, 1 * H:2 * H] + 0.5
        g = tg[:, 2 * H:3 * H]
        o = 0.5 * tg[:, 3 * H:4 * H] + 0.5
        c_new = f * c + i * g
        h_new = o * jnp.tanh(c_new)
        return h_new, c_new

    # Step 0 peeled: h0 = c0 = 0 -> no recurrent matmul and no f*c term.
    t0 = jnp.tanh(xb[0:1, :])
    i0 = 0.5 * t0[:, 0 * H:1 * H] + 0.5
    g0 = t0[:, 2 * H:3 * H]
    o0 = 0.5 * t0[:, 3 * H:4 * H] + 0.5
    c = i0 * g0
    h = o0 * jnp.tanh(c)

    # Fully unrolled 31-step serial chain; static sublane slices of the xb vregs.
    # NOTE: w_hh is loop-invariant; driving the MXU weight-stationary
    # (pltpu.matmul_push_rhs / matmul_acc_lhs / matmul_pop) would shave the
    # per-step weight re-feed, but the explicit-MXU accumulator/pop semantics
    # are generation-dependent, so the portable jnp.dot form is kept here.
    for step in range(1, T):
        gates = xb[step:step + 1, :] + jnp.dot(
            h.astype(jnp.bfloat16), w_hh, preferred_element_type=jnp.float32)
        h, c = gates_to_state(gates, c)

    # fc_out(h_last): 32 -> 1 as VPU multiply + lane reduce (no 1-lane MXU matmul).
    w_out = p_ref[ROW_WOUT:ROW_WOUT + 1, 0:H]            # (1, H)
    b_out = p_ref[ROW_BOUT:ROW_BOUT + 1, 0:NUM_CLASSES]  # (1, 1)
    y_ref[...] = jnp.sum(h * w_out, axis=-1, keepdims=True) + b_out


def pack_params(params):
    """Pack all (tiny) parameters into one (H+4, 4H) f32 array (single DMA).

    The i/f/o gate columns of w_ih, w_hh and the combined bias are pre-scaled by
    0.5 (g columns untouched) so the kernel evaluates all four gates with one
    tanh: sigmoid(z) = 0.5 * tanh(z / 2) + 0.5.  Done ONCE, outside the jit path.
    """
    w_ih, w_hh, b, w_out, b_out = params
    scale = jnp.concatenate([
        jnp.full((1, HIDDEN), 0.5, jnp.float32),   # i
        jnp.full((1, HIDDEN), 0.5, jnp.float32),   # f
        jnp.ones((1, HIDDEN), jnp.float32),        # g (keep tanh argument intact)
        jnp.full((1, HIDDEN), 0.5, jnp.float32),   # o
    ], axis=1)
    w_ih_s = w_ih * scale
    w_hh_s = w_hh * scale
    b_s = b * scale
    w_out_row = jnp.pad(w_out.T, ((0, 0), (0, GATES - HIDDEN)))             # (1, 4H)
    b_out_row = jnp.pad(b_out, ((0, 0), (0, GATES - NUM_CLASSES)))          # (1, 4H)
    return jnp.concatenate([w_hh_s, w_ih_s, b_s, w_out_row, b_out_row], axis=0)


@jax.jit
def lstm_p_forward(x, packed):
    """Pallas implementation of LSTM_P.forward (takes pre-packed parameters)."""
    flat = x.reshape(-1, 1).astype(jnp.float32)          # x.reshape(-1, 1), input_size == 1
    n = flat.shape[0]
    # TODO(synk): ragged last chunk (n % 32 != 0) follows PyTorch's pad_sequence
    # padding path and would give a padding-driven result; only full chunks here.
    assert n % SEQ_LEN == 0, "total element count must be a multiple of 32"
    num_chunks = n // SEQ_LEN

    # out[-1, -1, :] depends only on the LAST chunk (chunks are independent batch
    # rows with zero initial state): the x BlockSpec below DMAs exactly those 32
    # elements straight from HBM — no wrapper-side slice copy, B=1 recurrence.
    y = pl.pallas_call(
        _lstm_p_kernel,
        out_shape=jax.ShapeDtypeStruct((1, NUM_CLASSES), jnp.float32),
        grid=(1,),
        in_specs=[
            pl.BlockSpec((SEQ_LEN, 1), lambda i: (num_chunks - 1, 0)),       # last chunk only
            pl.BlockSpec((HIDDEN + 4, GATES), lambda i: (0, 0)),             # packed params
        ],
        out_specs=pl.BlockSpec((1, NUM_CLASSES), lambda i: (0, 0)),
    )(flat, packed)
    return y.reshape(NUM_CLASSES)


def init_params(key):
    """Deterministic init matching PyTorch parameter shapes (stored transposed)."""
    k = 1.0 / jnp.sqrt(jnp.float32(HIDDEN))
    ks = jax.random.split(key, 6)
    u = lambda kk, shape: jax.random.uniform(kk, shape, jnp.float32, -k, k)
    w_ih = u(ks[0], (1, 4 * HIDDEN))                 # weight_ih_l0.T  (input_size=1)
    w_hh = u(ks[1], (HIDDEN, 4 * HIDDEN))            # weight_hh_l0.T
    b = u(ks[2], (1, 4 * HIDDEN)) + u(ks[3], (1, 4 * HIDDEN))   # b_ih + b_hh
    w_out = u(ks[4], (HIDDEN, NUM_CLASSES))          # fc_out.weight.T
    b_out = u(ks[5], (1, NUM_CLASSES))               # fc_out.bias
    return (w_ih, w_hh, b, w_out, b_out)


def reference_forward(x, params):
    """Plain-JAX f32 reference: full-batch LSTM over ALL chunks, then out[-1, -1, :].

    Computing every chunk here (unlike the kernel) also validates the
    'last-chunk-only' shortcut and the tanh-only gate reformulation.
    """
    w_ih, w_hh, b, w_out, b_out = params
    flat = x.reshape(-1).astype(jnp.float32)
    batch = flat.shape[0] // SEQ_LEN
    xs = flat.reshape(batch, SEQ_LEN).T               # (T, B)
    H = HIDDEN

    def step(carry, x_t):
        h, c = carry
        gates = x_t[:, None] * w_ih + h @ w_hh + b
        i = jax.nn.sigmoid(gates[:, 0 * H:1 * H])
        f = jax.nn.sigmoid(gates[:, 1 * H:2 * H])
        g = jnp.tanh(gates[:, 2 * H:3 * H])
        o = jax.nn.sigmoid(gates[:, 3 * H:4 * H])
        c = f * c + i * g
        h = o * jnp.tanh(c)
        return (h, c), None

    (h, _), _ = jax.lax.scan(step, (jnp.zeros((batch, H)), jnp.zeros((batch, H))), xs)
    return (h[-1].reshape(1, H) @ w_out + b_out).reshape(NUM_CLASSES)


if __name__ == "__main__":
    key = jax.random.PRNGKey(0)
    k_param, k_x = jax.random.split(key)

    params = init_params(k_param)
    packed = pack_params(params)     # packed ONCE, outside the per-call jit path
    # 2*4*16*16 = 2048 elements -> 64 sequences of length 32, input_size 1.
    x = jax.random.normal(k_x, (2, 4, 16, 16), jnp.float32)

    y = jax.block_until_ready(lstm_p_forward(x, packed))
    y_ref = jax.block_until_ready(reference_forward(x, params))

    assert y.shape == (NUM_CLASSES,)
    # Tolerance loosened from 1e-5 because the kernel uses bf16 MXU operands
    # (f32 accumulate / f32 gate math) for the 31 recurrent matmuls.
    assert jnp.allclose(y, y_ref, rtol=2e-2, atol=2e-2), (y, y_ref)
    print("KERNEL_OK")
</pallas_src>

<mosaic_0001>
module attributes {stable_mosaic.version = 11 : i64} {
  func.func @_lstm_p_kernel(%arg0: i32, %arg1: memref<32x1xf32, #tpu.memory_space<vmem>>, %arg2: memref<36x128xf32, #tpu.memory_space<vmem>>, %arg3: memref<1x1xf32, #tpu.memory_space<vmem>>) attributes {dimension_semantics = [#tpu.dimension_semantics<arbitrary>], iteration_bounds = array<i64: 1>, scalar_prefetch = 0 : i64, scratch_operands = 0 : i64, tpu.core_type = #tpu.core_type<tc>, window_params = [{transform_indices = @transform_0, window_bounds = array<i64: 32, 1>}, {pipeline_mode = #tpu.pipeline_mode<synchronous>, transform_indices = @transform_1, window_bounds = array<i64: 36, 128>}, {pipeline_mode = #tpu.pipeline_mode<synchronous>, transform_indices = @transform_2, window_bounds = array<i64: 1, 1>}]} {
    %c32 = arith.constant 32 : index
    %c0 = arith.constant 0 : index
    %0 = vector.load %arg2[%c32, %c0] : memref<36x128xf32, #tpu.memory_space<vmem>>, vector<1x128xf32>
    %c33 = arith.constant 33 : index
    %c0_0 = arith.constant 0 : index
    %1 = vector.load %arg2[%c33, %c0_0] : memref<36x128xf32, #tpu.memory_space<vmem>>, vector<1x128xf32>
    %c0_1 = arith.constant 0 : index
    %c0_2 = arith.constant 0 : index
    %2 = vector.load %arg1[%c0_1, %c0_2] : memref<32x1xf32, #tpu.memory_space<vmem>>, vector<32x1xf32>
    %3 = vector.broadcast %2 : vector<32x1xf32> to vector<32x128xf32>
    %4 = vector.broadcast %0 : vector<1x128xf32> to vector<32x128xf32>
    %5 = arith.mulf %3, %4 : vector<32x128xf32>
    %6 = vector.broadcast %1 : vector<1x128xf32> to vector<32x128xf32>
    %7 = arith.addf %5, %6 : vector<32x128xf32>
    %c0_3 = arith.constant 0 : index
    %c0_4 = arith.constant 0 : index
    %8 = vector.load %arg2[%c0_3, %c0_4] : memref<36x128xf32, #tpu.memory_space<vmem>>, vector<32x128xf32>
    %9 = arith.truncf %8 : vector<32x128xf32> to vector<32x128xbf16>
    %10 = vector.extract_strided_slice %7 {offsets = [0, 0], sizes = [1, 128], strides = [1, 1]} : vector<32x128xf32> to vector<1x128xf32>
    %11 = math.tanh %10 : vector<1x128xf32>
    %12 = vector.extract_strided_slice %11 {offsets = [0, 0], sizes = [1, 32], strides = [1, 1]} : vector<1x128xf32> to vector<1x32xf32>
    %cst = arith.constant 5.000000e-01 : f32
    %13 = vector.broadcast %cst : f32 to vector<1x32xf32>
    %14 = arith.mulf %13, %12 : vector<1x32xf32>
    %cst_5 = arith.constant 5.000000e-01 : f32
    %15 = vector.broadcast %cst_5 : f32 to vector<1x32xf32>
    %16 = arith.addf %14, %15 : vector<1x32xf32>
    %17 = vector.extract_strided_slice %11 {offsets = [0, 64], sizes = [1, 32], strides = [1, 1]} : vector<1x128xf32> to vector<1x32xf32>
    %18 = vector.extract_strided_slice %11 {offsets = [0, 96], sizes = [1, 32], strides = [1, 1]} : vector<1x128xf32> to vector<1x32xf32>
    %cst_6 = arith.constant 5.000000e-01 : f32
    %19 = vector.broadcast %cst_6 : f32 to vector<1x32xf32>
    %20 = arith.mulf %19, %18 : vector<1x32xf32>
    %cst_7 = arith.constant 5.000000e-01 : f32
    %21 = vector.broadcast %cst_7 : f32 to vector<1x32xf32>
    %22 = arith.addf %20, %21 : vector<1x32xf32>
    %23 = arith.mulf %16, %17 : vector<1x32xf32>
    %24 = math.tanh %23 : vector<1x32xf32>
    %25 = arith.mulf %22, %24 : vector<1x32xf32>
    %26 = vector.extract_strided_slice %7 {offsets = [1, 0], sizes = [1, 128], strides = [1, 1]} : vector<32x128xf32> to vector<1x128xf32>
    %27 = arith.truncf %25 : vector<1x32xf32> to vector<1x32xbf16>
    %cst_8 = arith.constant dense<0.000000e+00> : vector<1x128xf32>
    %28 = tpu.matmul %27, %9, %cst_8 {dimension_numbers = #tpu.dot_dimension_numbers<[1], [0], [0], [1], [0, 0, 1, 1], [], []>} : vector<1x32xbf16>, vector<32x128xbf16>, vector<1x128xf32> -> vector<1x128xf32>
    %29 = arith.addf %26, %28 : vector<1x128xf32>
    %30 = math.tanh %29 : vector<1x128xf32>
    %31 = vector.extract_strided_slice %30 {offsets = [0, 0], sizes = [1, 32], strides = [1, 1]} : vector<1x128xf32> to vector<1x32xf32>
    %cst_9 = arith.constant 5.000000e-01 : f32
    %32 = vector.broadcast %cst_9 : f32 to vector<1x32xf32>
    %33 = arith.mulf %32, %31 : vector<1x32xf32>
    %cst_10 = arith.constant 5.000000e-01 : f32
    %34 = vector.broadcast %cst_10 : f32 to vector<1x32xf32>
    %35 = arith.addf %33, %34 : vector<1x32xf32>
    %36 = vector.extract_strided_slice %30 {offsets = [0, 32], sizes = [1, 32], strides = [1, 1]} : vector<1x128xf32> to vector<1x32xf32>
    %cst_11 = arith.constant 5.000000e-01 : f32
    %37 = vector.broadcast %cst_11 : f32 to vector<1x32xf32>
    %38 = arith.mulf %37, %36 : vector<1x32xf32>
    %cst_12 = arith.constant 5.000000e-01 : f32
    %39 = vector.broadcast %cst_12 : f32 to vector<1x32xf32>
    %40 = arith.addf %38, %39 : vector<1x32xf32>
    %41 = vector.extract_strided_slice %30 {offsets = [0, 64], sizes = [1, 32], strides = [1, 1]} : vector<1x128xf32> to vector<1x32xf32>
    %42 = vector.extract_strided_slice %30 {offsets = [0, 96], sizes = [1, 32], strides = [1, 1]} : vector<1x128xf32> to vector<1x32xf32>
    %cst_13 = arith.constant 5.000000e-01 : f32
    %43 = vector.broadcast %cst_13 : f32 to vector<1x32xf32>
    %44 = arith.mulf %43, %42 : vector<1x32xf32>
    %cst_14 = arith.constant 5.000000e-01 : f32
    %45 = vector.broadcast %cst_14 : f32 to vector<1x32xf32>
    %46 = arith.addf %44, %45 : vector<1x32xf32>
    %47 = arith.mulf %40, %23 : vector<1x32xf32>
    %48 = arith.mulf %35, %41 : vector<1x32xf32>
    %49 = arith.addf %47, %48 : vector<1x32xf32>
    %50 = math.tanh %49 : vector<1x32xf32>
    %51 = arith.mulf %46, %50 : vector<1x32xf32>
    %52 = vector.extract_strided_slice %7 {offsets = [2, 0], sizes = [1, 128], strides = [1, 1]} : vector<32x128xf32> to vector<1x128xf32>
    %53 = arith.truncf %51 : vector<1x32xf32> to vector<1x32xbf16>
    %cst_15 = arith.constant dense<0.000000e+00> : vector<1x128xf32>
    %54 = tpu.matmul %53, %9, %cst_15 {dimension_numbers = #tpu.dot_dimension_numbers<[1], [0], [0], [1], [0, 0, 1, 1], [], []>} : vector<1x32xbf16>, vector<32x128xbf16>, vector<1x128xf32> -> vector<1x128xf32>
    %55 = arith.addf %52, %54 : vector<1x128xf32>
    %56 = math.tanh %55 : vector<1x128xf32>
    %57 = vector.extract_strided_slice %56 {offsets = [0, 0], sizes = [1, 32], strides = [1, 1]} : vector<1x128xf32> to vector<1x32xf32>
    %cst_16 = arith.constant 5.000000e-01 : f32
    %58 = vector.broadcast %cst_16 : f32 to vector<1x32xf32>
    %59 = arith.mulf %58, %57 : vector<1x32xf32>
    %cst_17 = arith.constant 5.000000e-01 : f32
    %60 = vector.broadcast %cst_17 : f32 to vector<1x32xf32>
    %61 = arith.addf %59, %60 : vector<1x32xf32>
    %62 = vector.extract_strided_slice %56 {offsets = [0, 32], sizes = [1, 32], strides = [1, 1]} : vector<1x128xf32> to vector<1x32xf32>
    %cst_18 = arith.constant 5.000000e-01 : f32
    %63 = vector.broadcast %cst_18 : f32 to vector<1x32xf32>
    %64 = arith.mulf %63, %62 : vector<1x32xf32>
    %cst_19 = arith.constant 5.000000e-01 : f32
    %65 = vector.broadcast %cst_19 : f32 to vector<1x32xf32>
    %66 = arith.addf %64, %65 : vector<1x32xf32>
    %67 = vector.extract_strided_slice %56 {offsets = [0, 64], sizes = [1, 32], strides = [1, 1]} : vector<1x128xf32> to vector<1x32xf32>
    %68 = vector.extract_strided_slice %56 {offsets = [0, 96], sizes = [1, 32], strides = [1, 1]} : vector<1x128xf32> to vector<1x32xf32>
    %cst_20 = arith.constant 5.000000e-01 : f32
    %69 = vector.broadcast %cst_20 : f32 to vector<1x32xf32>
    %70 = arith.mulf %69, %68 : vector<1x32xf32>
    %cst_21 = arith.constant 5.000000e-01 : f32
    %71 = vector.broadcast %cst_21 : f32 to vector<1x32xf32>
    %72 = arith.addf %70, %71 : vector<1x32xf32>
    %73 = arith.mulf %66, %49 : vector<1x32xf32>
    %74 = arith.mulf %61, %67 : vector<1x32xf32>
    %75 = arith.addf %73, %74 : vector<1x32xf32>
    %76 = math.tanh %75 : vector<1x32xf32>
    %77 = arith.mulf %72, %76 : vector<1x32xf32>
    %78 = vector.extract_strided_slice %7 {offsets = [3, 0], sizes = [1, 128], strides = [1, 1]} : vector<32x128xf32> to vector<1x128xf32>
    %79 = arith.truncf %77 : vector<1x32xf32> to vector<1x32xbf16>
    %cst_22 = arith.constant dense<0.000000e+00> : vector<1x128xf32>
    %80 = tpu.matmul %79, %9, %cst_22 {dimension_numbers = #tpu.dot_dimension_numbers<[1], [0], [0], [1], [0, 0, 1, 1], [], []>} : vector<1x32xbf16>, vector<32x128xbf16>, vector<1x128xf32> -> vector<1x128xf32>
    %81 = arith.addf %78, %80 : vector<1x128xf32>
    %82 = math.tanh %81 : vector<1x128xf32>
    %83 = vector.extract_strided_slice %82 {offsets = [0, 0], sizes = [1, 32], strides = [1, 1]} : vector<1x128xf32> to vector<1x32xf32>
    %cst_23 = arith.constant 5.000000e-01 : f32
    %84 = vector.broadcast %cst_23 : f32 to vector<1x32xf32>
    %85 = arith.mulf %84, %83 : vector<1x32xf32>
    %cst_24 = arith.constant 5.000000e-01 : f32
    %86 = vector.broadcast %cst_24 : f32 to vector<1x32xf32>
    %87 = arith.addf %85, %86 : vector<1x32xf32>
    %88 = vector.extract_strided_slice %82 {offsets = [0, 32], sizes = [1, 32], strides = [1, 1]} : vector<1x128xf32> to vector<1x32xf32>
    %cst_25 = arith.constant 5.000000e-01 : f32
    %89 = vector.broadcast %cst_25 : f32 to vector<1x32xf32>
    %90 = arith.mulf %89, %88 : vector<1x32xf32>
    %cst_26 = arith.constant 5.000000e-01 : f32
    %91 = vector.broadcast %cst_26 : f32 to vector<1x32xf32>
    %92 = arith.addf %90, %91 : vector<1x32xf32>
    %93 = vector.extract_strided_slice %82 {offsets = [0, 64], sizes = [1, 32], strides = [1, 1]} : vector<1x128xf32> to vector<1x32xf32>
    %94 = vector.extract_strided_slice %82 {offsets = [0, 96], sizes = [1, 32], strides = [1, 1]} : vector<1x128xf32> to vector<1x32xf32>
    %cst_27 = arith.constant 5.000000e-01 : f32
    %95 = vector.broadcast %cst_27 : f32 to vector<1x32xf32>
    %96 = arith.mulf %95, %94 : vector<1x32xf32>
    %cst_28 = arith.constant 5.000000e-01 : f32
    %97 = vector.broadcast %cst_28 : f32 to vector<1x32xf32>
    %98 = arith.addf %96, %97 : vector<1x32xf32>
    %99 = arith.mulf %92, %75 : vector<1x32xf32>
    %100 = arith.mulf %87, %93 : vector<1x32xf32>
    %101 = arith.addf %99, %100 : vector<1x32xf32>
    %102 = math.tanh %101 : vector<1x32xf32>
    %103 = arith.mulf %98, %102 : vector<1x32xf32>
    %104 = vector.extract_strided_slice %7 {offsets = [4, 0], sizes = [1, 128], strides = [1, 1]} : vector<32x128xf32> to vector<1x128xf32>
    %105 = arith.truncf %103 : vector<1x32xf32> to vector<1x32xbf16>
    %cst_29 = arith.constant dense<0.000000e+00> : vector<1x128xf32>
    %106 = tpu.matmul %105, %9, %cst_29 {dimension_numbers = #tpu.dot_dimension_numbers<[1], [0], [0], [1], [0, 0, 1, 1], [], []>} : vector<1x32xbf16>, vector<32x128xbf16>, vector<1x128xf32> -> vector<1x128xf32>
    %107 = arith.addf %104, %106 : vector<1x128xf32>
    %108 = math.tanh %107 : vector<1x128xf32>
    %109 = vector.extract_strided_slice %108 {offsets = [0, 0], sizes = [1, 32], strides = [1, 1]} : vector<1x128xf32> to vector<1x32xf32>
    %cst_30 = arith.constant 5.000000e-01 : f32
    %110 = vector.broadcast %cst_30 : f32 to vector<1x32xf32>
    %111 = arith.mulf %110, %109 : vector<1x32xf32>
    %cst_31 = arith.constant 5.000000e-01 : f32
    %112 = vector.broadcast %cst_31 : f32 to vector<1x32xf32>
    %113 = arith.addf %111, %112 : vector<1x32xf32>
    %114 = vector.extract_strided_slice %108 {offsets = [0, 32], sizes = [1, 32], strides = [1, 1]} : vector<1x128xf32> to vector<1x32xf32>
    %cst_32 = arith.constant 5.000000e-01 : f32
    %115 = vector.broadcast %cst_32 : f32 to vector<1x32xf32>
    %116 = arith.mulf %115, %114 : vector<1x32xf32>
    %cst_33 = arith.constant 5.000000e-01 : f32
    %117 = vector.broadcast %cst_33 : f32 to vector<1x32xf32>
    %118 = arith.addf %116, %117 : vector<1x32xf32>
    %119 = vector.extract_strided_slice %108 {offsets = [0, 64], sizes = [1, 32], strides = [1, 1]} : vector<1x128xf32> to vector<1x32xf32>
    %120 = vector.extract_strided_slice %108 {offsets = [0, 96], sizes = [1, 32], strides = [1, 1]} : vector<1x128xf32> to vector<1x32xf32>
    %cst_34 = arith.constant 5.000000e-01 : f32
    %121 = vector.broadcast %cst_34 : f32 to vector<1x32xf32>
    %122 = arith.mulf %121, %120 : vector<1x32xf32>
    %cst_35 = arith.constant 5.000000e-01 : f32
    %123 = vector.broadcast %cst_35 : f32 to vector<1x32xf32>
    %124 = arith.addf %122, %123 : vector<1x32xf32>
    %125 = arith.mulf %118, %101 : vector<1x32xf32>
    %126 = arith.mulf %113, %119 : vector<1x32xf32>
    %127 = arith.addf %125, %126 : vector<1x32xf32>
    %128 = math.tanh %127 : vector<1x32xf32>
    %129 = arith.mulf %124, %128 : vector<1x32xf32>
    %130 = vector.extract_strided_slice %7 {offsets = [5, 0], sizes = [1, 128], strides = [1, 1]} : vector<32x128xf32> to vector<1x128xf32>
    %131 = arith.truncf %129 : vector<1x32xf32> to vector<1x32xbf16>
    %cst_36 = arith.constant dense<0.000000e+00> : vector<1x128xf32>
    %132 = tpu.matmul %131, %9, %cst_36 {dimension_numbers = #tpu.dot_dimension_numbers<[1], [0], [0], [1], [0, 0, 1, 1], [], []>} : vector<1x32xbf16>, vector<32x128xbf16>, vector<1x128xf32> -> vector<1x128xf32>
    %133 = arith.addf %130, %132 : vector<1x128xf32>
    %134 = math.tanh %133 : vector<1x128xf32>
    %135 = vector.extract_strided_slice %134 {offsets = [0, 0], sizes = [1, 32], strides = [1, 1]} : vector<1x128xf32> to vector<1x32xf32>
    %cst_37 = arith.constant 5.000000e-01 : f32
    %136 = vector.broadcast %cst_37 : f32 to vector<1x32xf32>
    %137 = arith.mulf %136, %135 : vector<1x32xf32>
    %cst_38 = arith.constant 5.000000e-01 : f32
    %138 = vector.broadcast %cst_38 : f32 to vector<1x32xf32>
    %139 = arith.addf %137, %138 : vector<1x32xf32>
    %140 = vector.extract_strided_slice %134 {offsets = [0, 32], sizes = [1, 32], strides = [1, 1]} : vector<1x128xf32> to vector<1x32xf32>
    %cst_39 = arith.constant 5.000000e-01 : f32
    %141 = vector.broadcast %cst_39 : f32 to vector<1x32xf32>
    %142 = arith.mulf %141, %140 : vector<1x32xf32>
    %cst_40 = arith.constant 5.000000e-01 : f32
    %143 = vector.broadcast %cst_40 : f32 to vector<1x32xf32>
    %144 = arith.addf %142, %143 : vector<1x32xf32>
    %145 = vector.extract_strided_slice %134 {offsets = [0, 64], sizes = [1, 32], strides = [1, 1]} : vector<1x128xf32> to vector<1x32xf32>
    %146 = vector.extract_strided_slice %134 {offsets = [0, 96], sizes = [1, 32], strides = [1, 1]} : vector<1x128xf32> to vector<1x32xf32>
    %cst_41 = arith.constant 5.000000e-01 : f32
    %147 = vector.broadcast %cst_41 : f32 to vector<1x32xf32>
    %148 = arith.mulf %147, %146 : vector<1x32xf32>
    %cst_42 = arith.constant 5.000000e-01 : f32
    %149 = vector.broadcast %cst_42 : f32 to vector<1x32xf32>
    %150 = arith.addf %148, %149 : vector<1x32xf32>
    %151 = arith.mulf %144, %127 : vector<1x32xf32>
    %152 = arith.mulf %139, %145 : vector<1x32xf32>
    %153 = arith.addf %151, %152 : vector<1x32xf32>
    %154 = math.tanh %153 : vector<1x32xf32>
    %155 = arith.mulf %150, %154 : vector<1x32xf32>
    %156 = vector.extract_strided_slice %7 {offsets = [6, 0], sizes = [1, 128], strides = [1, 1]} : vector<32x128xf32> to vector<1x128xf32>
    %157 = arith.truncf %155 : vector<1x32xf32> to vector<1x32xbf16>
    %cst_43 = arith.constant dense<0.000000e+00> : vector<1x128xf32>
    %158 = tpu.matmul %157, %9, %cst_43 {dimension_numbers = #tpu.dot_dimension_numbers<[1], [0], [0], [1], [0, 0, 1, 1], [], []>} : vector<1x32xbf16>, vector<32x128xbf16>, vector<1x128xf32> -> vector<1x128xf32>
    %159 = arith.addf %156, %158 : vector<1x128xf32>
    %160 = math.tanh %159 : vector<1x128xf32>
    %161 = vector.extract_strided_slice %160 {offsets = [0, 0], sizes = [1, 32], strides = [1, 1]} : vector<1x128xf32> to vector<1x32xf32>
    %cst_44 = arith.constant 5.000000e-01 : f32
    %162 = vector.broadcast %cst_44 : f32 to vector<1x32xf32>
    %163 = arith.mulf %162, %161 : vector<1x32xf32>
    %cst_45 = arith.constant 5.000000e-01 : f32
    %164 = vector.broadcast %cst_45 : f32 to vector<1x32xf32>
    %165 = arith.addf %163, %164 : vector<1x32xf32>
    %166 = vector.extract_strided_slice %160 {offsets = [0, 32], sizes = [1, 32], strides = [1, 1]} : vector<1x128xf32> to vector<1x32xf32>
    %cst_46 = arith.constant 5.000000e-01 : f32
    %167 = vector.broadcast %cst_46 : f32 to vector<1x32xf32>
    %168 = arith.mulf %167, %166 : vector<1x32xf32>
    %cst_47 = arith.constant 5.000000e-01 : f32
    %169 = vector.broadcast %cst_47 : f32 to vector<1x32xf32>
    %170 = arith.addf %168, %169 : vector<1x32xf32>
    %171 = vector.extract_strided_slice %160 {offsets = [0, 64], sizes = [1, 32], strides = [1, 1]} : vector<1x128xf32> to vector<1x32xf32>
    %172 = vector.extract_strided_slice %160 {offsets = [0, 96], sizes = [1, 32], strides = [1, 1]} : vector<1x128xf32> to vector<1x32xf32>
    %cst_48 = arith.constant 5.000000e-01 : f32
    %173 = vector.broadcast %cst_48 : f32 to vector<1x32xf32>
    %174 = arith.mulf %173, %172 : vector<1x32xf32>
    %cst_49 = arith.constant 5.000000e-01 : f32
    %175 = vector.broadcast %cst_49 : f32 to vector<1x32xf32>
    %176 = arith.addf %174, %175 : vector<1x32xf32>
    %177 = arith.mulf %170, %153 : vector<1x32xf32>
    %178 = arith.mulf %165, %171 : vector<1x32xf32>
    %179 = arith.addf %177, %178 : vector<1x32xf32>
    %180 = math.tanh %179 : vector<1x32xf32>
    %181 = arith.mulf %176, %180 : vector<1x32xf32>
    %182 = vector.extract_strided_slice %7 {offsets = [7, 0], sizes = [1, 128], strides = [1, 1]} : vector<32x128xf32> to vector<1x128xf32>
    %183 = arith.truncf %181 : vector<1x32xf32> to vector<1x32xbf16>
    %cst_50 = arith.constant dense<0.000000e+00> : vector<1x128xf32>
    %184 = tpu.matmul %183, %9, %cst_50 {dimension_numbers = #tpu.dot_dimension_numbers<[1], [0], [0], [1], [0, 0, 1, 1], [], []>} : vector<1x32xbf16>, vector<32x128xbf16>, vector<1x128xf32> -> vector<1x128xf32>
    %185 = arith.addf %182, %184 : vector<1x128xf32>
    %186 = math.tanh %185 : vector<1x128xf32>
    %187 = vector.extract_strided_slice %186 {offsets = [0, 0], sizes = [1, 32], strides = [1, 1]} : vector<1x128xf32> to vector<1x32xf32>
    %cst_51 = arith.constant 5.000000e-01 : f32
    %188 = vector.broadcast %cst_51 : f32 to vector<1x32xf32>
    %189 = arith.mulf %188, %187 : vector<1x32xf32>
    %cst_52 = arith.constant 5.000000e-01 : f32
    %190 = vector.broadcast %cst_52 : f32 to vector<1x32xf32>
    %191 = arith.addf %189, %190 : vector<1x32xf32>
    %192 = vector.extract_strided_slice %186 {offsets = [0, 32], sizes = [1, 32], strides = [1, 1]} : vector<1x128xf32> to vector<1x32xf32>
    %cst_53 = arith.constant 5.000000e-01 : f32
    %193 = vector.broadcast %cst_53 : f32 to vector<1x32xf32>
    %194 = arith.mulf %193, %192 : vector<1x32xf32>
    %cst_54 = arith.constant 5.000000e-01 : f32
    %195 = vector.broadcast %cst_54 : f32 to vector<1x32xf32>
    %196 = arith.addf %194, %195 : vector<1x32xf32>
    %197 = vector.extract_strided_slice %186 {offsets = [0, 64], sizes = [1, 32], strides = [1, 1]} : vector<1x128xf32> to vector<1x32xf32>
    %198 = vector.extract_strided_slice %186 {offsets = [0, 96], sizes = [1, 32], strides = [1, 1]} : vector<1x128xf32> to vector<1x32xf32>
    %cst_55 = arith.constant 5.000000e-01 : f32
    %199 = vector.broadcast %cst_55 : f32 to vector<1x32xf32>
    %200 = arith.mulf %199, %198 : vector<1x32xf32>
    %cst_56 = arith.constant 5.000000e-01 : f32
    %201 = vector.broadcast %cst_56 : f32 to vector<1x32xf32>
    %202 = arith.addf %200, %201 : vector<1x32xf32>
    %203 = arith.mulf %196, %179 : vector<1x32xf32>
    %204 = arith.mulf %191, %197 : vector<1x32xf32>
    %205 = arith.addf %203, %204 : vector<1x32xf32>
    %206 = math.tanh %205 : vector<1x32xf32>
    %207 = arith.mulf %202, %206 : vector<1x32xf32>
    %208 = vector.extract_strided_slice %7 {offsets = [8, 0], sizes = [1, 128], strides = [1, 1]} : vector<32x128xf32> to vector<1x128xf32>
    %209 = arith.truncf %207 : vector<1x32xf32> to vector<1x32xbf16>
    %cst_57 = arith.constant dense<0.000000e+00> : vector<1x128xf32>
    %210 = tpu.matmul %209, %9, %cst_57 {dimension_numbers = #tpu.dot_dimension_numbers<[1], [0], [0], [1], [0, 0, 1, 1], [], []>} : vector<1x32xbf16>, vector<32x128xbf16>, vector<1x128xf32> -> vector<1x128xf32>
    %211 = arith.addf %208, %210 : vector<1x128xf32>
    %212 = math.tanh %211 : vector<1x128xf32>
    %213 = vector.extract_strided_slice %212 {offsets = [0, 0], sizes = [1, 32], strides = [1, 1]} : vector<1x128xf32> to vector<1x32xf32>
    %cst_58 = arith.constant 5.000000e-01 : f32
    %214 = vector.broadcast %cst_58 : f32 to vector<1x32xf32>
    %215 = arith.mulf %214, %213 : vector<1x32xf32>
    %cst_59 = arith.constant 5.000000e-01 : f32
    %216 = vector.broadcast %cst_59 : f32 to vector<1x32xf32>
    %217 = arith.addf %215, %216 : vector<1x32xf32>
    %218 = vector.extract_strided_slice %212 {offsets = [0, 32], sizes = [1, 32], strides = [1, 1]} : vector<1x128xf32> to vector<1x32xf32>
    %cst_60 = arith.constant 5.000000e-01 : f32
    %219 = vector.broadcast %cst_60 : f32 to vector<1x32xf32>
    %220 = arith.mulf %219, %218 : vector<1x32xf32>
    %cst_61 = arith.constant 5.000000e-01 : f32
    %221 = vector.broadcast %cst_61 : f32 to vector<1x32xf32>
    %222 = arith.addf %220, %221 : vector<1x32xf32>
    %223 = vector.extract_strided_slice %212 {offsets = [0, 64], sizes = [1, 32], strides = [1, 1]} : vector<1x128xf32> to vector<1x32xf32>
    %224 = vector.extract_strided_slice %212 {offsets = [0, 96], sizes = [1, 32], strides = [1, 1]} : vector<1x128xf32> to vector<1x32xf32>
    %cst_62 = arith.constant 5.000000e-01 : f32
    %225 = vector.broadcast %cst_62 : f32 to vector<1x32xf32>
    %226 = arith.mulf %225, %224 : vector<1x32xf32>
    %cst_63 = arith.constant 5.000000e-01 : f32
    %227 = vector.broadcast %cst_63 : f32 to vector<1x32xf32>
    %228 = arith.addf %226, %227 : vector<1x32xf32>
    %229 = arith.mulf %222, %205 : vector<1x32xf32>
    %230 = arith.mulf %217, %223 : vector<1x32xf32>
    %231 = arith.addf %229, %230 : vector<1x32xf32>
    %232 = math.tanh %231 : vector<1x32xf32>
    %233 = arith.mulf %228, %232 : vector<1x32xf32>
    %234 = vector.extract_strided_slice %7 {offsets = [9, 0], sizes = [1, 128], strides = [1, 1]} : vector<32x128xf32> to vector<1x128xf32>
    %235 = arith.truncf %233 : vector<1x32xf32> to vector<1x32xbf16>
    %cst_64 = arith.constant dense<0.000000e+00> : vector<1x128xf32>
    %236 = tpu.matmul %235, %9, %cst_64 {dimension_numbers = #tpu.dot_dimension_numbers<[1], [0], [0], [1], [0, 0, 1, 1], [], []>} : vector<1x32xbf16>, vector<32x128xbf16>, vector<1x128xf32> -> vector<1x128xf32>
    %237 = arith.addf %234, %236 : vector<1x128xf32>
    %238 = math.tanh %237 : vector<1x128xf32>
    %239 = vector.extract_strided_slice %238 {offsets = [0, 0], sizes = [1, 32], strides = [1, 1]} : vector<1x128xf32> to vector<1x32xf32>
    %cst_65 = arith.constant 5.000000e-01 : f32
    %240 = vector.broadcast %cst_65 : f32 to vector<1x32xf32>
    %241 = arith.mulf %240, %239 : vector<1x32xf32>
    %cst_66 = arith.constant 5.000000e-01 : f32
    %242 = vector.broadcast %cst_66 : f32 to vector<1x32xf32>
    %243 = arith.addf %241, %242 : vector<1x32xf32>
    %244 = vector.extract_strided_slice %238 {offsets = [0, 32], sizes = [1, 32], strides = [1, 1]} : vector<1x128xf32> to vector<1x32xf32>
    %cst_67 = arith.constant 5.000000e-01 : f32
    %245 = vector.broadcast %cst_67 : f32 to vector<1x32xf32>
    %246 = arith.mulf %245, %244 : vector<1x32xf32>
    %cst_68 = arith.constant 5.000000e-01 : f32
    %247 = vector.broadcast %cst_68 : f32 to vector<1x32xf32>
    %248 = arith.addf %246, %247 : vector<1x32xf32>
    %249 = vector.extract_strided_slice %238 {offsets = [0, 64], sizes = [1, 32], strides = [1, 1]} : vector<1x128xf32> to vector<1x32xf32>
    %250 = vector.extract_strided_slice %238 {offsets = [0, 96], sizes = [1, 32], strides = [1, 1]} : vector<1x128xf32> to vector<1x32xf32>
    %cst_69 = arith.constant 5.000000e-01 : f32
    %251 = vector.broadcast %cst_69 : f32 to vector<1x32xf32>
    %252 = arith.mulf %251, %250 : vector<1x32xf32>
    %cst_70 = arith.constant 5.000000e-01 : f32
    %253 = vector.broadcast %cst_70 : f32 to vector<1x32xf32>
    %254 = arith.addf %252, %253 : vector<1x32xf32>
    %255 = arith.mulf %248, %231 : vector<1x32xf32>
    %256 = arith.mulf %243, %249 : vector<1x32xf32>
    %257 = arith.addf %255, %256 : vector<1x32xf32>
    %258 = math.tanh %257 : vector<1x32xf32>
    %259 = arith.mulf %254, %258 : vector<1x32xf32>
    %260 = vector.extract_strided_slice %7 {offsets = [10, 0], sizes = [1, 128], strides = [1, 1]} : vector<32x128xf32> to vector<1x128xf32>
    %261 = arith.truncf %259 : vector<1x32xf32> to vector<1x32xbf16>
    %cst_71 = arith.constant dense<0.000000e+00> : vector<1x128xf32>
    %262 = tpu.matmul %261, %9, %cst_71 {dimension_numbers = #tpu.dot_dimension_numbers<[1], [0], [0], [1], [0, 0, 1, 1], [], []>} : vector<1x32xbf16>, vector<32x128xbf16>, vector<1x128xf32> -> vector<1x128xf32>
    %263 = arith.addf %260, %262 : vector<1x128xf32>
    %264 = math.tanh %263 : vector<1x128xf32>
    %265 = vector.extract_strided_slice %264 {offsets = [0, 0], sizes = [1, 32], strides = [1, 1]} : vector<1x128xf32> to vector<1x32xf32>
    %cst_72 = arith.constant 5.000000e-01 : f32
    %266 = vector.broadcast %cst_72 : f32 to vector<1x32xf32>
    %267 = arith.mulf %266, %265 : vector<1x32xf32>
    %cst_73 = arith.constant 5.000000e-01 : f32
    %268 = vector.broadcast %cst_73 : f32 to vector<1x32xf32>
    %269 = arith.addf %267, %268 : vector<1x32xf32>
    %270 = vector.extract_strided_slice %264 {offsets = [0, 32], sizes = [1, 32], strides = [1, 1]} : vector<1x128xf32> to vector<1x32xf32>
    %cst_74 = arith.constant 5.000000e-01 : f32
    %271 = vector.broadcast %cst_74 : f32 to vector<1x32xf32>
    %272 = arith.mulf %271, %270 : vector<1x32xf32>
    %cst_75 = arith.constant 5.000000e-01 : f32
    %273 = vector.broadcast %cst_75 : f32 to vector<1x32xf32>
    %274 = arith.addf %272, %273 : vector<1x32xf32>
    %275 = vector.extract_strided_slice %264 {offsets = [0, 64], sizes = [1, 32], strides = [1, 1]} : vector<1x128xf32> to vector<1x32xf32>
    %276 = vector.extract_strided_slice %264 {offsets = [0, 96], sizes = [1, 32], strides = [1, 1]} : vector<1x128xf32> to vector<1x32xf32>
    %cst_76 = arith.constant 5.000000e-01 : f32
    %277 = vector.broadcast %cst_76 : f32 to vector<1x32xf32>
    %278 = arith.mulf %277, %276 : vector<1x32xf32>
    %cst_77 = arith.constant 5.000000e-01 : f32
    %279 = vector.broadcast %cst_77 : f32 to vector<1x32xf32>
    %280 = arith.addf %278, %279 : vector<1x32xf32>
    %281 = arith.mulf %274, %257 : vector<1x32xf32>
    %282 = arith.mulf %269, %275 : vector<1x32xf32>
    %283 = arith.addf %281, %282 : vector<1x32xf32>
    %284 = math.tanh %283 : vector<1x32xf32>
    %285 = arith.mulf %280, %284 : vector<1x32xf32>
    %286 = vector.extract_strided_slice %7 {offsets = [11, 0], sizes = [1, 128], strides = [1, 1]} : vector<32x128xf32> to vector<1x128xf32>
    %287 = arith.truncf %285 : vector<1x32xf32> to vector<1x32xbf16>
    %cst_78 = arith.constant dense<0.000000e+00> : vector<1x128xf32>
    %288 = tpu.matmul %287, %9, %cst_78 {dimension_numbers = #tpu.dot_dimension_numbers<[1], [0], [0], [1], [0, 0, 1, 1], [], []>} : vector<1x32xbf16>, vector<32x128xbf16>, vector<1x128xf32> -> vector<1x128xf32>
    %289 = arith.addf %286, %288 : vector<1x128xf32>
    %290 = math.tanh %289 : vector<1x128xf32>
    %291 = vector.extract_strided_slice %290 {offsets = [0, 0], sizes = [1, 32], strides = [1, 1]} : vector<1x128xf32> to vector<1x32xf32>
    %cst_79 = arith.constant 5.000000e-01 : f32
    %292 = vector.broadcast %cst_79 : f32 to vector<1x32xf32>
    %293 = arith.mulf %292, %291 : vector<1x32xf32>
    %cst_80 = arith.constant 5.000000e-01 : f32
    %294 = vector.broadcast %cst_80 : f32 to vector<1x32xf32>
    %295 = arith.addf %293, %294 : vector<1x32xf32>
    %296 = vector.extract_strided_slice %290 {offsets = [0, 32], sizes = [1, 32], strides = [1, 1]} : vector<1x128xf32> to vector<1x32xf32>
    %cst_81 = arith.constant 5.000000e-01 : f32
    %297 = vector.broadcast %cst_81 : f32 to vector<1x32xf32>
    %298 = arith.mulf %297, %296 : vector<1x32xf32>
    %cst_82 = arith.constant 5.000000e-01 : f32
    %299 = vector.broadcast %cst_82 : f32 to vector<1x32xf32>
    %300 = arith.addf %298, %299 : vector<1x32xf32>
    %301 = vector.extract_strided_slice %290 {offsets = [0, 64], sizes = [1, 32], strides = [1, 1]} : vector<1x128xf32> to vector<1x32xf32>
    %302 = vector.extract_strided_slice %290 {offsets = [0, 96], sizes = [1, 32], strides = [1, 1]} : vector<1x128xf32> to vector<1x32xf32>
    %cst_83 = arith.constant 5.000000e-01 : f32
    %303 = vector.broadcast %cst_83 : f32 to vector<1x32xf32>
    %304 = arith.mulf %303, %302 : vector<1x32xf32>
    %cst_84 = arith.constant 5.000000e-01 : f32
    %305 = vector.broadcast %cst_84 : f32 to vector<1x32xf32>
    %306 = arith.addf %304, %305 : vector<1x32xf32>
    %307 = arith.mulf %300, %283 : vector<1x32xf32>
    %308 = arith.mulf %295, %301 : vector<1x32xf32>
    %309 = arith.addf %307, %308 : vector<1x32xf32>
    %310 = math.tanh %309 : vector<1x32xf32>
    %311 = arith.mulf %306, %310 : vector<1x32xf32>
    %312 = vector.extract_strided_slice %7 {offsets = [12, 0], sizes = [1, 128], strides = [1, 1]} : vector<32x128xf32> to vector<1x128xf32>
    %313 = arith.truncf %311 : vector<1x32xf32> to vector<1x32xbf16>
    %cst_85 = arith.constant dense<0.000000e+00> : vector<1x128xf32>
    %314 = tpu.matmul %313, %9, %cst_85 {dimension_numbers = #tpu.dot_dimension_numbers<[1], [0], [0], [1], [0, 0, 1, 1], [], []>} : vector<1x32xbf16>, vector<32x128xbf16>, vector<1x128xf32> -> vector<1x128xf32>
    %315 = arith.addf %312, %314 : vector<1x128xf32>
    %316 = math.tanh %315 : vector<1x128xf32>
    %317 = vector.extract_strided_slice %316 {offsets = [0, 0], sizes = [1, 32], strides = [1, 1]} : vector<1x128xf32> to vector<1x32xf32>
    %cst_86 = arith.constant 5.000000e-01 : f32
    %318 = vector.broadcast %cst_86 : f32 to vector<1x32xf32>
    %319 = arith.mulf %318, %317 : vector<1x32xf32>
    %cst_87 = arith.constant 5.000000e-01 : f32
    %320 = vector.broadcast %cst_87 : f32 to vector<1x32xf32>
    %321 = arith.addf %319, %320 : vector<1x32xf32>
    %322 = vector.extract_strided_slice %316 {offsets = [0, 32], sizes = [1, 32], strides = [1, 1]} : vector<1x128xf32> to vector<1x32xf32>
    %cst_88 = arith.constant 5.000000e-01 : f32
    %323 = vector.broadcast %cst_88 : f32 to vector<1x32xf32>
    %324 = arith.mulf %323, %322 : vector<1x32xf32>
    %cst_89 = arith.constant 5.000000e-01 : f32
    %325 = vector.broadcast %cst_89 : f32 to vector<1x32xf32>
    %326 = arith.addf %324, %325 : vector<1x32xf32>
    %327 = vector.extract_strided_slice %316 {offsets = [0, 64], sizes = [1, 32], strides = [1, 1]} : vector<1x128xf32> to vector<1x32xf32>
    %328 = vector.extract_strided_slice %316 {offsets = [0, 96], sizes = [1, 32], strides = [1, 1]} : vector<1x128xf32> to vector<1x32xf32>
    %cst_90 = arith.constant 5.000000e-01 : f32
    %329 = vector.broadcast %cst_90 : f32 to vector<1x32xf32>
    %330 = arith.mulf %329, %328 : vector<1x32xf32>
    %cst_91 = arith.constant 5.000000e-01 : f32
    %331 = vector.broadcast %cst_91 : f32 to vector<1x32xf32>
    %332 = arith.addf %330, %331 : vector<1x32xf32>
    %333 = arith.mulf %326, %309 : vector<1x32xf32>
    %334 = arith.mulf %321, %327 : vector<1x32xf32>
    %335 = arith.addf %333, %334 : vector<1x32xf32>
    %336 = math.tanh %335 : vector<1x32xf32>
    %337 = arith.mulf %332, %336 : vector<1x32xf32>
    %338 = vector.extract_strided_slice %7 {offsets = [13, 0], sizes = [1, 128], strides = [1, 1]} : vector<32x128xf32> to vector<1x128xf32>
    %339 = arith.truncf %337 : vector<1x32xf32> to vector<1x32xbf16>
    %cst_92 = arith.constant dense<0.000000e+00> : vector<1x128xf32>
    %340 = tpu.matmul %339, %9, %cst_92 {dimension_numbers = #tpu.dot_dimension_numbers<[1], [0], [0], [1], [0, 0, 1, 1], [], []>} : vector<1x32xbf16>, vector<32x128xbf16>, vector<1x128xf32> -> vector<1x128xf32>
    %341 = arith.addf %338, %340 : vector<1x128xf32>
    %342 = math.tanh %341 : vector<1x128xf32>
    %343 = vector.extract_strided_slice %342 {offsets = [0, 0], sizes = [1, 32], strides = [1, 1]} : vector<1x128xf32> to vector<1x32xf32>
    %cst_93 = arith.constant 5.000000e-01 : f32
    %344 = vector.broadcast %cst_93 : f32 to vector<1x32xf32>
    %345 = arith.mulf %344, %343 : vector<1x32xf32>
    %cst_94 = arith.constant 5.000000e-01 : f32
    %346 = vector.broadcast %cst_94 : f32 to vector<1x32xf32>
    %347 = arith.addf %345, %346 : vector<1x32xf32>
    %348 = vector.extract_strided_slice %342 {offsets = [0, 32], sizes = [1, 32], strides = [1, 1]} : vector<1x128xf32> to vector<1x32xf32>
    %cst_95 = arith.constant 5.000000e-01 : f32
    %349 = vector.broadcast %cst_95 : f32 to vector<1x32xf32>
    %350 = arith.mulf %349, %348 : vector<1x32xf32>
    %cst_96 = arith.constant 5.000000e-01 : f32
    %351 = vector.broadcast %cst_96 : f32 to vector<1x32xf32>
    %352 = arith.addf %350, %351 : vector<1x32xf32>
    %353 = vector.extract_strided_slice %342 {offsets = [0, 64], sizes = [1, 32], strides = [1, 1]} : vector<1x128xf32> to vector<1x32xf32>
    %354 = vector.extract_strided_slice %342 {offsets = [0, 96], sizes = [1, 32], strides = [1, 1]} : vector<1x128xf32> to vector<1x32xf32>
    %cst_97 = arith.constant 5.000000e-01 : f32
    %355 = vector.broadcast %cst_97 : f32 to vector<1x32xf32>
    %356 = arith.mulf %355, %354 : vector<1x32xf32>
    %cst_98 = arith.constant 5.000000e-01 : f32
    %357 = vector.broadcast %cst_98 : f32 to vector<1x32xf32>
    %358 = arith.addf %356, %357 : vector<1x32xf32>
    %359 = arith.mulf %352, %335 : vector<1x32xf32>
    %360 = arith.mulf %347, %353 : vector<1x32xf32>
    %361 = arith.addf %359, %360 : vector<1x32xf32>
    %362 = math.tanh %361 : vector<1x32xf32>
    %363 = arith.mulf %358, %362 : vector<1x32xf32>
    %364 = vector.extract_strided_slice %7 {offsets = [14, 0], sizes = [1, 128], strides = [1, 1]} : vector<32x128xf32> to vector<1x128xf32>
    %365 = arith.truncf %363 : vector<1x32xf32> to vector<1x32xbf16>
    %cst_99 = arith.constant dense<0.000000e+00> : vector<1x128xf32>
    %366 = tpu.matmul %365, %9, %cst_99 {dimension_numbers = #tpu.dot_dimension_numbers<[1], [0], [0], [1], [0, 0, 1, 1], [], []>} : vector<1x32xbf16>, vector<32x128xbf16>, vector<1x128xf32> -> vector<1x128xf32>
    %367 = arith.addf %364, %366 : vector<1x128xf32>
    %368 = math.tanh %367 : vector<1x128xf32>
    %369 = vector.extract_strided_slice %368 {offsets = [0, 0], sizes = [1, 32], strides = [1, 1]} : vector<1x128xf32> to vector<1x32xf32>
    %cst_100 = arith.constant 5.000000e-01 : f32
    %370 = vector.broadcast %cst_100 : f32 to vector<1x32xf32>
    %371 = arith.mulf %370, %369 : vector<1x32xf32>
    %cst_101 = arith.constant 5.000000e-01 : f32
    %372 = vector.broadcast %cst_101 : f32 to vector<1x32xf32>
    %373 = arith.addf %371, %372 : vector<1x32xf32>
    %374 = vector.extract_strided_slice %368 {offsets = [0, 32], sizes = [1, 32], strides = [1, 1]} : vector<1x128xf32> to vector<1x32xf32>
    %cst_102 = arith.constant 5.000000e-01 : f32
    %375 = vector.broadcast %cst_102 : f32 to vector<1x32xf32>
    %376 = arith.mulf %375, %374 : vector<1x32xf32>
    %cst_103 = arith.constant 5.000000e-01 : f32
    %377 = vector.broadcast %cst_103 : f32 to vector<1x32xf32>
    %378 = arith.addf %376, %377 : vector<1x32xf32>
    %379 = vector.extract_strided_slice %368 {offsets = [0, 64], sizes = [1, 32], strides = [1, 1]} : vector<1x128xf32> to vector<1x32xf32>
    %380 = vector.extract_strided_slice %368 {offsets = [0, 96], sizes = [1, 32], strides = [1, 1]} : vector<1x128xf32> to vector<1x32xf32>
    %cst_104 = arith.constant 5.000000e-01 : f32
    %381 = vector.broadcast %cst_104 : f32 to vector<1x32xf32>
    %382 = arith.mulf %381, %380 : vector<1x32xf32>
    %cst_105 = arith.constant 5.000000e-01 : f32
    %383 = vector.broadcast %cst_105 : f32 to vector<1x32xf32>
    %384 = arith.addf %382, %383 : vector<1x32xf32>
    %385 = arith.mulf %378, %361 : vector<1x32xf32>
    %386 = arith.mulf %373, %379 : vector<1x32xf32>
    %387 = arith.addf %385, %386 : vector<1x32xf32>
    %388 = math.tanh %387 : vector<1x32xf32>
    %389 = arith.mulf %384, %388 : vector<1x32xf32>
    %390 = vector.extract_strided_slice %7 {offsets = [15, 0], sizes = [1, 128], strides = [1, 1]} : vector<32x128xf32> to vector<1x128xf32>
    %391 = arith.truncf %389 : vector<1x32xf32> to vector<1x32xbf16>
    %cst_106 = arith.constant dense<0.000000e+00> : vector<1x128xf32>
    %392 = tpu.matmul %391, %9, %cst_106 {dimension_numbers = #tpu.dot_dimension_numbers<[1], [0], [0], [1], [0, 0, 1, 1], [], []>} : vector<1x32xbf16>, vector<32x128xbf16>, vector<1x128xf32> -> vector<1x128xf32>
    %393 = arith.addf %390, %392 : vector<1x128xf32>
    %394 = math.tanh %393 : vector<1x128xf32>
    %395 = vector.extract_strided_slice %394 {offsets = [0, 0], sizes = [1, 32], strides = [1, 1]} : vector<1x128xf32> to vector<1x32xf32>
    %cst_107 = arith.constant 5.000000e-01 : f32
    %396 = vector.broadcast %cst_107 : f32 to vector<1x32xf32>
    %397 = arith.mulf %396, %395 : vector<1x32xf32>
    %cst_108 = arith.constant 5.000000e-01 : f32
    %398 = vector.broadcast %cst_108 : f32 to vector<1x32xf32>
    %399 = arith.addf %397, %398 : vector<1x32xf32>
    %400 = vector.extract_strided_slice %394 {offsets = [0, 32], sizes = [1, 32], strides = [1, 1]} : vector<1x128xf32> to vector<1x32xf32>
    %cst_109 = arith.constant 5.000000e-01 : f32
    %401 = vector.broadcast %cst_109 : f32 to vector<1x32xf32>
    %402 = arith.mulf %401, %400 : vector<1x32xf32>
    %cst_110 = arith.constant 5.000000e-01 : f32
    %403 = vector.broadcast %cst_110 : f32 to vector<1x32xf32>
    %404 = arith.addf %402, %403 : vector<1x32xf32>
    %405 = vector.extract_strided_slice %394 {offsets = [0, 64], sizes = [1, 32], strides = [1, 1]} : vector<1x128xf32> to vector<1x32xf32>
    %406 = vector.extract_strided_slice %394 {offsets = [0, 96], sizes = [1, 32], strides = [1, 1]} : vector<1x128xf32> to vector<1x32xf32>
    %cst_111 = arith.constant 5.000000e-01 : f32
    %407 = vector.broadcast %cst_111 : f32 to vector<1x32xf32>
    %408 = arith.mulf %407, %406 : vector<1x32xf32>
    %cst_112 = arith.constant 5.000000e-01 : f32
    %409 = vector.broadcast %cst_112 : f32 to vector<1x32xf32>
    %410 = arith.addf %408, %409 : vector<1x32xf32>
    %411 = arith.mulf %404, %387 : vector<1x32xf32>
    %412 = arith.mulf %399, %405 : vector<1x32xf32>
    %413 = arith.addf %411, %412 : vector<1x32xf32>
    %414 = math.tanh %413 : vector<1x32xf32>
    %415 = arith.mulf %410, %414 : vector<1x32xf32>
    %416 = vector.extract_strided_slice %7 {offsets = [16, 0], sizes = [1, 128], strides = [1, 1]} : vector<32x128xf32> to vector<1x128xf32>
    %417 = arith.truncf %415 : vector<1x32xf32> to vector<1x32xbf16>
    %cst_113 = arith.constant dense<0.000000e+00> : vector<1x128xf32>
    %418 = tpu.matmul %417, %9, %cst_113 {dimension_numbers = #tpu.dot_dimension_numbers<[1], [0], [0], [1], [0, 0, 1, 1], [], []>} : vector<1x32xbf16>, vector<32x128xbf16>, vector<1x128xf32> -> vector<1x128xf32>
    %419 = arith.addf %416, %418 : vector<1x128xf32>
    %420 = math.tanh %419 : vector<1x128xf32>
    %421 = vector.extract_strided_slice %420 {offsets = [0, 0], sizes = [1, 32], strides = [1, 1]} : vector<1x128xf32> to vector<1x32xf32>
    %cst_114 = arith.constant 5.000000e-01 : f32
    %422 = vector.broadcast %cst_114 : f32 to vector<1x32xf32>
    %423 = arith.mulf %422, %421 : vector<1x32xf32>
    %cst_115 = arith.constant 5.000000e-01 : f32
    %424 = vector.broadcast %cst_115 : f32 to vector<1x32xf32>
    %425 = arith.addf %423, %424 : vector<1x32xf32>
    %426 = vector.extract_strided_slice %420 {offsets = [0, 32], sizes = [1, 32], strides = [1, 1]} : vector<1x128xf32> to vector<1x32xf32>
    %cst_116 = arith.constant 5.000000e-01 : f32
    %427 = vector.broadcast %cst_116 : f32 to vector<1x32xf32>
    %428 = arith.mulf %427, %426 : vector<1x32xf32>
    %cst_117 = arith.constant 5.000000e-01 : f32
    %429 = vector.broadcast %cst_117 : f32 to vector<1x32xf32>
    %430 = arith.addf %428, %429 : vector<1x32xf32>
    %431 = vector.extract_strided_slice %420 {offsets = [0, 64], sizes = [1, 32], strides = [1, 1]} : vector<1x128xf32> to vector<1x32xf32>
    %432 = vector.extract_strided_slice %420 {offsets = [0, 96], sizes = [1, 32], strides = [1, 1]} : vector<1x128xf32> to vector<1x32xf32>
    %cst_118 = arith.constant 5.000000e-01 : f32
    %433 = vector.broadcast %cst_118 : f32 to vector<1x32xf32>
    %434 = arith.mulf %433, %432 : vector<1x32xf32>
    %cst_119 = arith.constant 5.000000e-01 : f32
    %435 = vector.broadcast %cst_119 : f32 to vector<1x32xf32>
    %436 = arith.addf %434, %435 : vector<1x32xf32>
    %437 = arith.mulf %430, %413 : vector<1x32xf32>
    %438 = arith.mulf %425, %431 : vector<1x32xf32>
    %439 = arith.addf %437, %438 : vector<1x32xf32>
    %440 = math.tanh %439 : vector<1x32xf32>
    %441 = arith.mulf %436, %440 : vector<1x32xf32>
    %442 = vector.extract_strided_slice %7 {offsets = [17, 0], sizes = [1, 128], strides = [1, 1]} : vector<32x128xf32> to vector<1x128xf32>
    %443 = arith.truncf %441 : vector<1x32xf32> to vector<1x32xbf16>
    %cst_120 = arith.constant dense<0.000000e+00> : vector<1x128xf32>
    %444 = tpu.matmul %443, %9, %cst_120 {dimension_numbers = #tpu.dot_dimension_numbers<[1], [0], [0], [1], [0, 0, 1, 1], [], []>} : vector<1x32xbf16>, vector<32x128xbf16>, vector<1x128xf32> -> vector<1x128xf32>
    %445 = arith.addf %442, %444 : vector<1x128xf32>
    %446 = math.tanh %445 : vector<1x128xf32>
    %447 = vector.extract_strided_slice %446 {offsets = [0, 0], sizes = [1, 32], strides = [1, 1]} : vector<1x128xf32> to vector<1x32xf32>
    %cst_121 = arith.constant 5.000000e-01 : f32
    %448 = vector.broadcast %cst_121 : f32 to vector<1x32xf32>
    %449 = arith.mulf %448, %447 : vector<1x32xf32>
    %cst_122 = arith.constant 5.000000e-01 : f32
    %450 = vector.broadcast %cst_122 : f32 to vector<1x32xf32>
    %451 = arith.addf %449, %450 : vector<1x32xf32>
    %452 = vector.extract_strided_slice %446 {offsets = [0, 32], sizes = [1, 32], strides = [1, 1]} : vector<1x128xf32> to vector<1x32xf32>
    %cst_123 = arith.constant 5.000000e-01 : f32
    %453 = vector.broadcast %cst_123 : f32 to vector<1x32xf32>
    %454 = arith.mulf %453, %452 : vector<1x32xf32>
    %cst_124 = arith.constant 5.000000e-01 : f32
    %455 = vector.broadcast %cst_124 : f32 to vector<1x32xf32>
    %456 = arith.addf %454, %455 : vector<1x32xf32>
    %457 = vector.extract_strided_slice %446 {offsets = [0, 64], sizes = [1, 32], strides = [1, 1]} : vector<1x128xf32> to vector<1x32xf32>
    %458 = vector.extract_strided_slice %446 {offsets = [0, 96], sizes = [1, 32], strides = [1, 1]} : vector<1x128xf32> to vector<1x32xf32>
    %cst_125 = arith.constant 5.000000e-01 : f32
    %459 = vector.broadcast %cst_125 : f32 to vector<1x32xf32>
    %460 = arith.mulf %459, %458 : vector<1x32xf32>
    %cst_126 = arith.constant 5.000000e-01 : f32
    %461 = vector.broadcast %cst_126 : f32 to vector<1x32xf32>
    %462 = arith.addf %460, %461 : vector<1x32xf32>
    %463 = arith.mulf %456, %439 : vector<1x32xf32>
    %464 = arith.mulf %451, %457 : vector<1x32xf32>
    %465 = arith.addf %463, %464 : vector<1x32xf32>
    %466 = math.tanh %465 : vector<1x32xf32>
    %467 = arith.mulf %462, %466 : vector<1x32xf32>
    %468 = vector.extract_strided_slice %7 {offsets = [18, 0], sizes = [1, 128], strides = [1, 1]} : vector<32x128xf32> to vector<1x128xf32>
    %469 = arith.truncf %467 : vector<1x32xf32> to vector<1x32xbf16>
    %cst_127 = arith.constant dense<0.000000e+00> : vector<1x128xf32>
    %470 = tpu.matmul %469, %9, %cst_127 {dimension_numbers = #tpu.dot_dimension_numbers<[1], [0], [0], [1], [0, 0, 1, 1], [], []>} : vector<1x32xbf16>, vector<32x128xbf16>, vector<1x128xf32> -> vector<1x128xf32>
    %471 = arith.addf %468, %470 : vector<1x128xf32>
    %472 = math.tanh %471 : vector<1x128xf32>
    %473 = vector.extract_strided_slice %472 {offsets = [0, 0], sizes = [1, 32], strides = [1, 1]} : vector<1x128xf32> to vector<1x32xf32>
    %cst_128 = arith.constant 5.000000e-01 : f32
    %474 = vector.broadcast %cst_128 : f32 to vector<1x32xf32>
    %475 = arith.mulf %474, %473 : vector<1x32xf32>
    %cst_129 = arith.constant 5.000000e-01 : f32
    %476 = vector.broadcast %cst_129 : f32 to vector<1x32xf32>
    %477 = arith.addf %475, %476 : vector<1x32xf32>
    %478 = vector.extract_strided_slice %472 {offsets = [0, 32], sizes = [1, 32], strides = [1, 1]} : vector<1x128xf32> to vector<1x32xf32>
    %cst_130 = arith.constant 5.000000e-01 : f32
    %479 = vector.broadcast %cst_130 : f32 to vector<1x32xf32>
    %480 = arith.mulf %479, %478 : vector<1x32xf32>
    %cst_131 = arith.constant 5.000000e-01 : f32
    %481 = vector.broadcast %cst_131 : f32 to vector<1x32xf32>
    %482 = arith.addf %480, %481 : vector<1x32xf32>
    %483 = vector.extract_strided_slice %472 {offsets = [0, 64], sizes = [1, 32], strides = [1, 1]} : vector<1x128xf32> to vector<1x32xf32>
    %484 = vector.extract_strided_slice %472 {offsets = [0, 96], sizes = [1, 32], strides = [1, 1]} : vector<1x128xf32> to vector<1x32xf32>
    %cst_132 = arith.constant 5.000000e-01 : f32
    %485 = vector.broadcast %cst_132 : f32 to vector<1x32xf32>
    %486 = arith.mulf %485, %484 : vector<1x32xf32>
    %cst_133 = arith.constant 5.000000e-01 : f32
    %487 = vector.broadcast %cst_133 : f32 to vector<1x32xf32>
    %488 = arith.addf %486, %487 : vector<1x32xf32>
    %489 = arith.mulf %482, %465 : vector<1x32xf32>
    %490 = arith.mulf %477, %483 : vector<1x32xf32>
    %491 = arith.addf %489, %490 : vector<1x32xf32>
    %492 = math.tanh %491 : vector<1x32xf32>
    %493 = arith.mulf %488, %492 : vector<1x32xf32>
    %494 = vector.extract_strided_slice %7 {offsets = [19, 0], sizes = [1, 128], strides = [1, 1]} : vector<32x128xf32> to vector<1x128xf32>
    %495 = arith.truncf %493 : vector<1x32xf32> to vector<1x32xbf16>
    %cst_134 = arith.constant dense<0.000000e+00> : vector<1x128xf32>
    %496 = tpu.matmul %495, %9, %cst_134 {dimension_numbers = #tpu.dot_dimension_numbers<[1], [0], [0], [1], [0, 0, 1, 1], [], []>} : vector<1x32xbf16>, vector<32x128xbf16>, vector<1x128xf32> -> vector<1x128xf32>
    %497 = arith.addf %494, %496 : vector<1x128xf32>
    %498 = math.tanh %497 : vector<1x128xf32>
    %499 = vector.extract_strided_slice %498 {offsets = [0, 0], sizes = [1, 32], strides = [1, 1]} : vector<1x128xf32> to vector<1x32xf32>
    %cst_135 = arith.constant 5.000000e-01 : f32
    %500 = vector.broadcast %cst_135 : f32 to vector<1x32xf32>
    %501 = arith.mulf %500, %499 : vector<1x32xf32>
    %cst_136 = arith.constant 5.000000e-01 : f32
    %502 = vector.broadcast %cst_136 : f32 to vector<1x32xf32>
    %503 = arith.addf %501, %502 : vector<1x32xf32>
    %504 = vector.extract_strided_slice %498 {offsets = [0, 32], sizes = [1, 32], strides = [1, 1]} : vector<1x128xf32> to vector<1x32xf32>
    %cst_137 = arith.constant 5.000000e-01 : f32
    %505 = vector.broadcast %cst_137 : f32 to vector<1x32xf32>
    %506 = arith.mulf %505, %504 : vector<1x32xf32>
    %cst_138 = arith.constant 5.000000e-01 : f32
    %507 = vector.broadcast %cst_138 : f32 to vector<1x32xf32>
    %508 = arith.addf %506, %507 : vector<1x32xf32>
    %509 = vector.extract_strided_slice %498 {offsets = [0, 64], sizes = [1, 32], strides = [1, 1]} : vector<1x128xf32> to vector<1x32xf32>
    %510 = vector.extract_strided_slice %498 {offsets = [0, 96], sizes = [1, 32], strides = [1, 1]} : vector<1x128xf32> to vector<1x32xf32>
    %cst_139 = arith.constant 5.000000e-01 : f32
    %511 = vector.broadcast %cst_139 : f32 to vector<1x32xf32>
    %512 = arith.mulf %511, %510 : vector<1x32xf32>
    %cst_140 = arith.constant 5.000000e-01 : f32
    %513 = vector.broadcast %cst_140 : f32 to vector<1x32xf32>
    %514 = arith.addf %512, %513 : vector<1x32xf32>
    %515 = arith.mulf %508, %491 : vector<1x32xf32>
    %516 = arith.mulf %503, %509 : vector<1x32xf32>
    %517 = arith.addf %515, %516 : vector<1x32xf32>
    %518 = math.tanh %517 : vector<1x32xf32>
    %519 = arith.mulf %514, %518 : vector<1x32xf32>
    %520 = vector.extract_strided_slice %7 {offsets = [20, 0], sizes = [1, 128], strides = [1, 1]} : vector<32x128xf32> to vector<1x128xf32>
    %521 = arith.truncf %519 : vector<1x32xf32> to vector<1x32xbf16>
    %cst_141 = arith.constant dense<0.000000e+00> : vector<1x128xf32>
    %522 = tpu.matmul %521, %9, %cst_141 {dimension_numbers = #tpu.dot_dimension_numbers<[1], [0], [0], [1], [0, 0, 1, 1], [], []>} : vector<1x32xbf16>, vector<32x128xbf16>, vector<1x128xf32> -> vector<1x128xf32>
    %523 = arith.addf %520, %522 : vector<1x128xf32>
    %524 = math.tanh %523 : vector<1x128xf32>
    %525 = vector.extract_strided_slice %524 {offsets = [0, 0], sizes = [1, 32], strides = [1, 1]} : vector<1x128xf32> to vector<1x32xf32>
    %cst_142 = arith.constant 5.000000e-01 : f32
    %526 = vector.broadcast %cst_142 : f32 to vector<1x32xf32>
    %527 = arith.mulf %526, %525 : vector<1x32xf32>
    %cst_143 = arith.constant 5.000000e-01 : f32
    %528 = vector.broadcast %cst_143 : f32 to vector<1x32xf32>
    %529 = arith.addf %527, %528 : vector<1x32xf32>
    %530 = vector.extract_strided_slice %524 {offsets = [0, 32], sizes = [1, 32], strides = [1, 1]} : vector<1x128xf32> to vector<1x32xf32>
    %cst_144 = arith.constant 5.000000e-01 : f32
    %531 = vector.broadcast %cst_144 : f32 to vector<1x32xf32>
    %532 = arith.mulf %531, %530 : vector<1x32xf32>
    %cst_145 = arith.constant 5.000000e-01 : f32
    %533 = vector.broadcast %cst_145 : f32 to vector<1x32xf32>
    %534 = arith.addf %532, %533 : vector<1x32xf32>
    %535 = vector.extract_strided_slice %524 {offsets = [0, 64], sizes = [1, 32], strides = [1, 1]} : vector<1x128xf32> to vector<1x32xf32>
    %536 = vector.extract_strided_slice %524 {offsets = [0, 96], sizes = [1, 32], strides = [1, 1]} : vector<1x128xf32> to vector<1x32xf32>
    %cst_146 = arith.constant 5.000000e-01 : f32
    %537 = vector.broadcast %cst_146 : f32 to vector<1x32xf32>
    %538 = arith.mulf %537, %536 : vector<1x32xf32>
    %cst_147 = arith.constant 5.000000e-01 : f32
    %539 = vector.broadcast %cst_147 : f32 to vector<1x32xf32>
    %540 = arith.addf %538, %539 : vector<1x32xf32>
    %541 = arith.mulf %534, %517 : vector<1x32xf32>
    %542 = arith.mulf %529, %535 : vector<1x32xf32>
    %543 = arith.addf %541, %542 : vector<1x32xf32>
    %544 = math.tanh %543 : vector<1x32xf32>
    %545 = arith.mulf %540, %544 : vector<1x32xf32>
    %546 = vector.extract_strided_slice %7 {offsets = [21, 0], sizes = [1, 128], strides = [1, 1]} : vector<32x128xf32> to vector<1x128xf32>
    %547 = arith.truncf %545 : vector<1x32xf32> to vector<1x32xbf16>
    %cst_148 = arith.constant dense<0.000000e+00> : vector<1x128xf32>
    %548 = tpu.matmul %547, %9, %cst_148 {dimension_numbers = #tpu.dot_dimension_numbers<[1], [0], [0], [1], [0, 0, 1, 1], [], []>} : vector<1x32xbf16>, vector<32x128xbf16>, vector<1x128xf32> -> vector<1x128xf32>
    %549 = arith.addf %546, %548 : vector<1x128xf32>
    %550 = math.tanh %549 : vector<1x128xf32>
    %551 = vector.extract_strided_slice %550 {offsets = [0, 0], sizes = [1, 32], strides = [1, 1]} : vector<1x128xf32> to vector<1x32xf32>
    %cst_149 = arith.constant 5.000000e-01 : f32
    %552 = vector.broadcast %cst_149 : f32 to vector<1x32xf32>
    %553 = arith.mulf %552, %551 : vector<1x32xf32>
    %cst_150 = arith.constant 5.000000e-01 : f32
    %554 = vector.broadcast %cst_150 : f32 to vector<1x32xf32>
    %555 = arith.addf %553, %554 : vector<1x32xf32>
    %556 = vector.extract_strided_slice %550 {offsets = [0, 32], sizes = [1, 32], strides = [1, 1]} : vector<1x128xf32> to vector<1x32xf32>
    %cst_151 = arith.constant 5.000000e-01 : f32
    %557 = vector.broadcast %cst_151 : f32 to vector<1x32xf32>
    %558 = arith.mulf %557, %556 : vector<1x32xf32>
    %cst_152 = arith.constant 5.000000e-01 : f32
    %559 = vector.broadcast %cst_152 : f32 to vector<1x32xf32>
    %560 = arith.addf %558, %559 : vector<1x32xf32>
    %561 = vector.extract_strided_slice %550 {offsets = [0, 64], sizes = [1, 32], strides = [1, 1]} : vector<1x128xf32> to vector<1x32xf32>
    %562 = vector.extract_strided_slice %550 {offsets = [0, 96], sizes = [1, 32], strides = [1, 1]} : vector<1x128xf32> to vector<1x32xf32>
    %cst_153 = arith.constant 5.000000e-01 : f32
    %563 = vector.broadcast %cst_153 : f32 to vector<1x32xf32>
    %564 = arith.mulf %563, %562 : vector<1x32xf32>
    %cst_154 = arith.constant 5.000000e-01 : f32
    %565 = vector.broadcast %cst_154 : f32 to vector<1x32xf32>
    %566 = arith.addf %564, %565 : vector<1x32xf32>
    %567 = arith.mulf %560, %543 : vector<1x32xf32>
    %568 = arith.mulf %555, %561 : vector<1x32xf32>
    %569 = arith.addf %567, %568 : vector<1x32xf32>
    %570 = math.tanh %569 : vector<1x32xf32>
    %571 = arith.mulf %566, %570 : vector<1x32xf32>
    %572 = vector.extract_strided_slice %7 {offsets = [22, 0], sizes = [1, 128], strides = [1, 1]} : vector<32x128xf32> to vector<1x128xf32>
    %573 = arith.truncf %571 : vector<1x32xf32> to vector<1x32xbf16>
    %cst_155 = arith.constant dense<0.000000e+00> : vector<1x128xf32>
    %574 = tpu.matmul %573, %9, %cst_155 {dimension_numbers = #tpu.dot_dimension_numbers<[1], [0], [0], [1], [0, 0, 1, 1], [], []>} : vector<1x32xbf16>, vector<32x128xbf16>, vector<1x128xf32> -> vector<1x128xf32>
    %575 = arith.addf %572, %574 : vector<1x128xf32>
    %576 = math.tanh %575 : vector<1x128xf32>
    %577 = vector.extract_strided_slice %576 {offsets = [0, 0], sizes = [1, 32], strides = [1, 1]} : vector<1x128xf32> to vector<1x32xf32>
    %cst_156 = arith.constant 5.000000e-01 : f32
    %578 = vector.broadcast %cst_156 : f32 to vector<1x32xf32>
    %579 = arith.mulf %578, %577 : vector<1x32xf32>
    %cst_157 = arith.constant 5.000000e-01 : f32
    %580 = vector.broadcast %cst_157 : f32 to vector<1x32xf32>
    %581 = arith.addf %579, %580 : vector<1x32xf32>
    %582 = vector.extract_strided_slice %576 {offsets = [0, 32], sizes = [1, 32], strides = [1, 1]} : vector<1x128xf32> to vector<1x32xf32>
    %cst_158 = arith.constant 5.000000e-01 : f32
    %583 = vector.broadcast %cst_158 : f32 to vector<1x32xf32>
    %584 = arith.mulf %583, %582 : vector<1x32xf32>
    %cst_159 = arith.constant 5.000000e-01 : f32
    %585 = vector.broadcast %cst_159 : f32 to vector<1x32xf32>
    %586 = arith.addf %584, %585 : vector<1x32xf32>
    %587 = vector.extract_strided_slice %576 {offsets = [0, 64], sizes = [1, 32], strides = [1, 1]} : vector<1x128xf32> to vector<1x32xf32>
    %588 = vector.extract_strided_slice %576 {offsets = [0, 96], sizes = [1, 32], strides = [1, 1]} : vector<1x128xf32> to vector<1x32xf32>
    %cst_160 = arith.constant 5.000000e-01 : f32
    %589 = vector.broadcast %cst_160 : f32 to vector<1x32xf32>
    %590 = arith.mulf %589, %588 : vector<1x32xf32>
    %cst_161 = arith.constant 5.000000e-01 : f32
    %591 = vector.broadcast %cst_161 : f32 to vector<1x32xf32>
    %592 = arith.addf %590, %591 : vector<1x32xf32>
    %593 = arith.mulf %586, %569 : vector<1x32xf32>
    %594 = arith.mulf %581, %587 : vector<1x32xf32>
    %595 = arith.addf %593, %594 : vector<1x32xf32>
    %596 = math.tanh %595 : vector<1x32xf32>
    %597 = arith.mulf %592, %596 : vector<1x32xf32>
    %598 = vector.extract_strided_slice %7 {offsets = [23, 0], sizes = [1, 128], strides = [1, 1]} : vector<32x128xf32> to vector<1x128xf32>
    %599 = arith.truncf %597 : vector<1x32xf32> to vector<1x32xbf16>
    %cst_162 = arith.constant dense<0.000000e+00> : vector<1x128xf32>
    %600 = tpu.matmul %599, %9, %cst_162 {dimension_numbers = #tpu.dot_dimension_numbers<[1], [0], [0], [1], [0, 0, 1, 1], [], []>} : vector<1x32xbf16>, vector<32x128xbf16>, vector<1x128xf32> -> vector<1x128xf32>
    %601 = arith.addf %598, %600 : vector<1x128xf32>
    %602 = math.tanh %601 : vector<1x128xf32>
    %603 = vector.extract_strided_slice %602 {offsets = [0, 0], sizes = [1, 32], strides = [1, 1]} : vector<1x128xf32> to vector<1x32xf32>
    %cst_163 = arith.constant 5.000000e-01 : f32
    %604 = vector.broadcast %cst_163 : f32 to vector<1x32xf32>
    %605 = arith.mulf %604, %603 : vector<1x32xf32>
    %cst_164 = arith.constant 5.000000e-01 : f32
    %606 = vector.broadcast %cst_164 : f32 to vector<1x32xf32>
    %607 = arith.addf %605, %606 : vector<1x32xf32>
    %608 = vector.extract_strided_slice %602 {offsets = [0, 32], sizes = [1, 32], strides = [1, 1]} : vector<1x128xf32> to vector<1x32xf32>
    %cst_165 = arith.constant 5.000000e-01 : f32
    %609 = vector.broadcast %cst_165 : f32 to vector<1x32xf32>
    %610 = arith.mulf %609, %608 : vector<1x32xf32>
    %cst_166 = arith.constant 5.000000e-01 : f32
    %611 = vector.broadcast %cst_166 : f32 to vector<1x32xf32>
    %612 = arith.addf %610, %611 : vector<1x32xf32>
    %613 = vector.extract_strided_slice %602 {offsets = [0, 64], sizes = [1, 32], strides = [1, 1]} : vector<1x128xf32> to vector<1x32xf32>
    %614 = vector.extract_strided_slice %602 {offsets = [0, 96], sizes = [1, 32], strides = [1, 1]} : vector<1x128xf32> to vector<1x32xf32>
    %cst_167 = arith.constant 5.000000e-01 : f32
    %615 = vector.broadcast %cst_167 : f32 to vector<1x32xf32>
    %616 = arith.mulf %615, %614 : vector<1x32xf32>
    %cst_168 = arith.constant 5.000000e-01 : f32
    %617 = vector.broadcast %cst_168 : f32 to vector<1x32xf32>
    %618 = arith.addf %616, %617 : vector<1x32xf32>
    %619 = arith.mulf %612, %595 : vector<1x32xf32>
    %620 = arith.mulf %607, %613 : vector<1x32xf32>
    %621 = arith.addf %619, %620 : vector<1x32xf32>
    %622 = math.tanh %621 : vector<1x32xf32>
    %623 = arith.mulf %618, %622 : vector<1x32xf32>
    %624 = vector.extract_strided_slice %7 {offsets = [24, 0], sizes = [1, 128], strides = [1, 1]} : vector<32x128xf32> to vector<1x128xf32>
    %625 = arith.truncf %623 : vector<1x32xf32> to vector<1x32xbf16>
    %cst_169 = arith.constant dense<0.000000e+00> : vector<1x128xf32>
    %626 = tpu.matmul %625, %9, %cst_169 {dimension_numbers = #tpu.dot_dimension_numbers<[1], [0], [0], [1], [0, 0, 1, 1], [], []>} : vector<1x32xbf16>, vector<32x128xbf16>, vector<1x128xf32> -> vector<1x128xf32>
    %627 = arith.addf %624, %626 : vector<1x128xf32>
    %628 = math.tanh %627 : vector<1x128xf32>
    %629 = vector.extract_strided_slice %628 {offsets = [0, 0], sizes = [1, 32], strides = [1, 1]} : vector<1x128xf32> to vector<1x32xf32>
    %cst_170 = arith.constant 5.000000e-01 : f32
    %630 = vector.broadcast %cst_170 : f32 to vector<1x32xf32>
    %631 = arith.mulf %630, %629 : vector<1x32xf32>
    %cst_171 = arith.constant 5.000000e-01 : f32
    %632 = vector.broadcast %cst_171 : f32 to vector<1x32xf32>
    %633 = arith.addf %631, %632 : vector<1x32xf32>
    %634 = vector.extract_strided_slice %628 {offsets = [0, 32], sizes = [1, 32], strides = [1, 1]} : vector<1x128xf32> to vector<1x32xf32>
    %cst_172 = arith.constant 5.000000e-01 : f32
    %635 = vector.broadcast %cst_172 : f32 to vector<1x32xf32>
    %636 = arith.mulf %635, %634 : vector<1x32xf32>
    %cst_173 = arith.constant 5.000000e-01 : f32
    %637 = vector.broadcast %cst_173 : f32 to vector<1x32xf32>
    %638 = arith.addf %636, %637 : vector<1x32xf32>
    %639 = vector.extract_strided_slice %628 {offsets = [0, 64], sizes = [1, 32], strides = [1, 1]} : vector<1x128xf32> to vector<1x32xf32>
    %640 = vector.extract_strided_slice %628 {offsets = [0, 96], sizes = [1, 32], strides = [1, 1]} : vector<1x128xf32> to vector<1x32xf32>
    %cst_174 = arith.constant 5.000000e-01 : f32
    %641 = vector.broadcast %cst_174 : f32 to vector<1x32xf32>
    %642 = arith.mulf %641, %640 : vector<1x32xf32>
    %cst_175 = arith.constant 5.000000e-01 : f32
    %643 = vector.broadcast %cst_175 : f32 to vector<1x32xf32>
    %644 = arith.addf %642, %643 : vector<1x32xf32>
    %645 = arith.mulf %638, %621 : vector<1x32xf32>
    %646 = arith.mulf %633, %639 : vector<1x32xf32>
    %647 = arith.addf %645, %646 : vector<1x32xf32>
    %648 = math.tanh %647 : vector<1x32xf32>
    %649 = arith.mulf %644, %648 : vector<1x32xf32>
    %650 = vector.extract_strided_slice %7 {offsets = [25, 0], sizes = [1, 128], strides = [1, 1]} : vector<32x128xf32> to vector<1x128xf32>
    %651 = arith.truncf %649 : vector<1x32xf32> to vector<1x32xbf16>
    %cst_176 = arith.constant dense<0.000000e+00> : vector<1x128xf32>
    %652 = tpu.matmul %651, %9, %cst_176 {dimension_numbers = #tpu.dot_dimension_numbers<[1], [0], [0], [1], [0, 0, 1, 1], [], []>} : vector<1x32xbf16>, vector<32x128xbf16>, vector<1x128xf32> -> vector<1x128xf32>
    %653 = arith.addf %650, %652 : vector<1x128xf32>
    %654 = math.tanh %653 : vector<1x128xf32>
    %655 = vector.extract_strided_slice %654 {offsets = [0, 0], sizes = [1, 32], strides = [1, 1]} : vector<1x128xf32> to vector<1x32xf32>
    %cst_177 = arith.constant 5.000000e-01 : f32
    %656 = vector.broadcast %cst_177 : f32 to vector<1x32xf32>
    %657 = arith.mulf %656, %655 : vector<1x32xf32>
    %cst_178 = arith.constant 5.000000e-01 : f32
    %658 = vector.broadcast %cst_178 : f32 to vector<1x32xf32>
    %659 = arith.addf %657, %658 : vector<1x32xf32>
    %660 = vector.extract_strided_slice %654 {offsets = [0, 32], sizes = [1, 32], strides = [1, 1]} : vector<1x128xf32> to vector<1x32xf32>
    %cst_179 = arith.constant 5.000000e-01 : f32
    %661 = vector.broadcast %cst_179 : f32 to vector<1x32xf32>
    %662 = arith.mulf %661, %660 : vector<1x32xf32>
    %cst_180 = arith.constant 5.000000e-01 : f32
    %663 = vector.broadcast %cst_180 : f32 to vector<1x32xf32>
    %664 = arith.addf %662, %663 : vector<1x32xf32>
    %665 = vector.extract_strided_slice %654 {offsets = [0, 64], sizes = [1, 32], strides = [1, 1]} : vector<1x128xf32> to vector<1x32xf32>
    %666 = vector.extract_strided_slice %654 {offsets = [0, 96], sizes = [1, 32], strides = [1, 1]} : vector<1x128xf32> to vector<1x32xf32>
    %cst_181 = arith.constant 5.000000e-01 : f32
    %667 = vector.broadcast %cst_181 : f32 to vector<1x32xf32>
    %668 = arith.mulf %667, %666 : vector<1x32xf32>
    %cst_182 = arith.constant 5.000000e-01 : f32
    %669 = vector.broadcast %cst_182 : f32 to vector<1x32xf32>
    %670 = arith.addf %668, %669 : vector<1x32xf32>
    %671 = arith.mulf %664, %647 : vector<1x32xf32>
    %672 = arith.mulf %659, %665 : vector<1x32xf32>
    %673 = arith.addf %671, %672 : vector<1x32xf32>
    %674 = math.tanh %673 : vector<1x32xf32>
    %675 = arith.mulf %670, %674 : vector<1x32xf32>
    %676 = vector.extract_strided_slice %7 {offsets = [26, 0], sizes = [1, 128], strides = [1, 1]} : vector<32x128xf32> to vector<1x128xf32>
    %677 = arith.truncf %675 : vector<1x32xf32> to vector<1x32xbf16>
    %cst_183 = arith.constant dense<0.000000e+00> : vector<1x128xf32>
    %678 = tpu.matmul %677, %9, %cst_183 {dimension_numbers = #tpu.dot_dimension_numbers<[1], [0], [0], [1], [0, 0, 1, 1], [], []>} : vector<1x32xbf16>, vector<32x128xbf16>, vector<1x128xf32> -> vector<1x128xf32>
    %679 = arith.addf %676, %678 : vector<1x128xf32>
    %680 = math.tanh %679 : vector<1x128xf32>
    %681 = vector.extract_strided_slice %680 {offsets = [0, 0], sizes = [1, 32], strides = [1, 1]} : vector<1x128xf32> to vector<1x32xf32>
    %cst_184 = arith.constant 5.000000e-01 : f32
    %682 = vector.broadcast %cst_184 : f32 to vector<1x32xf32>
    %683 = arith.mulf %682, %681 : vector<1x32xf32>
    %cst_185 = arith.constant 5.000000e-01 : f32
    %684 = vector.broadcast %cst_185 : f32 to vector<1x32xf32>
    %685 = arith.addf %683, %684 : vector<1x32xf32>
    %686 = vector.extract_strided_slice %680 {offsets = [0, 32], sizes = [1, 32], strides = [1, 1]} : vector<1x128xf32> to vector<1x32xf32>
    %cst_186 = arith.constant 5.000000e-01 : f32
    %687 = vector.broadcast %cst_186 : f32 to vector<1x32xf32>
    %688 = arith.mulf %687, %686 : vector<1x32xf32>
    %cst_187 = arith.constant 5.000000e-01 : f32
    %689 = vector.broadcast %cst_187 : f32 to vector<1x32xf32>
    %690 = arith.addf %688, %689 : vector<1x32xf32>
    %691 = vector.extract_strided_slice %680 {offsets = [0, 64], sizes = [1, 32], strides = [1, 1]} : vector<1x128xf32> to vector<1x32xf32>
    %692 = vector.extract_strided_slice %680 {offsets = [0, 96], sizes = [1, 32], strides = [1, 1]} : vector<1x128xf32> to vector<1x32xf32>
    %cst_188 = arith.constant 5.000000e-01 : f32
    %693 = vector.broadcast %cst_188 : f32 to vector<1x32xf32>
    %694 = arith.mulf %693, %692 : vector<1x32xf32>
    %cst_189 = arith.constant 5.000000e-01 : f32
    %695 = vector.broadcast %cst_189 : f32 to vector<1x32xf32>
    %696 = arith.addf %694, %695 : vector<1x32xf32>
    %697 = arith.mulf %690, %673 : vector<1x32xf32>
    %698 = arith.mulf %685, %691 : vector<1x32xf32>
    %699 = arith.addf %697, %698 : vector<1x32xf32>
    %700 = math.tanh %699 : vector<1x32xf32>
    %701 = arith.mulf %696, %700 : vector<1x32xf32>
    %702 = vector.extract_strided_slice %7 {offsets = [27, 0], sizes = [1, 128], strides = [1, 1]} : vector<32x128xf32> to vector<1x128xf32>
    %703 = arith.truncf %701 : vector<1x32xf32> to vector<1x32xbf16>
    %cst_190 = arith.constant dense<0.000000e+00> : vector<1x128xf32>
    %704 = tpu.matmul %703, %9, %cst_190 {dimension_numbers = #tpu.dot_dimension_numbers<[1], [0], [0], [1], [0, 0, 1, 1], [], []>} : vector<1x32xbf16>, vector<32x128xbf16>, vector<1x128xf32> -> vector<1x128xf32>
    %705 = arith.addf %702, %704 : vector<1x128xf32>
    %706 = math.tanh %705 : vector<1x128xf32>
    %707 = vector.extract_strided_slice %706 {offsets = [0, 0], sizes = [1, 32], strides = [1, 1]} : vector<1x128xf32> to vector<1x32xf32>
    %cst_191 = arith.constant 5.000000e-01 : f32
    %708 = vector.broadcast %cst_191 : f32 to vector<1x32xf32>
    %709 = arith.mulf %708, %707 : vector<1x32xf32>
    %cst_192 = arith.constant 5.000000e-01 : f32
    %710 = vector.broadcast %cst_192 : f32 to vector<1x32xf32>
    %711 = arith.addf %709, %710 : vector<1x32xf32>
    %712 = vector.extract_strided_slice %706 {offsets = [0, 32], sizes = [1, 32], strides = [1, 1]} : vector<1x128xf32> to vector<1x32xf32>
    %cst_193 = arith.constant 5.000000e-01 : f32
    %713 = vector.broadcast %cst_193 : f32 to vector<1x32xf32>
    %714 = arith.mulf %713, %712 : vector<1x32xf32>
    %cst_194 = arith.constant 5.000000e-01 : f32
    %715 = vector.broadcast %cst_194 : f32 to vector<1x32xf32>
    %716 = arith.addf %714, %715 : vector<1x32xf32>
    %717 = vector.extract_strided_slice %706 {offsets = [0, 64], sizes = [1, 32], strides = [1, 1]} : vector<1x128xf32> to vector<1x32xf32>
    %718 = vector.extract_strided_slice %706 {offsets = [0, 96], sizes = [1, 32], strides = [1, 1]} : vector<1x128xf32> to vector<1x32xf32>
    %cst_195 = arith.constant 5.000000e-01 : f32
    %719 = vector.broadcast %cst_195 : f32 to vector<1x32xf32>
    %720 = arith.mulf %719, %718 : vector<1x32xf32>
    %cst_196 = arith.constant 5.000000e-01 : f32
    %721 = vector.broadcast %cst_196 : f32 to vector<1x32xf32>
    %722 = arith.addf %720, %721 : vector<1x32xf32>
    %723 = arith.mulf %716, %699 : vector<1x32xf32>
    %724 = arith.mulf %711, %717 : vector<1x32xf32>
    %725 = arith.addf %723, %724 : vector<1x32xf32>
    %726 = math.tanh %725 : vector<1x32xf32>
    %727 = arith.mulf %722, %726 : vector<1x32xf32>
    %728 = vector.extract_strided_slice %7 {offsets = [28, 0], sizes = [1, 128], strides = [1, 1]} : vector<32x128xf32> to vector<1x128xf32>
    %729 = arith.truncf %727 : vector<1x32xf32> to vector<1x32xbf16>
    %cst_197 = arith.constant dense<0.000000e+00> : vector<1x128xf32>
    %730 = tpu.matmul %729, %9, %cst_197 {dimension_numbers = #tpu.dot_dimension_numbers<[1], [0], [0], [1], [0, 0, 1, 1], [], []>} : vector<1x32xbf16>, vector<32x128xbf16>, vector<1x128xf32> -> vector<1x128xf32>
    %731 = arith.addf %728, %730 : vector<1x128xf32>
    %732 = math.tanh %731 : vector<1x128xf32>
    %733 = vector.extract_strided_slice %732 {offsets = [0, 0], sizes = [1, 32], strides = [1, 1]} : vector<1x128xf32> to vector<1x32xf32>
    %cst_198 = arith.constant 5.000000e-01 : f32
    %734 = vector.broadcast %cst_198 : f32 to vector<1x32xf32>
    %735 = arith.mulf %734, %733 : vector<1x32xf32>
    %cst_199 = arith.constant 5.000000e-01 : f32
    %736 = vector.broadcast %cst_199 : f32 to vector<1x32xf32>
    %737 = arith.addf %735, %736 : vector<1x32xf32>
    %738 = vector.extract_strided_slice %732 {offsets = [0, 32], sizes = [1, 32], strides = [1, 1]} : vector<1x128xf32> to vector<1x32xf32>
    %cst_200 = arith.constant 5.000000e-01 : f32
    %739 = vector.broadcast %cst_200 : f32 to vector<1x32xf32>
    %740 = arith.mulf %739, %738 : vector<1x32xf32>
    %cst_201 = arith.constant 5.000000e-01 : f32
    %741 = vector.broadcast %cst_201 : f32 to vector<1x32xf32>
    %742 = arith.addf %740, %741 : vector<1x32xf32>
    %743 = vector.extract_strided_slice %732 {offsets = [0, 64], sizes = [1, 32], strides = [1, 1]} : vector<1x128xf32> to vector<1x32xf32>
    %744 = vector.extract_strided_slice %732 {offsets = [0, 96], sizes = [1, 32], strides = [1, 1]} : vector<1x128xf32> to vector<1x32xf32>
    %cst_202 = arith.constant 5.000000e-01 : f32
    %745 = vector.broadcast %cst_202 : f32 to vector<1x32xf32>
    %746 = arith.mulf %745, %744 : vector<1x32xf32>
    %cst_203 = arith.constant 5.000000e-01 : f32
    %747 = vector.broadcast %cst_203 : f32 to vector<1x32xf32>
    %748 = arith.addf %746, %747 : vector<1x32xf32>
    %749 = arith.mulf %742, %725 : vector<1x32xf32>
    %750 = arith.mulf %737, %743 : vector<1x32xf32>
    %751 = arith.addf %749, %750 : vector<1x32xf32>
    %752 = math.tanh %751 : vector<1x32xf32>
    %753 = arith.mulf %748, %752 : vector<1x32xf32>
    %754 = vector.extract_strided_slice %7 {offsets = [29, 0], sizes = [1, 128], strides = [1, 1]} : vector<32x128xf32> to vector<1x128xf32>
    %755 = arith.truncf %753 : vector<1x32xf32> to vector<1x32xbf16>
    %cst_204 = arith.constant dense<0.000000e+00> : vector<1x128xf32>
    %756 = tpu.matmul %755, %9, %cst_204 {dimension_numbers = #tpu.dot_dimension_numbers<[1], [0], [0], [1], [0, 0, 1, 1], [], []>} : vector<1x32xbf16>, vector<32x128xbf16>, vector<1x128xf32> -> vector<1x128xf32>
    %757 = arith.addf %754, %756 : vector<1x128xf32>
    %758 = math.tanh %757 : vector<1x128xf32>
    %759 = vector.extract_strided_slice %758 {offsets = [0, 0], sizes = [1, 32], strides = [1, 1]} : vector<1x128xf32> to vector<1x32xf32>
    %cst_205 = arith.constant 5.000000e-01 : f32
    %760 = vector.broadcast %cst_205 : f32 to vector<1x32xf32>
    %761 = arith.mulf %760, %759 : vector<1x32xf32>
    %cst_206 = arith.constant 5.000000e-01 : f32
    %762 = vector.broadcast %cst_206 : f32 to vector<1x32xf32>
    %763 = arith.addf %761, %762 : vector<1x32xf32>
    %764 = vector.extract_strided_slice %758 {offsets = [0, 32], sizes = [1, 32], strides = [1, 1]} : vector<1x128xf32> to vector<1x32xf32>
    %cst_207 = arith.constant 5.000000e-01 : f32
    %765 = vector.broadcast %cst_207 : f32 to vector<1x32xf32>
    %766 = arith.mulf %765, %764 : vector<1x32xf32>
    %cst_208 = arith.constant 5.000000e-01 : f32
    %767 = vector.broadcast %cst_208 : f32 to vector<1x32xf32>
    %768 = arith.addf %766, %767 : vector<1x32xf32>
    %769 = vector.extract_strided_slice %758 {offsets = [0, 64], sizes = [1, 32], strides = [1, 1]} : vector<1x128xf32> to vector<1x32xf32>
    %770 = vector.extract_strided_slice %758 {offsets = [0, 96], sizes = [1, 32], strides = [1, 1]} : vector<1x128xf32> to vector<1x32xf32>
    %cst_209 = arith.constant 5.000000e-01 : f32
    %771 = vector.broadcast %cst_209 : f32 to vector<1x32xf32>
    %772 = arith.mulf %771, %770 : vector<1x32xf32>
    %cst_210 = arith.constant 5.000000e-01 : f32
    %773 = vector.broadcast %cst_210 : f32 to vector<1x32xf32>
    %774 = arith.addf %772, %773 : vector<1x32xf32>
    %775 = arith.mulf %768, %751 : vector<1x32xf32>
    %776 = arith.mulf %763, %769 : vector<1x32xf32>
    %777 = arith.addf %775, %776 : vector<1x32xf32>
    %778 = math.tanh %777 : vector<1x32xf32>
    %779 = arith.mulf %774, %778 : vector<1x32xf32>
    %780 = vector.extract_strided_slice %7 {offsets = [30, 0], sizes = [1, 128], strides = [1, 1]} : vector<32x128xf32> to vector<1x128xf32>
    %781 = arith.truncf %779 : vector<1x32xf32> to vector<1x32xbf16>
    %cst_211 = arith.constant dense<0.000000e+00> : vector<1x128xf32>
    %782 = tpu.matmul %781, %9, %cst_211 {dimension_numbers = #tpu.dot_dimension_numbers<[1], [0], [0], [1], [0, 0, 1, 1], [], []>} : vector<1x32xbf16>, vector<32x128xbf16>, vector<1x128xf32> -> vector<1x128xf32>
    %783 = arith.addf %780, %782 : vector<1x128xf32>
    %784 = math.tanh %783 : vector<1x128xf32>
    %785 = vector.extract_strided_slice %784 {offsets = [0, 0], sizes = [1, 32], strides = [1, 1]} : vector<1x128xf32> to vector<1x32xf32>
    %cst_212 = arith.constant 5.000000e-01 : f32
    %786 = vector.broadcast %cst_212 : f32 to vector<1x32xf32>
    %787 = arith.mulf %786, %785 : vector<1x32xf32>
    %cst_213 = arith.constant 5.000000e-01 : f32
    %788 = vector.broadcast %cst_213 : f32 to vector<1x32xf32>
    %789 = arith.addf %787, %788 : vector<1x32xf32>
    %790 = vector.extract_strided_slice %784 {offsets = [0, 32], sizes = [1, 32], strides = [1, 1]} : vector<1x128xf32> to vector<1x32xf32>
    %cst_214 = arith.constant 5.000000e-01 : f32
    %791 = vector.broadcast %cst_214 : f32 to vector<1x32xf32>
    %792 = arith.mulf %791, %790 : vector<1x32xf32>
    %cst_215 = arith.constant 5.000000e-01 : f32
    %793 = vector.broadcast %cst_215 : f32 to vector<1x32xf32>
    %794 = arith.addf %792, %793 : vector<1x32xf32>
    %795 = vector.extract_strided_slice %784 {offsets = [0, 64], sizes = [1, 32], strides = [1, 1]} : vector<1x128xf32> to vector<1x32xf32>
    %796 = vector.extract_strided_slice %784 {offsets = [0, 96], sizes = [1, 32], strides = [1, 1]} : vector<1x128xf32> to vector<1x32xf32>
    %cst_216 = arith.constant 5.000000e-01 : f32
    %797 = vector.broadcast %cst_216 : f32 to vector<1x32xf32>
    %798 = arith.mulf %797, %796 : vector<1x32xf32>
    %cst_217 = arith.constant 5.000000e-01 : f32
    %799 = vector.broadcast %cst_217 : f32 to vector<1x32xf32>
    %800 = arith.addf %798, %799 : vector<1x32xf32>
    %801 = arith.mulf %794, %777 : vector<1x32xf32>
    %802 = arith.mulf %789, %795 : vector<1x32xf32>
    %803 = arith.addf %801, %802 : vector<1x32xf32>
    %804 = math.tanh %803 : vector<1x32xf32>
    %805 = arith.mulf %800, %804 : vector<1x32xf32>
    %806 = vector.extract_strided_slice %7 {offsets = [31, 0], sizes = [1, 128], strides = [1, 1]} : vector<32x128xf32> to vector<1x128xf32>
    %807 = arith.truncf %805 : vector<1x32xf32> to vector<1x32xbf16>
    %cst_218 = arith.constant dense<0.000000e+00> : vector<1x128xf32>
    %808 = tpu.matmul %807, %9, %cst_218 {dimension_numbers = #tpu.dot_dimension_numbers<[1], [0], [0], [1], [0, 0, 1, 1], [], []>} : vector<1x32xbf16>, vector<32x128xbf16>, vector<1x128xf32> -> vector<1x128xf32>
    %809 = arith.addf %806, %808 : vector<1x128xf32>
    %810 = math.tanh %809 : vector<1x128xf32>
    %811 = vector.extract_strided_slice %810 {offsets = [0, 0], sizes = [1, 32], strides = [1, 1]} : vector<1x128xf32> to vector<1x32xf32>
    %cst_219 = arith.constant 5.000000e-01 : f32
    %812 = vector.broadcast %cst_219 : f32 to vector<1x32xf32>
    %813 = arith.mulf %812, %811 : vector<1x32xf32>
    %cst_220 = arith.constant 5.000000e-01 : f32
    %814 = vector.broadcast %cst_220 : f32 to vector<1x32xf32>
    %815 = arith.addf %813, %814 : vector<1x32xf32>
    %816 = vector.extract_strided_slice %810 {offsets = [0, 32], sizes = [1, 32], strides = [1, 1]} : vector<1x128xf32> to vector<1x32xf32>
    %cst_221 = arith.constant 5.000000e-01 : f32
    %817 = vector.broadcast %cst_221 : f32 to vector<1x32xf32>
    %818 = arith.mulf %817, %816 : vector<1x32xf32>
    %cst_222 = arith.constant 5.000000e-01 : f32
    %819 = vector.broadcast %cst_222 : f32 to vector<1x32xf32>
    %820 = arith.addf %818, %819 : vector<1x32xf32>
    %821 = vector.extract_strided_slice %810 {offsets = [0, 64], sizes = [1, 32], strides = [1, 1]} : vector<1x128xf32> to vector<1x32xf32>
    %822 = vector.extract_strided_slice %810 {offsets = [0, 96], sizes = [1, 32], strides = [1, 1]} : vector<1x128xf32> to vector<1x32xf32>
    %cst_223 = arith.constant 5.000000e-01 : f32
    %823 = vector.broadcast %cst_223 : f32 to vector<1x32xf32>
    %824 = arith.mulf %823, %822 : vector<1x32xf32>
    %cst_224 = arith.constant 5.000000e-01 : f32
    %825 = vector.broadcast %cst_224 : f32 to vector<1x32xf32>
    %826 = arith.addf %824, %825 : vector<1x32xf32>
    %827 = arith.mulf %820, %803 : vector<1x32xf32>
    %828 = arith.mulf %815, %821 : vector<1x32xf32>
    %829 = arith.addf %827, %828 : vector<1x32xf32>
    %830 = math.tanh %829 : vector<1x32xf32>
    %831 = arith.mulf %826, %830 : vector<1x32xf32>
    %c34 = arith.constant 34 : index
    %c0_225 = arith.constant 0 : index
    %832 = vector.load %arg2[%c34, %c0_225] : memref<36x128xf32, #tpu.memory_space<vmem>>, vector<1x32xf32>
    %c35 = arith.constant 35 : index
    %c0_226 = arith.constant 0 : index
    %833 = vector.load %arg2[%c35, %c0_226] : memref<36x128xf32, #tpu.memory_space<vmem>>, vector<1x1xf32>
    %834 = arith.mulf %831, %832 : vector<1x32xf32>
    %cst_227 = arith.constant dense<0.000000e+00> : vector<1xf32>
    %835 = vector.multi_reduction <add>, %834, %cst_227 [1] : vector<1x32xf32> to vector<1xf32>
    %836 = vector.shape_cast %835 : vector<1xf32> to vector<1x1xf32>
    %837 = arith.addf %836, %833 : vector<1x1xf32>
    %c0_228 = arith.constant 0 : index
    %c0_229 = arith.constant 0 : index
    %838 = vector.load %arg3[%c0_228, %c0_229] : memref<1x1xf32, #tpu.memory_space<vmem>>, vector<1x1xf32>
    tpu.vector_store %arg3[%c0_228, %c0_229], %837 {strides = array<i32>} : memref<1x1xf32, #tpu.memory_space<vmem>>, vector<1x1xf32>,
    return
  }
  func.func @transform_0(%arg0: i32) -> (i32, i32) {
    %c63_i32 = arith.constant 63 : i32
    %c0_i32 = arith.constant 0 : i32
    %c0_i32_0 = arith.constant 0 : i32
    return %c63_i32, %c0_i32 : i32, i32
  }
  func.func @transform_1(%arg0: i32) -> (i32, i32) {
    %c0_i32 = arith.constant 0 : i32
    %c0_i32_0 = arith.constant 0 : i32
    %c0_i32_1 = arith.constant 0 : i32
    return %c0_i32, %c0_i32_0 : i32, i32
  }
  func.func @transform_2(%arg0: i32) -> (i32, i32) {
    %c0_i32 = arith.constant 0 : i32
    %c0_i32_0 = arith.constant 0 : i32
    %c0_i32_1 = arith.constant 0 : i32
    return %c0_i32, %c0_i32_0 : i32, i32
  }
}

</mosaic_0001>

<bundles_post_ra>
// kernel: lstm_p_forward.1
= control target key start
LH: loop header
LB: loop body
LE: loop exit
PB: predicated region body
PF: predicated region fallthrough
CT: control target
= control target key end

     0   :  { %s3478_s0 = inlined_call_operand.vmem [shape: f32[2048,1], index: 0, kind: input, shape index: {}]   ;;  %s3479_s1 = inlined_call_operand.vmem [shape: f32[36,128], index: 1, kind: input, shape index: {}]   ;;  %s3480_s2 = inlined_call_operand.hbm [shape: f32[1,1], index: 2, kind: output, shape index: {}]  }
   0x1   :  { %v2455_v0 = vld [vmem:[%s3478_s0 + $0x7e0] sm:$0xff] }
   0x2   :  { %7 = vsyncpa [#allocation3], 0  ;;  %v2996_v1 = vmov 0   ;;  %v3024_v2 = vld [vmem:[%s3479_s1 + $0x20] ss:$0 sm:$0xff]  ;;  %s2997_s15 = smov 64  }
   0x3   :  { %2840 = vset.pattern.permute.xlu0 %v2996_v1  ;;  %2841 = vset.pattern.permute.xlu1 %v2996_v1  ;;  %v3029_v4 = vld [vmem:[%s3479_s1 + $0x21] ss:$0 sm:$0xff]  ;;  %v59_v13 = vld [vmem:[%s3479_s1 + $0x8] sm:$0xff]  ;;  %v60_v14 = vld [vmem:[%s3479_s1 + $0x10] sm:$0xff]  ;;  %v2998_v15 = vmov 0.0   ;;  %vm2999_vm0 = vmmov 0  }
   0x4   :  { %24 = vperm.xlu0 %2840, %v2455_v0   ;;  %v58_v12 = vld [vmem:[%s3479_s1] sm:$0xff]  ;;  %2585 = vmatprep.subr.bf16.mxu0 %v2998_v15  ;;  %v61_v17 = vld [vmem:[%s3479_s1 + $0x18] sm:$0xff]  ;;  %s3000_s24 = smov 96   ;;  %s3001_s25 = smov 32   ;;  %vm82_vm1 = vcmask 261120   ;;  %vm2431_vm2 = vcmask 261127  }
   0x5   :  { %v3047_v16 = vpack.c.bf16 %v59_v13, %v58_v12  ;;  %2589 = vmatprep.mubr.msk.bf16.mxu0 %vm2999_vm0, %v2998_v15  ;;  %2593 = vmatprep.subr.bf16.mxu1 %v2998_v15  ;;  %v3058_v18 = vpack.c.bf16 %v61_v17, %v60_v14  ;;  %s3002_s11 = smov [#allocation2]   ;;  %vm2439_vm3 = vcmask 7175  }
   0x6   :  { %2597 = vmatprep.mubr.msk.bf16.mxu1 %vm2999_vm0, %v2998_v15  ;;  %s2447_s12 = sshll.u32 %s3002_s11, 4  ;;  %s2448_s12 = int_to_ptr.vmem [resolvable:$true] %s2447_s12 }
   0x7   :  { %2586 = vmatpush3.bf16.msra.mxu0 %v3047_v16  ;;  %2594 = vmatpush3.bf16.msra.mxu1 %v3047_v16  ;;  %s2972_s13 = scalar_lea.vmem %s2448_s12, 16  ;;  %s2976_s14 = scalar_lea.vmem %s2448_s12, 32 }
   0x8   :  { %2587 = vmatprep.subr.bf16.mxu0 %v2998_v15  ;;  %2595 = vmatprep.subr.bf16.mxu1 %v2998_v15  ;;  %p2973_p0 = scmp.ne.s32.totalorder %s2448_s12, %s2972_s13  ;;  %p2977_p1 = scmp.lt.s32.totalorder %s2448_s12, %s2448_s12 }
   0x9   :  { %p2978_p2 = scmp.lt.s32.totalorder %s2976_s14, %s2972_s13 }
   0xb   :  { %2588 = vmatpush3.bf16.msra.mxu0 %v3058_v18  ;;  %2596 = vmatpush3.bf16.msra.mxu1 %v3058_v18  ;;  %p2979_p3 = por %p2978_p2, %p2977_p1 }
   0xc   :  { %2601 = vmatprep.subr.bf16.mxu0 %v2998_v15  ;;  %2609 = vmatprep.subr.bf16.mxu1 %v2998_v15 }
   0xd   :  { %p2980_p4 = pnand %p2979_p3, %p2973_p0 }
  0x83   :  { %v25_v3 = vpop.permute.xlu0 %24 }
  0x84   :  { %v46_v5 = vmul.f32 %v3024_v2, %v25_v3 }
  0x86   :  { %v3033_v6 = vadd.f32 %v3029_v4, %v46_v5 }
  0x88   :  { %2842 = vtanh.f32 %v3033_v6 }
  0x92   :  { %v2843_v7 = vpop.eup %2842 }
  0x93   :  { %68 = vrot.lane.b32.xlu0 %v2843_v7, %s2997_s15  ;;  %v65_v8 = vmul.f32 0.5, %v2843_v7 }
  0x95   :  { %v66_v9 = vadd.f32 0.5, %v65_v8 }
 0x105   :  { %v69_v10 = vpop.permute.xlu0 %68 }
 0x106   :  { %v71_v11 = vmul.f32 %v69_v10, %v66_v9 }
 0x108   :  { %2844 = vtanh.f32 %v71_v11  ;;  %v134_v23 = vrot.slane %v71_v11, 7 }
 0x112   :  { %v2845_v19 = vpop.eup %2844 }
 0x113   :  { %74 = vrot.lane.b32.xlu1 %v2845_v19, %s3000_s24 }
 0x185   :  { %v75_v20 = vpop.permute.xlu1 %74 }
 0x186   :  { %v77_v21 = vmul.f32 %v75_v20, %v66_v9 }
 0x188   :  { %v78_v22 = vpack.c.bf16 %v77_v21, %v77_v21 }
 0x18a   :  { %80 = vrot.lane.b32.xlu1 %v78_v22, %s3001_s25 }
 0x18e   :  { %135 = vrot.lane.b32.xlu1 %v134_v23, %s3001_s25 }
 0x1fc   :  { %v81_v24 = vpop.permute.xlu1 %80 }
 0x1fd   :  { %2590 = vmatmul.mubr.msk.bf16.vlgmr.msra.gmra.mrb[0].mxu0 %vm82_vm1, %v81_v24 }
 0x1fe   :  { %2602 = vmatpush3.bf16.msra.mxu0 %v3047_v16  ;;  %2605 = vmatprep.mubr.msk.bf16.mxu0 %vm2999_vm0, %v2998_v15 }
 0x1ff   :  { %2603 = vmatprep.subr.bf16.mxu0 %v2998_v15 }
 0x200   :  { %v136_v36 = vpop.permute.xlu1 %135 }
 0x202   :  { %2604 = vmatpush3.bf16.msra.mxu0 %v3058_v18 }
 0x203   :  { %2617 = vmatprep.subr.bf16.mxu0 %v2998_v15 }
 0x2d0   :  { %v120_v25 = vpop.f32.mrb[0].mxu0 }
 0x2d1   :  { %v127_v26 = vrot.slane %v120_v25, 7  ;;  %v2591_v27 = vpop.f32.mrb[1].mxu0 }
 0x2d2   :  { %v123_v28 = vpop.f32.mrb[2].mxu0 }
 0x2d3   :  { %v129_v29 = vadd.f32 %v127_v26, %v3033_v6  ;;  %v2592_v30 = vpop.f32.mrb[3].mxu0 }
 0x2d5   :  { %2846 = vtanh.f32 %v129_v29 }
 0x2df   :  { %v2847_v31 = vpop.eup %2846 }
 0x2e0   :  { %140 = vrot.lane.b32.xlu0 %v2847_v31, %s2997_s15  ;;  %v131_v32 = vmul.f32 0.5, %v2847_v31 }
 0x2e2   :  { %v132_v33 = vadd.f32 0.5, %v131_v32 }
 0x2e4   :  { %v138_v37 = vmul.f32 %v136_v36, %v132_v33 }
 0x352   :  { %v141_v34 = vpop.permute.xlu0 %140 }
 0x353   :  { %v143_v35 = vmul.f32 %v141_v34, %v132_v33 }
 0x355   :  { %145 = vrot.lane.b32.xlu0 %v143_v35, %s3001_s25 }
 0x3c7   :  { %v146_v38 = vpop.permute.xlu0 %145 }
 0x3c8   :  { %v148_v39 = vadd.f32 %v146_v38, %v138_v37 }
 0x3ca   :  { %2848 = vtanh.f32 %v148_v39  ;;  %v212_v57 = vrot.slane %v148_v39, 7 }
 0x3d4   :  { %v2849_v40 = vpop.eup %2848 }
 0x3d5   :  { %151 = vrot.lane.b32.xlu1 %v2849_v40, %s2997_s15 }
 0x447   :  { %v152_v41 = vpop.permute.xlu1 %151 }
 0x448   :  { %v154_v42 = vmul.f32 %v152_v41, %v132_v33 }
 0x44a   :  { %v155_v43 = vpack.c.bf16 %v154_v42, %v154_v42 }
 0x44c   :  { %v157_v44 = vshrl.u32 %v155_v43, 16 }
 0x44e   :  { %159 = vrot.lane.b32.xlu0 %v157_v44, %s3001_s25 }
 0x4c0   :  { %v160_v45 = vpop.permute.xlu0 %159 }
 0x4c1   :  { %2598 = vmatmul.mubr.msk.bf16.vlgmr.msra.gmra.mrb[0].mxu1 %vm82_vm1, %v160_v45 }
 0x4c2   :  { %2610 = vmatpush3.bf16.msra.mxu1 %v3047_v16  ;;  %2613 = vmatprep.mubr.msk.bf16.mxu1 %vm2999_vm0, %v2998_v15 }
 0x4c3   :  { %2611 = vmatprep.subr.bf16.mxu1 %v2998_v15 }
 0x4c6   :  { %2612 = vmatpush3.bf16.msra.mxu1 %v3058_v18 }
 0x4c7   :  { %2625 = vmatprep.subr.bf16.mxu1 %v2998_v15 }
 0x594   :  { %v198_v46 = vpop.f32.mrb[0].mxu1 }
 0x595   :  { %v205_v47 = vrot.slane %v198_v46, 6  ;;  %v2599_v48 = vpop.f32.mrb[1].mxu1 }
 0x596   :  { %v201_v49 = vpop.f32.mrb[2].mxu1 }
 0x597   :  { %v207_v50 = vadd.f32 %v205_v47, %v3033_v6  ;;  %v2600_v51 = vpop.f32.mrb[3].mxu1 }
 0x599   :  { %2850 = vtanh.f32 %v207_v50 }
 0x5a3   :  { %v2851_v52 = vpop.eup %2850 }
 0x5a4   :  { %216 = vrot.lane.b32.xlu1 %v2851_v52, %s2997_s15  ;;  %v209_v53 = vmul.f32 0.5, %v2851_v52 }
 0x5a6   :  { %v210_v54 = vadd.f32 0.5, %v209_v53 }
 0x5a8   :  { %v214_v58 = vmul.f32 %v212_v57, %v210_v54 }
 0x616   :  { %v217_v55 = vpop.permute.xlu1 %216 }
 0x617   :  { %v219_v56 = vmul.f32 %v217_v55, %v210_v54 }
 0x619   :  { %221 = vrot.lane.b32.xlu0 %v219_v56, %s3001_s25 }
 0x68b   :  { %v222_v59 = vpop.permute.xlu0 %221 }
 0x68c   :  { %v224_v60 = vadd.f32 %v222_v59, %v214_v58 }
 0x68e   :  { %2852 = vtanh.f32 %v224_v60  ;;  %v287_v20 = vrot.slane %v224_v60, 7 }
 0x698   :  { %v2853_v61 = vpop.eup %2852 }
 0x699   :  { %227 = vrot.lane.b32.xlu1 %v2853_v61, %s2997_s15 }
 0x70b   :  { %v228_v62 = vpop.permute.xlu1 %227 }
 0x70c   :  { %v230_v63 = vmul.f32 %v228_v62, %v210_v54 }
 0x70e   :  { %v231_v0 = vpack.c.bf16 %v230_v63, %v230_v63 }
 0x710   :  { %v233_v1 = vrot.slane %v231_v0, 1 }
 0x712   :  { %234 = vrot.lane.b32.xlu0 %v233_v1, %s3001_s25 }
 0x784   :  { %v235_v3 = vpop.permute.xlu0 %234 }
 0x785   :  { %2606 = vmatmul.mubr.msk.bf16.vlgmr.msra.gmra.mrb[4].mxu0 %vm82_vm1, %v235_v3 }
 0x786   :  { %2618 = vmatpush3.bf16.msra.mxu0 %v3047_v16  ;;  %2621 = vmatprep.mubr.msk.bf16.mxu0 %vm2999_vm0, %v2998_v15 }
 0x787   :  { %2619 = vmatprep.subr.bf16.mxu0 %v2998_v15 }
 0x78a   :  { %2620 = vmatpush3.bf16.msra.mxu0 %v3058_v18 }
 0x78b   :  { %2633 = vmatprep.subr.bf16.mxu0 %v2998_v15 }
 0x858   :  { %v273_v5 = vpop.f32.mrb[4].mxu0 }
 0x859   :  { %v280_v7 = vrot.slane %v273_v5, 5  ;;  %v2607_v8 = vpop.f32.mrb[5].mxu0 }
 0x85a   :  { %v276_v9 = vpop.f32.mrb[6].mxu0 }
 0x85b   :  { %v282_v10 = vadd.f32 %v280_v7, %v3033_v6  ;;  %v2608_v11 = vpop.f32.mrb[7].mxu0 }
 0x85d   :  { %2854 = vtanh.f32 %v282_v10 }
 0x867   :  { %v2855_v12 = vpop.eup %2854 }
 0x868   :  { %291 = vrot.lane.b32.xlu1 %v2855_v12, %s2997_s15  ;;  %v284_v13 = vmul.f32 0.5, %v2855_v12 }
 0x86a   :  { %v285_v14 = vadd.f32 0.5, %v284_v13 }
 0x86c   :  { %v289_v21 = vmul.f32 %v287_v20, %v285_v14 }
 0x8da   :  { %v292_v17 = vpop.permute.xlu1 %291 }
 0x8db   :  { %v294_v19 = vmul.f32 %v292_v17, %v285_v14 }
 0x8dd   :  { %296 = vrot.lane.b32.xlu0 %v294_v19, %s3001_s25 }
 0x94f   :  { %v297_v22 = vpop.permute.xlu0 %296 }
 0x950   :  { %v299_v23 = vadd.f32 %v297_v22, %v289_v21 }
 0x952   :  { %2856 = vtanh.f32 %v299_v23  ;;  %v364_v42 = vrot.slane %v299_v23, 7 }
 0x95c   :  { %v2857_v24 = vpop.eup %2856 }
 0x95d   :  { %302 = vrot.lane.b32.xlu1 %v2857_v24, %s2997_s15 }
 0x9cf   :  { %v303_v25 = vpop.permute.xlu1 %302 }
 0x9d0   :  { %v305_v26 = vmul.f32 %v303_v25, %v285_v14 }
 0x9d2   :  { %v306_v27 = vpack.c.bf16 %v305_v26, %v305_v26 }
 0x9d4   :  { %v308_v28 = vshrl.u32 %v306_v27, 16 }
 0x9d6   :  { %v310_v29 = vrot.slane %v308_v28, 1 }
 0x9d8   :  { %311 = vrot.lane.b32.xlu0 %v310_v29, %s3001_s25 }
 0xa4a   :  { %v312_v30 = vpop.permute.xlu0 %311 }
 0xa4b   :  { %2614 = vmatmul.mubr.msk.bf16.vlgmr.msra.gmra.mrb[4].mxu1 %vm82_vm1, %v312_v30 }
 0xa4c   :  { %2626 = vmatpush3.bf16.msra.mxu1 %v3047_v16  ;;  %2629 = vmatprep.mubr.msk.bf16.mxu1 %vm2999_vm0, %v2998_v15 }
 0xa4d   :  { %2627 = vmatprep.subr.bf16.mxu1 %v2998_v15 }
 0xa50   :  { %2628 = vmatpush3.bf16.msra.mxu1 %v3058_v18 }
 0xa51   :  { %2641 = vmatprep.subr.bf16.mxu1 %v2998_v15 }
 0xb1e   :  { %v350_v31 = vpop.f32.mrb[4].mxu1 }
 0xb1f   :  { %v357_v32 = vrot.slane %v350_v31, 4  ;;  %v2615_v33 = vpop.f32.mrb[5].mxu1 }
 0xb20   :  { %v353_v34 = vpop.f32.mrb[6].mxu1 }
 0xb21   :  { %v359_v35 = vadd.f32 %v357_v32, %v3033_v6  ;;  %v2616_v36 = vpop.f32.mrb[7].mxu1 }
 0xb23   :  { %2858 = vtanh.f32 %v359_v35 }
 0xb2d   :  { %v2859_v37 = vpop.eup %2858 }
 0xb2e   :  { %368 = vrot.lane.b32.xlu1 %v2859_v37, %s2997_s15  ;;  %v361_v38 = vmul.f32 0.5, %v2859_v37 }
 0xb30   :  { %v362_v39 = vadd.f32 0.5, %v361_v38 }
 0xb32   :  { %v366_v43 = vmul.f32 %v364_v42, %v362_v39 }
 0xba0   :  { %v369_v40 = vpop.permute.xlu1 %368 }
 0xba1   :  { %v371_v41 = vmul.f32 %v369_v40, %v362_v39 }
 0xba3   :  { %373 = vrot.lane.b32.xlu0 %v371_v41, %s3001_s25 }
 0xc15   :  { %v374_v44 = vpop.permute.xlu0 %373 }
 0xc16   :  { %v376_v45 = vadd.f32 %v374_v44, %v366_v43 }
 0xc18   :  { %2860 = vtanh.f32 %v376_v45  ;;  %v439_v63 = vrot.slane %v376_v45, 7 }
 0xc22   :  { %v2861_v46 = vpop.eup %2860 }
 0xc23   :  { %379 = vrot.lane.b32.xlu1 %v2861_v46, %s2997_s15 }
 0xc95   :  { %v380_v47 = vpop.permute.xlu1 %379 }
 0xc96   :  { %v382_v48 = vmul.f32 %v380_v47, %v362_v39 }
 0xc98   :  { %v383_v49 = vpack.c.bf16 %v382_v48, %v382_v48 }
 0xc9a   :  { %v385_v50 = vrot.slane %v383_v49, 2 }
 0xc9c   :  { %386 = vrot.lane.b32.xlu0 %v385_v50, %s3001_s25 }
 0xd0e   :  { %v387_v51 = vpop.permute.xlu0 %386 }
 0xd0f   :  { %2622 = vmatmul.mubr.msk.bf16.vlgmr.msra.gmra.mrb[8].mxu0 %vm82_vm1, %v387_v51 }
 0xd10   :  { %2634 = vmatpush3.bf16.msra.mxu0 %v3047_v16  ;;  %2637 = vmatprep.mubr.msk.bf16.mxu0 %vm2999_vm0, %v2998_v15 }
 0xd11   :  { %2635 = vmatprep.subr.bf16.mxu0 %v2998_v15 }
 0xd14   :  { %2636 = vmatpush3.bf16.msra.mxu0 %v3058_v18 }
 0xd15   :  { %2649 = vmatprep.subr.bf16.mxu0 %v2998_v15 }
 0xde2   :  { %v425_v52 = vpop.f32.mrb[8].mxu0 }
 0xde3   :  { %v432_v53 = vrot.slane %v425_v52, 3  ;;  %v2623_v54 = vpop.f32.mrb[9].mxu0 }
 0xde4   :  { %v428_v55 = vpop.f32.mrb[10].mxu0 }
 0xde5   :  { %v434_v56 = vadd.f32 %v432_v53, %v3033_v6  ;;  %v2624_v57 = vpop.f32.mrb[11].mxu0 }
 0xde7   :  { %2862 = vtanh.f32 %v434_v56 }
 0xdf1   :  { %v2863_v58 = vpop.eup %2862 }
 0xdf2   :  { %443 = vrot.lane.b32.xlu1 %v2863_v58, %s2997_s15  ;;  %v436_v59 = vmul.f32 0.5, %v2863_v58 }
 0xdf4   :  { %v437_v60 = vadd.f32 0.5, %v436_v59 }
 0xdf6   :  { %v441_v0 = vmul.f32 %v439_v63, %v437_v60 }
 0xe64   :  { %v444_v61 = vpop.permute.xlu1 %443 }
 0xe65   :  { %v446_v62 = vmul.f32 %v444_v61, %v437_v60 }
 0xe67   :  { %448 = vrot.lane.b32.xlu0 %v446_v62, %s3001_s25 }
 0xed9   :  { %v449_v1 = vpop.permute.xlu0 %448 }
 0xeda   :  { %v451_v3 = vadd.f32 %v449_v1, %v441_v0 }
 0xedc   :  { %2864 = vtanh.f32 %v451_v3  ;;  %v516_v27 = vrot.slane %v451_v3, 7 }
 0xee6   :  { %v2865_v5 = vpop.eup %2864 }
 0xee7   :  { %454 = vrot.lane.b32.xlu1 %v2865_v5, %s2997_s15 }
 0xf59   :  { %v455_v7 = vpop.permute.xlu1 %454 }
 0xf5a   :  { %v457_v8 = vmul.f32 %v455_v7, %v437_v60 }
 0xf5c   :  { %v458_v9 = vpack.c.bf16 %v457_v8, %v457_v8 }
 0xf5e   :  { %v460_v10 = vshrl.u32 %v458_v9, 16 }
 0xf60   :  { %v462_v11 = vrot.slane %v460_v10, 2 }
 0xf62   :  { %463 = vrot.lane.b32.xlu0 %v462_v11, %s3001_s25 }
 0xfd4   :  { %v464_v12 = vpop.permute.xlu0 %463 }
 0xfd5   :  { %2630 = vmatmul.mubr.msk.bf16.vlgmr.msra.gmra.mrb[8].mxu1 %vm82_vm1, %v464_v12 }
 0xfd6   :  { %2642 = vmatpush3.bf16.msra.mxu1 %v3047_v16  ;;  %2645 = vmatprep.mubr.msk.bf16.mxu1 %vm2999_vm0, %v2998_v15 }
 0xfd7   :  { %2643 = vmatprep.subr.bf16.mxu1 %v2998_v15 }
 0xfda   :  { %2644 = vmatpush3.bf16.msra.mxu1 %v3058_v18 }
 0xfdb   :  { %2657 = vmatprep.subr.bf16.mxu1 %v2998_v15 }
0x10a8   :  { %v502_v13 = vpop.f32.mrb[8].mxu1 }
0x10a9   :  { %v509_v14 = vrot.slane %v502_v13, 2  ;;  %v2631_v17 = vpop.f32.mrb[9].mxu1 }
0x10aa   :  { %v505_v19 = vpop.f32.mrb[10].mxu1 }
0x10ab   :  { %v511_v20 = vadd.f32 %v509_v14, %v3033_v6  ;;  %v2632_v21 = vpop.f32.mrb[11].mxu1 }
0x10ad   :  { %2866 = vtanh.f32 %v511_v20 }
0x10b7   :  { %v2867_v22 = vpop.eup %2866 }
0x10b8   :  { %520 = vrot.lane.b32.xlu1 %v2867_v22, %s2997_s15  ;;  %v513_v23 = vmul.f32 0.5, %v2867_v22 }
0x10ba   :  { %v514_v24 = vadd.f32 0.5, %v513_v23 }
0x10bc   :  { %v518_v28 = vmul.f32 %v516_v27, %v514_v24 }
0x112a   :  { %v521_v25 = vpop.permute.xlu1 %520 }
0x112b   :  { %v523_v26 = vmul.f32 %v521_v25, %v514_v24 }
0x112d   :  { %525 = vrot.lane.b32.xlu0 %v523_v26, %s3001_s25 }
0x119f   :  { %v526_v29 = vpop.permute.xlu0 %525 }
0x11a0   :  { %v528_v30 = vadd.f32 %v526_v29, %v518_v28 }
0x11a2   :  { %2868 = vtanh.f32 %v528_v30  ;;  %v591_v48 = vrot.slane %v528_v30, 7 }
0x11ac   :  { %v2869_v31 = vpop.eup %2868 }
0x11ad   :  { %531 = vrot.lane.b32.xlu1 %v2869_v31, %s2997_s15 }
0x121f   :  { %v532_v32 = vpop.permute.xlu1 %531 }
0x1220   :  { %v534_v33 = vmul.f32 %v532_v32, %v514_v24 }
0x1222   :  { %v535_v34 = vpack.c.bf16 %v534_v33, %v534_v33 }
0x1224   :  { %v537_v35 = vrot.slane %v535_v34, 3 }
0x1226   :  { %538 = vrot.lane.b32.xlu0 %v537_v35, %s3001_s25 }
0x1298   :  { %v539_v36 = vpop.permute.xlu0 %538 }
0x1299   :  { %2638 = vmatmul.mubr.msk.bf16.vlgmr.msra.gmra.mrb[12].mxu0 %vm82_vm1, %v539_v36 }
0x129a   :  { %2650 = vmatpush3.bf16.msra.mxu0 %v3047_v16  ;;  %2653 = vmatprep.mubr.msk.bf16.mxu0 %vm2999_vm0, %v2998_v15 }
0x129b   :  { %2651 = vmatprep.subr.bf16.mxu0 %v2998_v15 }
0x129e   :  { %2652 = vmatpush3.bf16.msra.mxu0 %v3058_v18 }
0x129f   :  { %2665 = vmatprep.subr.bf16.mxu0 %v2998_v15 }
0x136c   :  { %v577_v37 = vpop.f32.mrb[12].mxu0 }
0x136d   :  { %v584_v38 = vrot.slane %v577_v37, 1  ;;  %v2639_v39 = vpop.f32.mrb[13].mxu0 }
0x136e   :  { %v580_v40 = vpop.f32.mrb[14].mxu0 }
0x136f   :  { %v586_v41 = vadd.f32 %v584_v38, %v3033_v6  ;;  %v2640_v42 = vpop.f32.mrb[15].mxu0  ;;  %v2456_v6 = vld [vmem:[%s3478_s0 + $0x7e8] sm:$0xff] }
0x1371   :  { %2870 = vtanh.f32 %v586_v41 }
0x137b   :  { %v2871_v43 = vpop.eup %2870 }
0x137c   :  { %595 = vrot.lane.b32.xlu1 %v2871_v43, %s2997_s15  ;;  %v588_v44 = vmul.f32 0.5, %v2871_v43 }
0x137e   :  { %v589_v45 = vadd.f32 0.5, %v588_v44 }
0x1380   :  { %v593_v49 = vmul.f32 %v591_v48, %v589_v45 }
0x13ee   :  { %v596_v46 = vpop.permute.xlu1 %595 }
0x13ef   :  { %v598_v47 = vmul.f32 %v596_v46, %v589_v45 }
0x13f1   :  { %600 = vrot.lane.b32.xlu0 %v598_v47, %s3001_s25 }
0x1463   :  { %v601_v50 = vpop.permute.xlu0 %600 }
0x1464   :  { %v603_v51 = vadd.f32 %v601_v50, %v593_v49 }
0x1466   :  { %2872 = vtanh.f32 %v603_v51 }
0x1470   :  { %v2873_v52 = vpop.eup %2872 }
0x1471   :  { %606 = vrot.lane.b32.xlu1 %v2873_v52, %s2997_s15 }
0x1475   :  { %29 = vperm.xlu1 %2841, %v2456_v6  }
0x14e3   :  { %v607_v53 = vpop.permute.xlu1 %606 }
0x14e4   :  { %v609_v54 = vmul.f32 %v607_v53, %v589_v45 }
0x14e6   :  { %v610_v55 = vpack.c.bf16 %v609_v54, %v609_v54 }
0x14e8   :  { %v612_v56 = vshrl.u32 %v610_v55, 16 }
0x14ea   :  { %v614_v57 = vrot.slane %v612_v56, 3 }
0x14ec   :  { %615 = vrot.lane.b32.xlu0 %v614_v57, %s3001_s25 }
0x14f4   :  { %v30_v59 = vpop.permute.xlu1 %29 }
0x14f5   :  { %v47_v60 = vmul.f32 %v3024_v2, %v30_v59  ;;  %v665_v2 = vrot.slane %v603_v51, 7 }
0x14f7   :  { %v3166_v61 = vadd.f32 %v3029_v4, %v47_v60 }
0x155e   :  { %v616_v58 = vpop.permute.xlu0 %615 }
0x155f   :  { %2646 = vmatmul.mubr.msk.bf16.vlgmr.msra.gmra.mrb[12].mxu1 %vm82_vm1, %v616_v58 }
0x1560   :  { %2658 = vmatpush3.bf16.msra.mxu1 %v3047_v16  ;;  %2661 = vmatprep.mubr.msk.bf16.mxu1 %vm2999_vm0, %v2998_v15 }
0x1561   :  { %2659 = vmatprep.subr.bf16.mxu1 %v2998_v15 }
0x1564   :  { %2660 = vmatpush3.bf16.msra.mxu1 %v3058_v18 }
0x1565   :  { %2673 = vmatprep.subr.bf16.mxu1 %v2998_v15 }
0x1632   :  { %v654_v62 = vpop.f32.mrb[12].mxu1 }
0x1633   :  { %v660_v63 = vadd.f32 %v654_v62, %v3166_v61  ;;  %v2647_v0 = vpop.f32.mrb[13].mxu1 }
0x1634   :  { %v657_v1 = vpop.f32.mrb[14].mxu1 }
0x1635   :  { %2874 = vtanh.f32 %v660_v63  ;;  %v2648_v3 = vpop.f32.mrb[15].mxu1 }
0x163f   :  { %v2875_v5 = vpop.eup %2874 }
0x1640   :  { %669 = vrot.lane.b32.xlu0 %v2875_v5, %s2997_s15  ;;  %v662_v7 = vmul.f32 0.5, %v2875_v5 }
0x1642   :  { %v663_v8 = vadd.f32 0.5, %v662_v7 }
0x1644   :  { %v667_v11 = vmul.f32 %v665_v2, %v663_v8 }
0x16b2   :  { %v670_v9 = vpop.permute.xlu0 %669 }
0x16b3   :  { %v672_v10 = vmul.f32 %v670_v9, %v663_v8 }
0x16b5   :  { %674 = vrot.lane.b32.xlu1 %v672_v10, %s3001_s25 }
0x1727   :  { %v675_v4 = vpop.permute.xlu1 %674 }
0x1728   :  { %v677_v12 = vadd.f32 %v675_v4, %v667_v11 }
0x172a   :  { %2876 = vtanh.f32 %v677_v12  ;;  %v739_v32 = vrot.slane %v677_v12, 7 }
0x1734   :  { %v2877_v13 = vpop.eup %2876 }
0x1735   :  { %680 = vrot.lane.b32.xlu0 %v2877_v13, %s2997_s15 }
0x17a7   :  { %v681_v14 = vpop.permute.xlu0 %680 }
0x17a8   :  { %v683_v17 = vmul.f32 %v681_v14, %v663_v8 }
0x17aa   :  { %v684_v19 = vpack.c.bf16 %v683_v17, %v683_v17 }
0x17ac   :  { %686 = vrot.lane.b32.xlu1 %v684_v19, %s3001_s25 }
0x181e   :  { %v687_v20 = vpop.permute.xlu1 %686 }
0x181f   :  { %2654 = vmatmul.mubr.msk.bf16.vlgmr.msra.gmra.mrb[16].mxu0 %vm82_vm1, %v687_v20 }
0x1820   :  { %2666 = vmatpush3.bf16.msra.mxu0 %v3047_v16  ;;  %2669 = vmatprep.mubr.msk.bf16.mxu0 %vm2999_vm0, %v2998_v15 }
0x1821   :  { %2667 = vmatprep.subr.bf16.mxu0 %v2998_v15 }
0x1824   :  { %2668 = vmatpush3.bf16.msra.mxu0 %v3058_v18 }
0x1825   :  { %2681 = vmatprep.subr.bf16.mxu0 %v2998_v15 }
0x18f2   :  { %v725_v21 = vpop.f32.mrb[16].mxu0 }
0x18f3   :  { %v732_v22 = vrot.slane %v725_v21, 7  ;;  %v2655_v23 = vpop.f32.mrb[17].mxu0 }
0x18f4   :  { %v728_v24 = vpop.f32.mrb[18].mxu0 }
0x18f5   :  { %v734_v25 = vadd.f32 %v732_v22, %v3166_v61  ;;  %v2656_v26 = vpop.f32.mrb[19].mxu0 }
0x18f7   :  { %2878 = vtanh.f32 %v734_v25 }
0x1901   :  { %v2879_v27 = vpop.eup %2878 }
0x1902   :  { %743 = vrot.lane.b32.xlu0 %v2879_v27, %s2997_s15  ;;  %v736_v28 = vmul.f32 0.5, %v2879_v27 }
0x1904   :  { %v737_v29 = vadd.f32 0.5, %v736_v28 }
0x1906   :  { %v741_v33 = vmul.f32 %v739_v32, %v737_v29 }
0x1974   :  { %v744_v30 = vpop.permute.xlu0 %743 }
0x1975   :  { %v746_v31 = vmul.f32 %v744_v30, %v737_v29 }
0x1977   :  { %748 = vrot.lane.b32.xlu1 %v746_v31, %s3001_s25 }
0x19e9   :  { %v749_v34 = vpop.permute.xlu1 %748 }
0x19ea   :  { %v751_v35 = vadd.f32 %v749_v34, %v741_v33 }
0x19ec   :  { %2880 = vtanh.f32 %v751_v35  ;;  %v815_v6 = vrot.slane %v751_v35, 7 }
0x19f6   :  { %v2881_v36 = vpop.eup %2880 }
0x19f7   :  { %754 = vrot.lane.b32.xlu0 %v2881_v36, %s2997_s15 }
0x1a69   :  { %v755_v37 = vpop.permute.xlu0 %754 }
0x1a6a   :  { %v757_v38 = vmul.f32 %v755_v37, %v737_v29 }
0x1a6c   :  { %v758_v39 = vpack.c.bf16 %v757_v38, %v757_v38 }
0x1a6e   :  { %v760_v40 = vshrl.u32 %v758_v39, 16 }
0x1a70   :  { %762 = vrot.lane.b32.xlu1 %v760_v40, %s3001_s25 }
0x1ae2   :  { %v763_v41 = vpop.permute.xlu1 %762 }
0x1ae3   :  { %2662 = vmatmul.mubr.msk.bf16.vlgmr.msra.gmra.mrb[16].mxu1 %vm82_vm1, %v763_v41 }
0x1ae4   :  { %2674 = vmatpush3.bf16.msra.mxu1 %v3047_v16  ;;  %2677 = vmatprep.mubr.msk.bf16.mxu1 %vm2999_vm0, %v2998_v15 }
0x1ae5   :  { %2675 = vmatprep.subr.bf16.mxu1 %v2998_v15 }
0x1ae8   :  { %2676 = vmatpush3.bf16.msra.mxu1 %v3058_v18 }
0x1ae9   :  { %2689 = vmatprep.subr.bf16.mxu1 %v2998_v15 }
0x1bb6   :  { %v801_v42 = vpop.f32.mrb[16].mxu1 }
0x1bb7   :  { %v808_v43 = vrot.slane %v801_v42, 6  ;;  %v2663_v44 = vpop.f32.mrb[17].mxu1 }
0x1bb8   :  { %v804_v45 = vpop.f32.mrb[18].mxu1 }
0x1bb9   :  { %v810_v46 = vadd.f32 %v808_v43, %v3166_v61  ;;  %v2664_v47 = vpop.f32.mrb[19].mxu1 }
0x1bbb   :  { %2882 = vtanh.f32 %v810_v46 }
0x1bc5   :  { %v2883_v48 = vpop.eup %2882 }
0x1bc6   :  { %819 = vrot.lane.b32.xlu0 %v2883_v48, %s2997_s15  ;;  %v812_v49 = vmul.f32 0.5, %v2883_v48 }
0x1bc8   :  { %v813_v50 = vadd.f32 0.5, %v812_v49 }
0x1bca   :  { %v817_v53 = vmul.f32 %v815_v6, %v813_v50 }
0x1c38   :  { %v820_v51 = vpop.permute.xlu0 %819 }
0x1c39   :  { %v822_v52 = vmul.f32 %v820_v51, %v813_v50 }
0x1c3b   :  { %824 = vrot.lane.b32.xlu1 %v822_v52, %s3001_s25 }
0x1cad   :  { %v825_v54 = vpop.permute.xlu1 %824 }
0x1cae   :  { %v827_v55 = vadd.f32 %v825_v54, %v817_v53 }
0x1cb0   :  { %2884 = vtanh.f32 %v827_v55  ;;  %v890_v4 = vrot.slane %v827_v55, 7 }
0x1cba   :  { %v2885_v56 = vpop.eup %2884 }
0x1cbb   :  { %830 = vrot.lane.b32.xlu0 %v2885_v56, %s2997_s15 }
0x1d2d   :  { %v831_v57 = vpop.permute.xlu0 %830 }
0x1d2e   :  { %v833_v58 = vmul.f32 %v831_v57, %v813_v50 }
0x1d30   :  { %v834_v59 = vpack.c.bf16 %v833_v58, %v833_v58 }
0x1d32   :  { %v836_v60 = vrot.slane %v834_v59, 1 }
0x1d34   :  { %837 = vrot.lane.b32.xlu1 %v836_v60, %s3001_s25 }
0x1da6   :  { %v838_v62 = vpop.permute.xlu1 %837 }
0x1da7   :  { %2670 = vmatmul.mubr.msk.bf16.vlgmr.msra.gmra.mrb[20].mxu0 %vm82_vm1, %v838_v62 }
0x1da8   :  { %2682 = vmatpush3.bf16.msra.mxu0 %v3047_v16  ;;  %2685 = vmatprep.mubr.msk.bf16.mxu0 %vm2999_vm0, %v2998_v15 }
0x1da9   :  { %2683 = vmatprep.subr.bf16.mxu0 %v2998_v15 }
0x1dac   :  { %2684 = vmatpush3.bf16.msra.mxu0 %v3058_v18 }
0x1dad   :  { %2697 = vmatprep.subr.bf16.mxu0 %v2998_v15 }
0x1e7a   :  { %v876_v63 = vpop.f32.mrb[20].mxu0 }
0x1e7b   :  { %v883_v0 = vrot.slane %v876_v63, 5  ;;  %v2671_v1 = vpop.f32.mrb[21].mxu0 }
0x1e7c   :  { %v879_v3 = vpop.f32.mrb[22].mxu0 }
0x1e7d   :  { %v885_v5 = vadd.f32 %v883_v0, %v3166_v61  ;;  %v2672_v7 = vpop.f32.mrb[23].mxu0 }
0x1e7f   :  { %2886 = vtanh.f32 %v885_v5 }
0x1e89   :  { %v2887_v8 = vpop.eup %2886 }
0x1e8a   :  { %894 = vrot.lane.b32.xlu0 %v2887_v8, %s2997_s15  ;;  %v887_v9 = vmul.f32 0.5, %v2887_v8 }
0x1e8c   :  { %v888_v10 = vadd.f32 0.5, %v887_v9 }
0x1e8e   :  { %v892_v12 = vmul.f32 %v890_v4, %v888_v10 }
0x1efc   :  { %v895_v2 = vpop.permute.xlu0 %894 }
0x1efd   :  { %v897_v11 = vmul.f32 %v895_v2, %v888_v10 }
0x1eff   :  { %899 = vrot.lane.b32.xlu1 %v897_v11, %s3001_s25 }
0x1f71   :  { %v900_v13 = vpop.permute.xlu1 %899 }
0x1f72   :  { %v902_v14 = vadd.f32 %v900_v13, %v892_v12 }
0x1f74   :  { %2888 = vtanh.f32 %v902_v14  ;;  %v967_v36 = vrot.slane %v902_v14, 7 }
0x1f7e   :  { %v2889_v17 = vpop.eup %2888 }
0x1f7f   :  { %905 = vrot.lane.b32.xlu0 %v2889_v17, %s2997_s15 }
0x1ff1   :  { %v906_v19 = vpop.permute.xlu0 %905 }
0x1ff2   :  { %v908_v20 = vmul.f32 %v906_v19, %v888_v10 }
0x1ff4   :  { %v909_v21 = vpack.c.bf16 %v908_v20, %v908_v20 }
0x1ff6   :  { %v911_v22 = vshrl.u32 %v909_v21, 16 }
0x1ff8   :  { %v913_v23 = vrot.slane %v911_v22, 1 }
0x1ffa   :  { %914 = vrot.lane.b32.xlu1 %v913_v23, %s3001_s25 }
0x206c   :  { %v915_v24 = vpop.permute.xlu1 %914 }
0x206d   :  { %2678 = vmatmul.mubr.msk.bf16.vlgmr.msra.gmra.mrb[20].mxu1 %vm82_vm1, %v915_v24 }
0x206e   :  { %2690 = vmatpush3.bf16.msra.mxu1 %v3047_v16  ;;  %2693 = vmatprep.mubr.msk.bf16.mxu1 %vm2999_vm0, %v2998_v15 }
0x206f   :  { %2691 = vmatprep.subr.bf16.mxu1 %v2998_v15 }
0x2072   :  { %2692 = vmatpush3.bf16.msra.mxu1 %v3058_v18 }
0x2073   :  { %2705 = vmatprep.subr.bf16.mxu1 %v2998_v15 }
0x2140   :  { %v953_v25 = vpop.f32.mrb[20].mxu1 }
0x2141   :  { %v960_v26 = vrot.slane %v953_v25, 4  ;;  %v2679_v27 = vpop.f32.mrb[21].mxu1 }
0x2142   :  { %v956_v28 = vpop.f32.mrb[22].mxu1 }
0x2143   :  { %v962_v29 = vadd.f32 %v960_v26, %v3166_v61  ;;  %v2680_v30 = vpop.f32.mrb[23].mxu1 }
0x2145   :  { %2890 = vtanh.f32 %v962_v29 }
0x214f   :  { %v2891_v31 = vpop.eup %2890 }
0x2150   :  { %971 = vrot.lane.b32.xlu0 %v2891_v31, %s2997_s15  ;;  %v964_v32 = vmul.f32 0.5, %v2891_v31 }
0x2152   :  { %v965_v33 = vadd.f32 0.5, %v964_v32 }
0x2154   :  { %v969_v37 = vmul.f32 %v967_v36, %v965_v33 }
0x21c2   :  { %v972_v34 = vpop.permute.xlu0 %971 }
0x21c3   :  { %v974_v35 = vmul.f32 %v972_v34, %v965_v33 }
0x21c5   :  { %976 = vrot.lane.b32.xlu1 %v974_v35, %s3001_s25 }
0x2237   :  { %v977_v38 = vpop.permute.xlu1 %976 }
0x2238   :  { %v979_v39 = vadd.f32 %v977_v38, %v969_v37 }
0x223a   :  { %2892 = vtanh.f32 %v979_v39  ;;  %v1042_v56 = vrot.slane %v979_v39, 7 }
0x2244   :  { %v2893_v40 = vpop.eup %2892 }
0x2245   :  { %982 = vrot.lane.b32.xlu0 %v2893_v40, %s2997_s15 }
0x22b7   :  { %v983_v41 = vpop.permute.xlu0 %982 }
0x22b8   :  { %v985_v42 = vmul.f32 %v983_v41, %v965_v33 }
0x22ba   :  { %v986_v43 = vpack.c.bf16 %v985_v42, %v985_v42 }
0x22bc   :  { %v988_v44 = vrot.slane %v986_v43, 2 }
0x22be   :  { %989 = vrot.lane.b32.xlu1 %v988_v44, %s3001_s25 }
0x2330   :  { %v990_v45 = vpop.permute.xlu1 %989 }
0x2331   :  { %2686 = vmatmul.mubr.msk.bf16.vlgmr.msra.gmra.mrb[24].mxu0 %vm82_vm1, %v990_v45 }
0x2332   :  { %2698 = vmatpush3.bf16.msra.mxu0 %v3047_v16  ;;  %2701 = vmatprep.mubr.msk.bf16.mxu0 %vm2999_vm0, %v2998_v15 }
0x2333   :  { %2699 = vmatprep.subr.bf16.mxu0 %v2998_v15 }
0x2336   :  { %2700 = vmatpush3.bf16.msra.mxu0 %v3058_v18 }
0x2337   :  { %2713 = vmatprep.subr.bf16.mxu0 %v2998_v15 }
0x2404   :  { %v1028_v46 = vpop.f32.mrb[24].mxu0 }
0x2405   :  { %v1035_v47 = vrot.slane %v1028_v46, 3  ;;  %v2687_v48 = vpop.f32.mrb[25].mxu0 }
0x2406   :  { %v1031_v49 = vpop.f32.mrb[26].mxu0 }
0x2407   :  { %v1037_v50 = vadd.f32 %v1035_v47, %v3166_v61  ;;  %v2688_v51 = vpop.f32.mrb[27].mxu0 }
0x2409   :  { %2894 = vtanh.f32 %v1037_v50 }
0x2413   :  { %v2895_v52 = vpop.eup %2894 }
0x2414   :  { %1046 = vrot.lane.b32.xlu0 %v2895_v52, %s2997_s15  ;;  %v1039_v6 = vmul.f32 0.5, %v2895_v52  ;;  %v3270_v52 = vld [vmem:[%s3479_s1 + $0x20] ss:$0 sm:$0xff] }
0x2416   :  { %v1040_v53 = vadd.f32 0.5, %v1039_v6 }
0x2418   :  { %v1044_v57 = vmul.f32 %v1042_v56, %v1040_v53 }
0x2486   :  { %v1047_v54 = vpop.permute.xlu0 %1046 }
0x2487   :  { %v1049_v55 = vmul.f32 %v1047_v54, %v1040_v53 }
0x2489   :  { %1051 = vrot.lane.b32.xlu1 %v1049_v55, %s3001_s25 }
0x24fb   :  { %v1052_v58 = vpop.permute.xlu1 %1051 }
0x24fc   :  { %v1054_v59 = vadd.f32 %v1052_v58, %v1044_v57 }
0x24fe   :  { %2896 = vtanh.f32 %v1054_v59  ;;  %v1119_v19 = vrot.slane %v1054_v59, 7 }
0x2508   :  { %v2897_v60 = vpop.eup %2896 }
0x2509   :  { %1057 = vrot.lane.b32.xlu0 %v2897_v60, %s2997_s15 }
0x257b   :  { %v1058_v62 = vpop.permute.xlu0 %1057 }
0x257c   :  { %v1060_v63 = vmul.f32 %v1058_v62, %v1040_v53  ;;  %v3276_v53 = vld [vmem:[%s3479_s1 + $0x21] ss:$0 sm:$0xff] }
0x257e   :  { %v1061_v0 = vpack.c.bf16 %v1060_v63, %v1060_v63 }
0x2580   :  { %v1063_v1 = vshrl.u32 %v1061_v0, 16 }
0x2582   :  { %v1065_v3 = vrot.slane %v1063_v1, 2 }
0x2584   :  { %1066 = vrot.lane.b32.xlu1 %v1065_v3, %s3001_s25 }
0x25f6   :  { %v1067_v5 = vpop.permute.xlu1 %1066 }
0x25f7   :  { %2694 = vmatmul.mubr.msk.bf16.vlgmr.msra.gmra.mrb[24].mxu1 %vm82_vm1, %v1067_v5 }
0x25f8   :  { %2706 = vmatpush3.bf16.msra.mxu1 %v3047_v16  ;;  %2709 = vmatprep.mubr.msk.bf16.mxu1 %vm2999_vm0, %v2998_v15 }
0x25f9   :  { %2707 = vmatprep.subr.bf16.mxu1 %v2998_v15 }
0x25fc   :  { %2708 = vmatpush3.bf16.msra.mxu1 %v3058_v18 }
0x25fd   :  { %2721 = vmatprep.subr.bf16.mxu1 %v2998_v15 }
0x26ca   :  { %v1105_v7 = vpop.f32.mrb[24].mxu1 }
0x26cb   :  { %v1112_v8 = vrot.slane %v1105_v7, 2  ;;  %v2695_v9 = vpop.f32.mrb[25].mxu1 }
0x26cc   :  { %v1108_v10 = vpop.f32.mrb[26].mxu1 }
0x26cd   :  { %v1114_v2 = vadd.f32 %v1112_v8, %v3166_v61  ;;  %v2696_v11 = vpop.f32.mrb[27].mxu1 }
0x26cf   :  { %2898 = vtanh.f32 %v1114_v2 }
0x26d9   :  { %v2899_v4 = vpop.eup %2898 }
0x26da   :  { %1123 = vrot.lane.b32.xlu0 %v2899_v4, %s2997_s15  ;;  %v1116_v12 = vmul.f32 0.5, %v2899_v4 }
0x26dc   :  { %v1117_v13 = vadd.f32 0.5, %v1116_v12 }
0x26de   :  { %v1121_v20 = vmul.f32 %v1119_v19, %v1117_v13 }
0x274c   :  { %v1124_v14 = vpop.permute.xlu0 %1123 }
0x274d   :  { %v1126_v17 = vmul.f32 %v1124_v14, %v1117_v13 }
0x274f   :  { %1128 = vrot.lane.b32.xlu1 %v1126_v17, %s3001_s25 }
0x27c1   :  { %v1129_v21 = vpop.permute.xlu1 %1128 }
0x27c2   :  { %v1131_v22 = vadd.f32 %v1129_v21, %v1121_v20 }
0x27c4   :  { %2900 = vtanh.f32 %v1131_v22  ;;  %v1194_v40 = vrot.slane %v1131_v22, 7 }
0x27ce   :  { %v2901_v23 = vpop.eup %2900 }
0x27cf   :  { %1134 = vrot.lane.b32.xlu0 %v2901_v23, %s2997_s15 }
0x2841   :  { %v1135_v24 = vpop.permute.xlu0 %1134 }
0x2842   :  { %v1137_v25 = vmul.f32 %v1135_v24, %v1117_v13 }
0x2844   :  { %v1138_v26 = vpack.c.bf16 %v1137_v25, %v1137_v25 }
0x2846   :  { %v1140_v27 = vrot.slane %v1138_v26, 3 }
0x2848   :  { %1141 = vrot.lane.b32.xlu1 %v1140_v27, %s3001_s25 }
0x28ba   :  { %v1142_v28 = vpop.permute.xlu1 %1141 }
0x28bb   :  { %2702 = vmatmul.mubr.msk.bf16.vlgmr.msra.gmra.mrb[28].mxu0 %vm82_vm1, %v1142_v28 }
0x28bc   :  { %2714 = vmatpush3.bf16.msra.mxu0 %v3047_v16  ;;  %2717 = vmatprep.mubr.msk.bf16.mxu0 %vm2999_vm0, %v2998_v15 }
0x28bd   :  { %2715 = vmatprep.subr.bf16.mxu0 %v2998_v15 }
0x28c0   :  { %2716 = vmatpush3.bf16.msra.mxu0 %v3058_v18 }
0x28c1   :  { %2729 = vmatprep.subr.bf16.mxu0 %v2998_v15 }
0x298e   :  { %v1180_v29 = vpop.f32.mrb[28].mxu0 }
0x298f   :  { %v1187_v30 = vrot.slane %v1180_v29, 1  ;;  %v2703_v31 = vpop.f32.mrb[29].mxu0 }
0x2990   :  { %v1183_v32 = vpop.f32.mrb[30].mxu0 }
0x2991   :  { %v1189_v33 = vadd.f32 %v1187_v30, %v3166_v61  ;;  %v2704_v34 = vpop.f32.mrb[31].mxu0  ;;  %v2457_v61 = vld [vmem:[%s3478_s0 + $0x7f0] sm:$0xff] }
0x2993   :  { %2902 = vtanh.f32 %v1189_v33 }
0x299d   :  { %v2903_v35 = vpop.eup %2902 }
0x299e   :  { %1198 = vrot.lane.b32.xlu0 %v2903_v35, %s2997_s15  ;;  %v1191_v36 = vmul.f32 0.5, %v2903_v35 }
0x29a0   :  { %v1192_v37 = vadd.f32 0.5, %v1191_v36 }
0x29a2   :  { %v1196_v41 = vmul.f32 %v1194_v40, %v1192_v37 }
0x2a10   :  { %v1199_v38 = vpop.permute.xlu0 %1198 }
0x2a11   :  { %v1201_v39 = vmul.f32 %v1199_v38, %v1192_v37 }
0x2a13   :  { %1203 = vrot.lane.b32.xlu1 %v1201_v39, %s3001_s25 }
0x2a85   :  { %v1204_v42 = vpop.permute.xlu1 %1203 }
0x2a86   :  { %v1206_v43 = vadd.f32 %v1204_v42, %v1196_v41 }
0x2a88   :  { %2904 = vtanh.f32 %v1206_v43  ;;  %v1268_v3 = vrot.slane %v1206_v43, 7 }
0x2a92   :  { %v2905_v44 = vpop.eup %2904 }
0x2a93   :  { %1209 = vrot.lane.b32.xlu0 %v2905_v44, %s2997_s15 }
0x2a97   :  { %34 = vperm.xlu0 %2840, %v2457_v61  }
0x2b05   :  { %v1210_v45 = vpop.permute.xlu0 %1209 }
0x2b06   :  { %v1212_v46 = vmul.f32 %v1210_v45, %v1192_v37 }
0x2b08   :  { %v1213_v47 = vpack.c.bf16 %v1212_v46, %v1212_v46 }
0x2b0a   :  { %v1215_v48 = vshrl.u32 %v1213_v47, 16 }
0x2b0c   :  { %v1217_v49 = vrot.slane %v1215_v48, 3 }
0x2b0e   :  { %1218 = vrot.lane.b32.xlu1 %v1217_v49, %s3001_s25 }
0x2b16   :  { %v35_v51 = vpop.permute.xlu0 %34 }
0x2b17   :  { %v48_v6 = vmul.f32 %v3270_v52, %v35_v51 }
0x2b19   :  { %v3279_v54 = vadd.f32 %v3276_v53, %v48_v6 }
0x2b80   :  { %v1219_v50 = vpop.permute.xlu1 %1218 }
0x2b81   :  { %2710 = vmatmul.mubr.msk.bf16.vlgmr.msra.gmra.mrb[28].mxu1 %vm82_vm1, %v1219_v50 }
0x2b82   :  { %2722 = vmatpush3.bf16.msra.mxu1 %v3047_v16  ;;  %2725 = vmatprep.mubr.msk.bf16.mxu1 %vm2999_vm0, %v2998_v15 }
0x2b83   :  { %2723 = vmatprep.subr.bf16.mxu1 %v2998_v15 }
0x2b86   :  { %2724 = vmatpush3.bf16.msra.mxu1 %v3058_v18 }
0x2b87   :  { %2737 = vmatprep.subr.bf16.mxu1 %v2998_v15 }
0x2c54   :  { %v1257_v55 = vpop.f32.mrb[28].mxu1 }
0x2c55   :  { %v1263_v56 = vadd.f32 %v1257_v55, %v3279_v54  ;;  %v2711_v57 = vpop.f32.mrb[29].mxu1 }
0x2c56   :  { %v1260_v58 = vpop.f32.mrb[30].mxu1 }
0x2c57   :  { %2906 = vtanh.f32 %v1263_v56  ;;  %v2712_v59 = vpop.f32.mrb[31].mxu1 }
0x2c61   :  { %v2907_v60 = vpop.eup %2906 }
0x2c62   :  { %1272 = vrot.lane.b32.xlu1 %v2907_v60, %s2997_s15  ;;  %v1265_v62 = vmul.f32 0.5, %v2907_v60 }
0x2c64   :  { %v1266_v63 = vadd.f32 0.5, %v1265_v62 }
0x2c66   :  { %v1270_v5 = vmul.f32 %v1268_v3, %v1266_v63 }
0x2cd4   :  { %v1273_v0 = vpop.permute.xlu1 %1272 }
0x2cd5   :  { %v1275_v1 = vmul.f32 %v1273_v0, %v1266_v63 }
0x2cd7   :  { %1277 = vrot.lane.b32.xlu0 %v1275_v1, %s3001_s25 }
0x2d49   :  { %v1278_v7 = vpop.permute.xlu0 %1277 }
0x2d4a   :  { %v1280_v8 = vadd.f32 %v1278_v7, %v1270_v5 }
0x2d4c   :  { %2908 = vtanh.f32 %v1280_v8  ;;  %v1342_v26 = vrot.slane %v1280_v8, 7 }
0x2d56   :  { %v2909_v9 = vpop.eup %2908 }
0x2d57   :  { %1283 = vrot.lane.b32.xlu1 %v2909_v9, %s2997_s15 }
0x2dc9   :  { %v1284_v10 = vpop.permute.xlu1 %1283 }
0x2dca   :  { %v1286_v2 = vmul.f32 %v1284_v10, %v1266_v63 }
0x2dcc   :  { %v1287_v11 = vpack.c.bf16 %v1286_v2, %v1286_v2 }
0x2dce   :  { %1289 = vrot.lane.b32.xlu0 %v1287_v11, %s3001_s25 }
0x2e40   :  { %v1290_v4 = vpop.permute.xlu0 %1289 }
0x2e41   :  { %2718 = vmatmul.mubr.msk.bf16.vlgmr.msra.gmra.mrb[32].mxu0 %vm82_vm1, %v1290_v4 }
0x2e42   :  { %2730 = vmatpush3.bf16.msra.mxu0 %v3047_v16  ;;  %2733 = vmatprep.mubr.msk.bf16.mxu0 %vm2999_vm0, %v2998_v15 }
0x2e43   :  { %2731 = vmatprep.subr.bf16.mxu0 %v2998_v15 }
0x2e46   :  { %2732 = vmatpush3.bf16.msra.mxu0 %v3058_v18 }
0x2e47   :  { %2745 = vmatprep.subr.bf16.mxu0 %v2998_v15 }
0x2f14   :  { %v1328_v12 = vpop.f32.mrb[32].mxu0 }
0x2f15   :  { %v1335_v13 = vrot.slane %v1328_v12, 7  ;;  %v2719_v14 = vpop.f32.mrb[33].mxu0 }
0x2f16   :  { %v1331_v17 = vpop.f32.mrb[34].mxu0 }
0x2f17   :  { %v1337_v19 = vadd.f32 %v1335_v13, %v3279_v54  ;;  %v2720_v20 = vpop.f32.mrb[35].mxu0 }
0x2f19   :  { %2910 = vtanh.f32 %v1337_v19 }
0x2f23   :  { %v2911_v21 = vpop.eup %2910 }
0x2f24   :  { %1346 = vrot.lane.b32.xlu1 %v2911_v21, %s2997_s15  ;;  %v1339_v22 = vmul.f32 0.5, %v2911_v21 }
0x2f26   :  { %v1340_v23 = vadd.f32 0.5, %v1339_v22 }
0x2f28   :  { %v1344_v27 = vmul.f32 %v1342_v26, %v1340_v23 }
0x2f96   :  { %v1347_v24 = vpop.permute.xlu1 %1346 }
0x2f97   :  { %v1349_v25 = vmul.f32 %v1347_v24, %v1340_v23 }
0x2f99   :  { %1351 = vrot.lane.b32.xlu0 %v1349_v25, %s3001_s25 }
0x300b   :  { %v1352_v28 = vpop.permute.xlu0 %1351 }
0x300c   :  { %v1354_v29 = vadd.f32 %v1352_v28, %v1344_v27 }
0x300e   :  { %2912 = vtanh.f32 %v1354_v29  ;;  %v1418_v46 = vrot.slane %v1354_v29, 7 }
0x3018   :  { %v2913_v30 = vpop.eup %2912 }
0x3019   :  { %1357 = vrot.lane.b32.xlu1 %v2913_v30, %s2997_s15 }
0x308b   :  { %v1358_v31 = vpop.permute.xlu1 %1357 }
0x308c   :  { %v1360_v32 = vmul.f32 %v1358_v31, %v1340_v23 }
0x308e   :  { %v1361_v33 = vpack.c.bf16 %v1360_v32, %v1360_v32 }
0x3090   :  { %v1363_v34 = vshrl.u32 %v1361_v33, 16 }
0x3092   :  { %1365 = vrot.lane.b32.xlu0 %v1363_v34, %s3001_s25 }
0x3104   :  { %v1366_v35 = vpop.permute.xlu0 %1365 }
0x3105   :  { %2726 = vmatmul.mubr.msk.bf16.vlgmr.msra.gmra.mrb[32].mxu1 %vm82_vm1, %v1366_v35 }
0x3106   :  { %2738 = vmatpush3.bf16.msra.mxu1 %v3047_v16  ;;  %2741 = vmatprep.mubr.msk.bf16.mxu1 %vm2999_vm0, %v2998_v15 }
0x3107   :  { %2739 = vmatprep.subr.bf16.mxu1 %v2998_v15 }
0x310a   :  { %2740 = vmatpush3.bf16.msra.mxu1 %v3058_v18 }
0x310b   :  { %2753 = vmatprep.subr.bf16.mxu1 %v2998_v15 }
0x31d8   :  { %v1404_v36 = vpop.f32.mrb[32].mxu1 }
0x31d9   :  { %v1411_v37 = vrot.slane %v1404_v36, 6  ;;  %v2727_v38 = vpop.f32.mrb[33].mxu1 }
0x31da   :  { %v1407_v39 = vpop.f32.mrb[34].mxu1 }
0x31db   :  { %v1413_v40 = vadd.f32 %v1411_v37, %v3279_v54  ;;  %v2728_v41 = vpop.f32.mrb[35].mxu1 }
0x31dd   :  { %2914 = vtanh.f32 %v1413_v40 }
0x31e7   :  { %v2915_v42 = vpop.eup %2914 }
0x31e8   :  { %1422 = vrot.lane.b32.xlu1 %v2915_v42, %s2997_s15  ;;  %v1415_v43 = vmul.f32 0.5, %v2915_v42 }
0x31ea   :  { %v1416_v44 = vadd.f32 0.5, %v1415_v43 }
0x31ec   :  { %v1420_v47 = vmul.f32 %v1418_v46, %v1416_v44 }
0x325a   :  { %v1423_v61 = vpop.permute.xlu1 %1422 }
0x325b   :  { %v1425_v45 = vmul.f32 %v1423_v61, %v1416_v44 }
0x325d   :  { %1427 = vrot.lane.b32.xlu0 %v1425_v45, %s3001_s25 }
0x32cf   :  { %v1428_v48 = vpop.permute.xlu0 %1427 }
0x32d0   :  { %v1430_v49 = vadd.f32 %v1428_v48, %v1420_v47 }
0x32d2   :  { %2916 = vtanh.f32 %v1430_v49  ;;  %v1493_v9 = vrot.slane %v1430_v49, 7 }
0x32dc   :  { %v2917_v50 = vpop.eup %2916 }
0x32dd   :  { %1433 = vrot.lane.b32.xlu1 %v2917_v50, %s2997_s15 }
0x334f   :  { %v1434_v51 = vpop.permute.xlu1 %1433 }
0x3350   :  { %v1436_v6 = vmul.f32 %v1434_v51, %v1416_v44 }
0x3352   :  { %v1437_v55 = vpack.c.bf16 %v1436_v6, %v1436_v6 }
0x3354   :  { %v1439_v56 = vrot.slane %v1437_v55, 1 }
0x3356   :  { %1440 = vrot.lane.b32.xlu0 %v1439_v56, %s3001_s25 }
0x33c8   :  { %v1441_v57 = vpop.permute.xlu0 %1440 }
0x33c9   :  { %2734 = vmatmul.mubr.msk.bf16.vlgmr.msra.gmra.mrb[36].mxu0 %vm82_vm1, %v1441_v57 }
0x33ca   :  { %2746 = vmatpush3.bf16.msra.mxu0 %v3047_v16  ;;  %2749 = vmatprep.mubr.msk.bf16.mxu0 %vm2999_vm0, %v2998_v15 }
0x33cb   :  { %2747 = vmatprep.subr.bf16.mxu0 %v2998_v15 }
0x33ce   :  { %2748 = vmatpush3.bf16.msra.mxu0 %v3058_v18 }
0x33cf   :  { %2761 = vmatprep.subr.bf16.mxu0 %v2998_v15 }
0x349c   :  { %v1479_v58 = vpop.f32.mrb[36].mxu0 }
0x349d   :  { %v1486_v59 = vrot.slane %v1479_v58, 5  ;;  %v2735_v60 = vpop.f32.mrb[37].mxu0 }
0x349e   :  { %v1482_v62 = vpop.f32.mrb[38].mxu0 }
0x349f   :  { %v1488_v63 = vadd.f32 %v1486_v59, %v3279_v54  ;;  %v2736_v0 = vpop.f32.mrb[39].mxu0 }
0x34a1   :  { %2918 = vtanh.f32 %v1488_v63 }
0x34ab   :  { %v2919_v1 = vpop.eup %2918 }
0x34ac   :  { %1497 = vrot.lane.b32.xlu1 %v2919_v1, %s2997_s15  ;;  %v1490_v3 = vmul.f32 0.5, %v2919_v1 }
0x34ae   :  { %v1491_v5 = vadd.f32 0.5, %v1490_v3 }
0x34b0   :  { %v1495_v10 = vmul.f32 %v1493_v9, %v1491_v5 }
0x351e   :  { %v1498_v7 = vpop.permute.xlu1 %1497 }
0x351f   :  { %v1500_v8 = vmul.f32 %v1498_v7, %v1491_v5 }
0x3521   :  { %1502 = vrot.lane.b32.xlu0 %v1500_v8, %s3001_s25 }
0x3593   :  { %v1503_v2 = vpop.permute.xlu0 %1502 }
0x3594   :  { %v1505_v11 = vadd.f32 %v1503_v2, %v1495_v10 }
0x3596   :  { %2920 = vtanh.f32 %v1505_v11  ;;  %v1570_v32 = vrot.slane %v1505_v11, 7 }
0x35a0   :  { %v2921_v4 = vpop.eup %2920 }
0x35a1   :  { %1508 = vrot.lane.b32.xlu1 %v2921_v4, %s2997_s15 }
0x3613   :  { %v1509_v12 = vpop.permute.xlu1 %1508 }
0x3614   :  { %v1511_v13 = vmul.f32 %v1509_v12, %v1491_v5 }
0x3616   :  { %v1512_v14 = vpack.c.bf16 %v1511_v13, %v1511_v13 }
0x3618   :  { %v1514_v17 = vshrl.u32 %v1512_v14, 16 }
0x361a   :  { %v1516_v19 = vrot.slane %v1514_v17, 1 }
0x361c   :  { %1517 = vrot.lane.b32.xlu0 %v1516_v19, %s3001_s25 }
0x368e   :  { %v1518_v20 = vpop.permute.xlu0 %1517 }
0x368f   :  { %2742 = vmatmul.mubr.msk.bf16.vlgmr.msra.gmra.mrb[36].mxu1 %vm82_vm1, %v1518_v20 }
0x3690   :  { %2754 = vmatpush3.bf16.msra.mxu1 %v3047_v16  ;;  %2757 = vmatprep.mubr.msk.bf16.mxu1 %vm2999_vm0, %v2998_v15 }
0x3691   :  { %2755 = vmatprep.subr.bf16.mxu1 %v2998_v15 }
0x3694   :  { %2756 = vmatpush3.bf16.msra.mxu1 %v3058_v18 }
0x3695   :  { %2769 = vmatprep.subr.bf16.mxu1 %v2998_v15 }
0x3762   :  { %v1556_v21 = vpop.f32.mrb[36].mxu1 }
0x3763   :  { %v1563_v22 = vrot.slane %v1556_v21, 4  ;;  %v2743_v23 = vpop.f32.mrb[37].mxu1 }
0x3764   :  { %v1559_v24 = vpop.f32.mrb[38].mxu1 }
0x3765   :  { %v1565_v25 = vadd.f32 %v1563_v22, %v3279_v54  ;;  %v2744_v26 = vpop.f32.mrb[39].mxu1 }
0x3767   :  { %2922 = vtanh.f32 %v1565_v25 }
0x3771   :  { %v2923_v27 = vpop.eup %2922 }
0x3772   :  { %1574 = vrot.lane.b32.xlu1 %v2923_v27, %s2997_s15  ;;  %v1567_v28 = vmul.f32 0.5, %v2923_v27 }
0x3774   :  { %v1568_v29 = vadd.f32 0.5, %v1567_v28 }
0x3776   :  { %v1572_v33 = vmul.f32 %v1570_v32, %v1568_v29 }
0x37e4   :  { %v1575_v30 = vpop.permute.xlu1 %1574 }
0x37e5   :  { %v1577_v31 = vmul.f32 %v1575_v30, %v1568_v29 }
0x37e7   :  { %1579 = vrot.lane.b32.xlu0 %v1577_v31, %s3001_s25 }
0x3859   :  { %v1580_v34 = vpop.permute.xlu0 %1579 }
0x385a   :  { %v1582_v35 = vadd.f32 %v1580_v34, %v1572_v33 }
0x385c   :  { %2924 = vtanh.f32 %v1582_v35  ;;  %v1645_v6 = vrot.slane %v1582_v35, 7 }
0x3866   :  { %v2925_v36 = vpop.eup %2924 }
0x3867   :  { %1585 = vrot.lane.b32.xlu1 %v2925_v36, %s2997_s15 }
0x38d9   :  { %v1586_v37 = vpop.permute.xlu1 %1585 }
0x38da   :  { %v1588_v38 = vmul.f32 %v1586_v37, %v1568_v29 }
0x38dc   :  { %v1589_v39 = vpack.c.bf16 %v1588_v38, %v1588_v38 }
0x38de   :  { %v1591_v40 = vrot.slane %v1589_v39, 2 }
0x38e0   :  { %1592 = vrot.lane.b32.xlu0 %v1591_v40, %s3001_s25 }
0x3952   :  { %v1593_v41 = vpop.permute.xlu0 %1592 }
0x3953   :  { %2750 = vmatmul.mubr.msk.bf16.vlgmr.msra.gmra.mrb[40].mxu0 %vm82_vm1, %v1593_v41 }
0x3954   :  { %2762 = vmatpush3.bf16.msra.mxu0 %v3047_v16  ;;  %2765 = vmatprep.mubr.msk.bf16.mxu0 %vm2999_vm0, %v2998_v15 }
0x3955   :  { %2763 = vmatprep.subr.bf16.mxu0 %v2998_v15 }
0x3958   :  { %2764 = vmatpush3.bf16.msra.mxu0 %v3058_v18 }
0x3959   :  { %2777 = vmatprep.subr.bf16.mxu0 %v2998_v15 }
0x3a26   :  { %v1631_v42 = vpop.f32.mrb[40].mxu0 }
0x3a27   :  { %v1638_v43 = vrot.slane %v1631_v42, 3  ;;  %v2751_v44 = vpop.f32.mrb[41].mxu0 }
0x3a28   :  { %v1634_v61 = vpop.f32.mrb[42].mxu0 }
0x3a29   :  { %v1640_v45 = vadd.f32 %v1638_v43, %v3279_v54  ;;  %v2752_v46 = vpop.f32.mrb[43].mxu0 }
0x3a2b   :  { %2926 = vtanh.f32 %v1640_v45 }
0x3a35   :  { %v2927_v47 = vpop.eup %2926 }
0x3a36   :  { %1649 = vrot.lane.b32.xlu1 %v2927_v47, %s2997_s15  ;;  %v1642_v48 = vmul.f32 0.5, %v2927_v47 }
0x3a38   :  { %v1643_v49 = vadd.f32 0.5, %v1642_v48 }
0x3a3a   :  { %v1647_v55 = vmul.f32 %v1645_v6, %v1643_v49 }
0x3aa8   :  { %v1650_v50 = vpop.permute.xlu1 %1649 }
0x3aa9   :  { %v1652_v51 = vmul.f32 %v1650_v50, %v1643_v49 }
0x3aab   :  { %1654 = vrot.lane.b32.xlu0 %v1652_v51, %s3001_s25 }
0x3b1d   :  { %v1655_v56 = vpop.permute.xlu0 %1654 }
0x3b1e   :  { %v1657_v57 = vadd.f32 %v1655_v56, %v1647_v55 }
0x3b20   :  { %2928 = vtanh.f32 %v1657_v57  ;;  %v1722_v14 = vrot.slane %v1657_v57, 7 }
0x3b2a   :  { %v2929_v58 = vpop.eup %2928 }
0x3b2b   :  { %1660 = vrot.lane.b32.xlu1 %v2929_v58, %s2997_s15 }
0x3b9d   :  { %v1661_v59 = vpop.permute.xlu1 %1660 }
0x3b9e   :  { %v1663_v60 = vmul.f32 %v1661_v59, %v1643_v49 }
0x3ba0   :  { %v1664_v62 = vpack.c.bf16 %v1663_v60, %v1663_v60 }
0x3ba2   :  { %v1666_v63 = vshrl.u32 %v1664_v62, 16 }
0x3ba4   :  { %v1668_v0 = vrot.slane %v1666_v63, 2 }
0x3ba6   :  { %1669 = vrot.lane.b32.xlu0 %v1668_v0, %s3001_s25 }
0x3c18   :  { %v1670_v1 = vpop.permute.xlu0 %1669 }
0x3c19   :  { %2758 = vmatmul.mubr.msk.bf16.vlgmr.msra.gmra.mrb[40].mxu1 %vm82_vm1, %v1670_v1 }
0x3c1a   :  { %2770 = vmatpush3.bf16.msra.mxu1 %v3047_v16  ;;  %2773 = vmatprep.mubr.msk.bf16.mxu1 %vm2999_vm0, %v2998_v15 }
0x3c1b   :  { %2771 = vmatprep.subr.bf16.mxu1 %v2998_v15 }
0x3c1e   :  { %2772 = vmatpush3.bf16.msra.mxu1 %v3058_v18 }
0x3c1f   :  { %2785 = vmatprep.subr.bf16.mxu1 %v2998_v15 }
0x3cec   :  { %v1708_v3 = vpop.f32.mrb[40].mxu1 }
0x3ced   :  { %v1715_v5 = vrot.slane %v1708_v3, 2  ;;  %v2759_v7 = vpop.f32.mrb[41].mxu1 }
0x3cee   :  { %v1711_v8 = vpop.f32.mrb[42].mxu1 }
0x3cef   :  { %v1717_v9 = vadd.f32 %v1715_v5, %v3279_v54  ;;  %v2760_v10 = vpop.f32.mrb[43].mxu1 }
0x3cf1   :  { %2930 = vtanh.f32 %v1717_v9 }
0x3cfb   :  { %v2931_v2 = vpop.eup %2930 }
0x3cfc   :  { %1726 = vrot.lane.b32.xlu1 %v2931_v2, %s2997_s15  ;;  %v1719_v11 = vmul.f32 0.5, %v2931_v2 }
0x3cfe   :  { %v1720_v4 = vadd.f32 0.5, %v1719_v11 }
0x3d00   :  { %v1724_v17 = vmul.f32 %v1722_v14, %v1720_v4 }
0x3d6e   :  { %v1727_v12 = vpop.permute.xlu1 %1726 }
0x3d6f   :  { %v1729_v13 = vmul.f32 %v1727_v12, %v1720_v4 }
0x3d71   :  { %1731 = vrot.lane.b32.xlu0 %v1729_v13, %s3001_s25 }
0x3de3   :  { %v1732_v19 = vpop.permute.xlu0 %1731 }
0x3de4   :  { %v1734_v20 = vadd.f32 %v1732_v19, %v1724_v17 }
0x3de6   :  { %2932 = vtanh.f32 %v1734_v20  ;;  %v1797_v38 = vrot.slane %v1734_v20, 7 }
0x3df0   :  { %v2933_v21 = vpop.eup %2932 }
0x3df1   :  { %1737 = vrot.lane.b32.xlu1 %v2933_v21, %s2997_s15 }
0x3e63   :  { %v1738_v22 = vpop.permute.xlu1 %1737 }
0x3e64   :  { %v1740_v23 = vmul.f32 %v1738_v22, %v1720_v4 }
0x3e66   :  { %v1741_v24 = vpack.c.bf16 %v1740_v23, %v1740_v23 }
0x3e68   :  { %v1743_v25 = vrot.slane %v1741_v24, 3 }
0x3e6a   :  { %1744 = vrot.lane.b32.xlu0 %v1743_v25, %s3001_s25 }
0x3edc   :  { %v1745_v26 = vpop.permute.xlu0 %1744 }
0x3edd   :  { %2766 = vmatmul.mubr.msk.bf16.vlgmr.msra.gmra.mrb[44].mxu0 %vm82_vm1, %v1745_v26 }
0x3ede   :  { %2778 = vmatpush3.bf16.msra.mxu0 %v3047_v16  ;;  %2781 = vmatprep.mubr.msk.bf16.mxu0 %vm2999_vm0, %v2998_v15 }
0x3edf   :  { %2779 = vmatprep.subr.bf16.mxu0 %v2998_v15 }
0x3ee2   :  { %2780 = vmatpush3.bf16.msra.mxu0 %v3058_v18 }
0x3ee3   :  { %2793 = vmatprep.subr.bf16.mxu0 %v2998_v15 }
0x3fb0   :  { %v1783_v27 = vpop.f32.mrb[44].mxu0 }
0x3fb1   :  { %v1790_v28 = vrot.slane %v1783_v27, 1  ;;  %v2767_v29 = vpop.f32.mrb[45].mxu0 }
0x3fb2   :  { %v1786_v30 = vpop.f32.mrb[46].mxu0 }
0x3fb3   :  { %v1792_v31 = vadd.f32 %v1790_v28, %v3279_v54  ;;  %v2768_v32 = vpop.f32.mrb[47].mxu0  ;;  %v2458_v54 = vld [vmem:[%s3478_s0 + $0x7f8] sm:$0xff] }
0x3fb5   :  { %2934 = vtanh.f32 %v1792_v31 }
0x3fbf   :  { %v2935_v33 = vpop.eup %2934 }
0x3fc0   :  { %1801 = vrot.lane.b32.xlu1 %v2935_v33, %s2997_s15  ;;  %v1794_v34 = vmul.f32 0.5, %v2935_v33 }
0x3fc2   :  { %v1795_v35 = vadd.f32 0.5, %v1794_v34 }
0x3fc4   :  { %v1799_v39 = vmul.f32 %v1797_v38, %v1795_v35 }
0x4032   :  { %v1802_v36 = vpop.permute.xlu1 %1801 }
0x4033   :  { %v1804_v37 = vmul.f32 %v1802_v36, %v1795_v35 }
0x4035   :  { %1806 = vrot.lane.b32.xlu0 %v1804_v37, %s3001_s25 }
0x40a7   :  { %v1807_v40 = vpop.permute.xlu0 %1806 }
0x40a8   :  { %v1809_v41 = vadd.f32 %v1807_v40, %v1799_v39 }
0x40aa   :  { %2936 = vtanh.f32 %v1809_v41 }
0x40b4   :  { %v2937_v42 = vpop.eup %2936 }
0x40b5   :  { %1812 = vrot.lane.b32.xlu1 %v2937_v42, %s2997_s15 }
0x40b9   :  { %39 = vperm.xlu1 %2841, %v2458_v54  }
0x4127   :  { %v1813_v43 = vpop.permute.xlu1 %1812 }
0x4128   :  { %v1815_v44 = vmul.f32 %v1813_v43, %v1795_v35 }
0x412a   :  { %v1816_v61 = vpack.c.bf16 %v1815_v44, %v1815_v44 }
0x412c   :  { %v1818_v45 = vshrl.u32 %v1816_v61, 16 }
0x412e   :  { %v1820_v46 = vrot.slane %v1818_v45, 3 }
0x4130   :  { %1821 = vrot.lane.b32.xlu0 %v1820_v46, %s3001_s25 }
0x4138   :  { %v40_v48 = vpop.permute.xlu1 %39 }
0x4139   :  { %v49_v49 = vmul.f32 %v3270_v52, %v40_v48  ;;  %v1871_v52 = vrot.slane %v1809_v41, 7 }
0x413b   :  { %v3382_v50 = vadd.f32 %v3276_v53, %v49_v49 }
0x41a2   :  { %v1822_v47 = vpop.permute.xlu0 %1821 }
0x41a3   :  { %2774 = vmatmul.mubr.msk.bf16.vlgmr.msra.gmra.mrb[44].mxu1 %vm82_vm1, %v1822_v47 }
0x41a4   :  { %2786 = vmatpush3.bf16.msra.mxu1 %v3047_v16  ;;  %2789 = vmatprep.mubr.msk.bf16.mxu1 %vm2999_vm0, %v2998_v15 }
0x41a5   :  { %2787 = vmatprep.subr.bf16.mxu1 %v2998_v15 }
0x41a8   :  { %2788 = vmatpush3.bf16.msra.mxu1 %v3058_v18 }
0x41a9   :  { %2801 = vmatprep.subr.bf16.mxu1 %v2998_v15 }
0x4276   :  { %v1860_v51 = vpop.f32.mrb[44].mxu1 }
0x4277   :  { %v1866_v6 = vadd.f32 %v1860_v51, %v3382_v50  ;;  %v2775_v55 = vpop.f32.mrb[45].mxu1 }
0x4278   :  { %v1863_v56 = vpop.f32.mrb[46].mxu1 }
0x4279   :  { %2938 = vtanh.f32 %v1866_v6  ;;  %v2776_v57 = vpop.f32.mrb[47].mxu1 }
0x4283   :  { %v2939_v58 = vpop.eup %2938 }
0x4284   :  { %1875 = vrot.lane.b32.xlu0 %v2939_v58, %s2997_s15  ;;  %v1868_v59 = vmul.f32 0.5, %v2939_v58 }
0x4286   :  { %v1869_v60 = vadd.f32 0.5, %v1868_v59 }
0x4288   :  { %v1873_v0 = vmul.f32 %v1871_v52, %v1869_v60 }
0x42f6   :  { %v1876_v62 = vpop.permute.xlu0 %1875 }
0x42f7   :  { %v1878_v63 = vmul.f32 %v1876_v62, %v1869_v60 }
0x42f9   :  { %1880 = vrot.lane.b32.xlu1 %v1878_v63, %s3001_s25 }
0x436b   :  { %v1881_v53 = vpop.permute.xlu1 %1880 }
0x436c   :  { %v1883_v1 = vadd.f32 %v1881_v53, %v1873_v0 }
0x436e   :  { %2940 = vtanh.f32 %v1883_v1  ;;  %v1945_v22 = vrot.slane %v1883_v1, 7 }
0x4378   :  { %v2941_v3 = vpop.eup %2940 }
0x4379   :  { %1886 = vrot.lane.b32.xlu0 %v2941_v3, %s2997_s15 }
0x43eb   :  { %v1887_v5 = vpop.permute.xlu0 %1886 }
0x43ec   :  { %v1889_v7 = vmul.f32 %v1887_v5, %v1869_v60 }
0x43ee   :  { %v1890_v8 = vpack.c.bf16 %v1889_v7, %v1889_v7 }
0x43f0   :  { %1892 = vrot.lane.b32.xlu1 %v1890_v8, %s3001_s25 }
0x4462   :  { %v1893_v9 = vpop.permute.xlu1 %1892 }
0x4463   :  { %2782 = vmatmul.mubr.msk.bf16.vlgmr.msra.gmra.mrb[48].mxu0 %vm82_vm1, %v1893_v9 }
0x4464   :  { %2794 = vmatpush3.bf16.msra.mxu0 %v3047_v16  ;;  %2797 = vmatprep.mubr.msk.bf16.mxu0 %vm2999_vm0, %v2998_v15 }
0x4465   :  { %2795 = vmatprep.subr.bf16.mxu0 %v2998_v15 }
0x4468   :  { %2796 = vmatpush3.bf16.msra.mxu0 %v3058_v18 }
0x4469   :  { %2809 = vmatprep.subr.bf16.mxu0 %v2998_v15 }
0x4536   :  { %v1931_v10 = vpop.f32.mrb[48].mxu0 }
0x4537   :  { %v1938_v2 = vrot.slane %v1931_v10, 7  ;;  %v2783_v11 = vpop.f32.mrb[49].mxu0 }
0x4538   :  { %v1934_v4 = vpop.f32.mrb[50].mxu0 }
0x4539   :  { %v1940_v12 = vadd.f32 %v1938_v2, %v3382_v50  ;;  %v2784_v13 = vpop.f32.mrb[51].mxu0 }
0x453b   :  { %2942 = vtanh.f32 %v1940_v12 }
0x4545   :  { %v2943_v14 = vpop.eup %2942 }
0x4546   :  { %1949 = vrot.lane.b32.xlu0 %v2943_v14, %s2997_s15  ;;  %v1942_v17 = vmul.f32 0.5, %v2943_v14 }
0x4548   :  { %v1943_v19 = vadd.f32 0.5, %v1942_v17 }
0x454a   :  { %v1947_v23 = vmul.f32 %v1945_v22, %v1943_v19 }
0x45b8   :  { %v1950_v20 = vpop.permute.xlu0 %1949 }
0x45b9   :  { %v1952_v21 = vmul.f32 %v1950_v20, %v1943_v19 }
0x45bb   :  { %1954 = vrot.lane.b32.xlu1 %v1952_v21, %s3001_s25 }
0x462d   :  { %v1955_v24 = vpop.permute.xlu1 %1954 }
0x462e   :  { %v1957_v25 = vadd.f32 %v1955_v24, %v1947_v23 }
0x4630   :  { %2944 = vtanh.f32 %v1957_v25  ;;  %v2021_v54 = vrot.slane %v1957_v25, 7 }
0x463a   :  { %v2945_v26 = vpop.eup %2944 }
0x463b   :  { %1960 = vrot.lane.b32.xlu0 %v2945_v26, %s2997_s15 }
0x46ad   :  { %v1961_v27 = vpop.permute.xlu0 %1960 }
0x46ae   :  { %v1963_v28 = vmul.f32 %v1961_v27, %v1943_v19 }
0x46b0   :  { %v1964_v29 = vpack.c.bf16 %v1963_v28, %v1963_v28 }
0x46b2   :  { %v1966_v30 = vshrl.u32 %v1964_v29, 16 }
0x46b4   :  { %1968 = vrot.lane.b32.xlu1 %v1966_v30, %s3001_s25 }
0x4726   :  { %v1969_v31 = vpop.permute.xlu1 %1968 }
0x4727   :  { %2790 = vmatmul.mubr.msk.bf16.vlgmr.msra.gmra.mrb[48].mxu1 %vm82_vm1, %v1969_v31 }
0x4728   :  { %2802 = vmatpush3.bf16.msra.mxu1 %v3047_v16  ;;  %2805 = vmatprep.mubr.msk.bf16.mxu1 %vm2999_vm0, %v2998_v15 }
0x4729   :  { %2803 = vmatprep.subr.bf16.mxu1 %v2998_v15 }
0x472c   :  { %2804 = vmatpush3.bf16.msra.mxu1 %v3058_v18 }
0x472d   :  { %2817 = vmatprep.subr.bf16.mxu1 %v2998_v15 }
0x47fa   :  { %v2007_v32 = vpop.f32.mrb[48].mxu1 }
0x47fb   :  { %v2014_v33 = vrot.slane %v2007_v32, 6  ;;  %v2791_v34 = vpop.f32.mrb[49].mxu1 }
0x47fc   :  { %v2010_v35 = vpop.f32.mrb[50].mxu1 }
0x47fd   :  { %v2016_v36 = vadd.f32 %v2014_v33, %v3382_v50  ;;  %v2792_v37 = vpop.f32.mrb[51].mxu1 }
0x47ff   :  { %2946 = vtanh.f32 %v2016_v36 }
0x4809   :  { %v2947_v38 = vpop.eup %2946 }
0x480a   :  { %2025 = vrot.lane.b32.xlu0 %v2947_v38, %s2997_s15  ;;  %v2018_v39 = vmul.f32 0.5, %v2947_v38 }
0x480c   :  { %v2019_v40 = vadd.f32 0.5, %v2018_v39 }
0x480e   :  { %v2023_v43 = vmul.f32 %v2021_v54, %v2019_v40 }
0x487c   :  { %v2026_v41 = vpop.permute.xlu0 %2025 }
0x487d   :  { %v2028_v42 = vmul.f32 %v2026_v41, %v2019_v40 }
0x487f   :  { %2030 = vrot.lane.b32.xlu1 %v2028_v42, %s3001_s25 }
0x48f1   :  { %v2031_v44 = vpop.permute.xlu1 %2030 }
0x48f2   :  { %v2033_v61 = vadd.f32 %v2031_v44, %v2023_v43 }
0x48f4   :  { %2948 = vtanh.f32 %v2033_v61  ;;  %v2096_v53 = vrot.slane %v2033_v61, 7 }
0x48fe   :  { %v2949_v45 = vpop.eup %2948 }
0x48ff   :  { %2036 = vrot.lane.b32.xlu0 %v2949_v45, %s2997_s15 }
0x4971   :  { %v2037_v46 = vpop.permute.xlu0 %2036 }
0x4972   :  { %v2039_v47 = vmul.f32 %v2037_v46, %v2019_v40 }
0x4974   :  { %v2040_v48 = vpack.c.bf16 %v2039_v47, %v2039_v47 }
0x4976   :  { %v2042_v49 = vrot.slane %v2040_v48, 1 }
0x4978   :  { %2043 = vrot.lane.b32.xlu1 %v2042_v49, %s3001_s25 }
0x49ea   :  { %v2044_v51 = vpop.permute.xlu1 %2043 }
0x49eb   :  { %2798 = vmatmul.mubr.msk.bf16.vlgmr.msra.gmra.mrb[52].mxu0 %vm82_vm1, %v2044_v51 }
0x49ec   :  { %2810 = vmatpush3.bf16.msra.mxu0 %v3047_v16  ;;  %2813 = vmatprep.mubr.msk.bf16.mxu0 %vm2999_vm0, %v2998_v15 }
0x49ed   :  { %2811 = vmatprep.subr.bf16.mxu0 %v2998_v15 }
0x49f0   :  { %2812 = vmatpush3.bf16.msra.mxu0 %v3058_v18 }
0x49f1   :  { %2825 = vmatprep.subr.bf16.mxu0 %v2998_v15 }
0x4abe   :  { %v2082_v6 = vpop.f32.mrb[52].mxu0 }
0x4abf   :  { %v2089_v55 = vrot.slane %v2082_v6, 5  ;;  %v2799_v56 = vpop.f32.mrb[53].mxu0 }
0x4ac0   :  { %v2085_v57 = vpop.f32.mrb[54].mxu0 }
0x4ac1   :  { %v2091_v58 = vadd.f32 %v2089_v55, %v3382_v50  ;;  %v2800_v59 = vpop.f32.mrb[55].mxu0 }
0x4ac3   :  { %2950 = vtanh.f32 %v2091_v58 }
0x4acd   :  { %v2951_v60 = vpop.eup %2950 }
0x4ace   :  { %2100 = vrot.lane.b32.xlu0 %v2951_v60, %s2997_s15  ;;  %v2093_v62 = vmul.f32 0.5, %v2951_v60 }
0x4ad0   :  { %v2094_v63 = vadd.f32 0.5, %v2093_v62 }
0x4ad2   :  { %v2098_v1 = vmul.f32 %v2096_v53, %v2094_v63 }
0x4b40   :  { %v2101_v52 = vpop.permute.xlu0 %2100 }
0x4b41   :  { %v2103_v0 = vmul.f32 %v2101_v52, %v2094_v63 }
0x4b43   :  { %2105 = vrot.lane.b32.xlu1 %v2103_v0, %s3001_s25 }
0x4bb5   :  { %v2106_v3 = vpop.permute.xlu1 %2105 }
0x4bb6   :  { %v2108_v5 = vadd.f32 %v2106_v3, %v2098_v1 }
0x4bb8   :  { %2952 = vtanh.f32 %v2108_v5  ;;  %v2173_v26 = vrot.slane %v2108_v5, 7 }
0x4bc2   :  { %v2953_v7 = vpop.eup %2952 }
0x4bc3   :  { %2111 = vrot.lane.b32.xlu0 %v2953_v7, %s2997_s15 }
0x4c35   :  { %v2112_v8 = vpop.permute.xlu0 %2111 }
0x4c36   :  { %v2114_v9 = vmul.f32 %v2112_v8, %v2094_v63 }
0x4c38   :  { %v2115_v10 = vpack.c.bf16 %v2114_v9, %v2114_v9 }
0x4c3a   :  { %v2117_v2 = vshrl.u32 %v2115_v10, 16 }
0x4c3c   :  { %v2119_v11 = vrot.slane %v2117_v2, 1 }
0x4c3e   :  { %2120 = vrot.lane.b32.xlu1 %v2119_v11, %s3001_s25 }
0x4cb0   :  { %v2121_v4 = vpop.permute.xlu1 %2120 }
0x4cb1   :  { %2806 = vmatmul.mubr.msk.bf16.vlgmr.msra.gmra.mrb[52].mxu1 %vm82_vm1, %v2121_v4 }
0x4cb2   :  { %2818 = vmatpush3.bf16.msra.mxu1 %v3047_v16  ;;  %2821 = vmatprep.mubr.msk.bf16.mxu1 %vm2999_vm0, %v2998_v15 }
0x4cb3   :  { %2819 = vmatprep.subr.bf16.mxu1 %v2998_v15 }
0x4cb6   :  { %2820 = vmatpush3.bf16.msra.mxu1 %v3058_v18 }
0x4d84   :  { %v2159_v12 = vpop.f32.mrb[52].mxu1 }
0x4d85   :  { %v2166_v13 = vrot.slane %v2159_v12, 4  ;;  %v2807_v14 = vpop.f32.mrb[53].mxu1 }
0x4d86   :  { %v2162_v17 = vpop.f32.mrb[54].mxu1 }
0x4d87   :  { %v2168_v19 = vadd.f32 %v2166_v13, %v3382_v50  ;;  %v2808_v20 = vpop.f32.mrb[55].mxu1 }
0x4d89   :  { %2954 = vtanh.f32 %v2168_v19 }
0x4d93   :  { %v2955_v21 = vpop.eup %2954 }
0x4d94   :  { %2177 = vrot.lane.b32.xlu0 %v2955_v21, %s2997_s15  ;;  %v2170_v22 = vmul.f32 0.5, %v2955_v21 }
0x4d96   :  { %v2171_v23 = vadd.f32 0.5, %v2170_v22 }
0x4d98   :  { %v2175_v27 = vmul.f32 %v2173_v26, %v2171_v23 }
0x4e06   :  { %v2178_v24 = vpop.permute.xlu0 %2177 }
0x4e07   :  { %v2180_v25 = vmul.f32 %v2178_v24, %v2171_v23 }
0x4e09   :  { %2182 = vrot.lane.b32.xlu1 %v2180_v25, %s3001_s25 }
0x4e7b   :  { %v2183_v28 = vpop.permute.xlu1 %2182 }
0x4e7c   :  { %v2185_v29 = vadd.f32 %v2183_v28, %v2175_v27  ;;  %v2419_v27 = vld [vmem:[%s3479_s1 + $0x22] sm:$0x1] }
0x4e7d   :  { %v2422_v28 = vrot.slane %v2419_v27, 1 }
0x4e7e   :  { %2956 = vtanh.f32 %v2185_v29 }
0x4e88   :  { %v2957_v30 = vpop.eup %2956 }
0x4e89   :  { %2188 = vrot.lane.b32.xlu0 %v2957_v30, %s2997_s15 }
0x4efb   :  { %v2189_v31 = vpop.permute.xlu0 %2188 }
0x4efc   :  { %v2191_v32 = vmul.f32 %v2189_v31, %v2171_v23 }
0x4efe   :  { %v2192_v33 = vpack.c.bf16 %v2191_v32, %v2191_v32 }
0x4f00   :  { %v2194_v34 = vrot.slane %v2192_v33, 2 }
0x4f02   :  { %2195 = vrot.lane.b32.xlu1 %v2194_v34, %s3001_s25 }
0x4f74   :  { %v2196_v35 = vpop.permute.xlu1 %2195 }
0x4f75   :  { %2814 = vmatmul.mubr.msk.bf16.vlgmr.msra.gmra.mrb[56].mxu0 %vm82_vm1, %v2196_v35 }
0x4f76   :  { %2826 = vmatpush3.bf16.msra.mxu0 %v3047_v16  ;;  %2829 = vmatprep.mubr.msk.bf16.mxu0 %vm2999_vm0, %v2998_v15 }
0x4f77   :  { %2827 = vmatprep.subr.bf16.mxu0 %v2998_v15  ;;  %v2248_v15 = vrot.slane %v2185_v29, 7 }
0x4f7a   :  { %2828 = vmatpush3.bf16.msra.mxu0 %v3058_v18 }
0x5048   :  { %v2234_v36 = vpop.f32.mrb[56].mxu0 }
0x5049   :  { %v2241_v37 = vrot.slane %v2234_v36, 3  ;;  %v2815_v38 = vpop.f32.mrb[57].mxu0 }
0x504a   :  { %v2237_v39 = vpop.f32.mrb[58].mxu0 }
0x504b   :  { %v2243_v40 = vadd.f32 %v2241_v37, %v3382_v50  ;;  %v2816_v41 = vpop.f32.mrb[59].mxu0  ;;  %v2420_v39 = vld [vmem:[%s3479_s1 + $0x23] sm:$0x1] }
0x504d   :  { %2958 = vtanh.f32 %v2243_v40  ;;  %v2436_v40 = vrot.slane %v2420_v39, 1 }
0x5057   :  { %v2959_v42 = vpop.eup %2958 }
0x5058   :  { %2252 = vrot.lane.b32.xlu0 %v2959_v42, %s2997_s15  ;;  %v2245_v54 = vmul.f32 0.5, %v2959_v42 }
0x505a   :  { %v2246_v16 = vadd.f32 0.5, %v2245_v54 }
0x505c   :  { %v2250_v61 = vmul.f32 %v2248_v15, %v2246_v16 }
0x50ca   :  { %v2253_v43 = vpop.permute.xlu0 %2252 }
0x50cb   :  { %v2255_v44 = vmul.f32 %v2253_v43, %v2246_v16 }
0x50cd   :  { %2257 = vrot.lane.b32.xlu1 %v2255_v44, %s3001_s25 }
0x513f   :  { %v2258_v18 = vpop.permute.xlu1 %2257 }
0x5140   :  { %v2260_v45 = vadd.f32 %v2258_v18, %v2250_v61 }
0x5142   :  { %2960 = vtanh.f32 %v2260_v45  ;;  %v2325_v3 = vrot.slane %v2260_v45, 7 }
0x514c   :  { %v2961_v46 = vpop.eup %2960 }
0x514d   :  { %2263 = vrot.lane.b32.xlu0 %v2961_v46, %s2997_s15 }
0x51bf   :  { %v2264_v47 = vpop.permute.xlu0 %2263 }
0x51c0   :  { %v2266_v48 = vmul.f32 %v2264_v47, %v2246_v16 }
0x51c2   :  { %v2267_v49 = vpack.c.bf16 %v2266_v48, %v2266_v48 }
0x51c4   :  { %v2269_v51 = vshrl.u32 %v2267_v49, 16 }
0x51c6   :  { %v2271_v6 = vrot.slane %v2269_v51, 2 }
0x51c8   :  { %2272 = vrot.lane.b32.xlu1 %v2271_v6, %s3001_s25 }
0x523a   :  { %v2273_v55 = vpop.permute.xlu1 %2272 }
0x523b   :  { %2822 = vmatmul.mubr.msk.bf16.vlgmr.msra.gmra.mrb[56].mxu1 %vm82_vm1, %v2273_v55 }
0x530e   :  { %v2311_v56 = vpop.f32.mrb[56].mxu1 }
0x530f   :  { %v2318_v57 = vrot.slane %v2311_v56, 2  ;;  %v2823_v58 = vpop.f32.mrb[57].mxu1 }
0x5310   :  { %v2314_v59 = vpop.f32.mrb[58].mxu1 }
0x5311   :  { %v2320_v60 = vadd.f32 %v2318_v57, %v3382_v50  ;;  %v2824_v62 = vpop.f32.mrb[59].mxu1 }
0x5313   :  { %2962 = vtanh.f32 %v2320_v60 }
0x531d   :  { %v2963_v63 = vpop.eup %2962 }
0x531e   :  { %2329 = vrot.lane.b32.xlu0 %v2963_v63, %s2997_s15  ;;  %v2322_v52 = vmul.f32 0.5, %v2963_v63 }
0x5320   :  { %v2323_v0 = vadd.f32 0.5, %v2322_v52 }
0x5322   :  { %v2327_v5 = vmul.f32 %v2325_v3, %v2323_v0 }
0x5390   :  { %v2330_v53 = vpop.permute.xlu0 %2329 }
0x5391   :  { %v2332_v1 = vmul.f32 %v2330_v53, %v2323_v0 }
0x5393   :  { %2334 = vrot.lane.b32.xlu1 %v2332_v1, %s3001_s25 }
0x5405   :  { %v2335_v7 = vpop.permute.xlu1 %2334 }
0x5406   :  { %v2337_v8 = vadd.f32 %v2335_v7, %v2327_v5 }
0x5408   :  { %2964 = vtanh.f32 %v2337_v8  ;;  %v2400_v29 = vrot.slane %v2337_v8, 7 }
0x5412   :  { %v2965_v9 = vpop.eup %2964 }
0x5413   :  { %2340 = vrot.lane.b32.xlu0 %v2965_v9, %s2997_s15 }
0x5485   :  { %v2341_v10 = vpop.permute.xlu0 %2340 }
0x5486   :  { %v2343_v2 = vmul.f32 %v2341_v10, %v2323_v0 }
0x5488   :  { %v2344_v11 = vpack.c.bf16 %v2343_v2, %v2343_v2 }
0x548a   :  { %v2346_v4 = vrot.slane %v2344_v11, 3 }
0x548c   :  { %2347 = vrot.lane.b32.xlu1 %v2346_v4, %s3001_s25 }
0x54fe   :  { %v2348_v12 = vpop.permute.xlu1 %2347 }
0x54ff   :  { %2830 = vmatmul.mubr.msk.bf16.vlgmr.msra.gmra.mrb[60].mxu0 %vm82_vm1, %v2348_v12 }
0x55d2   :  { %v2386_v13 = vpop.f32.mrb[60].mxu0 }
0x55d3   :  { %v2393_v14 = vrot.slane %v2386_v13, 1  ;;  %v2831_v17 = vpop.f32.mrb[61].mxu0 }
0x55d4   :  { %v2389_v19 = vpop.f32.mrb[62].mxu0 }
0x55d5   :  { %v2395_v20 = vadd.f32 %v2393_v14, %v3382_v50  ;;  %v2832_v21 = vpop.f32.mrb[63].mxu0 }
0x55d7   :  { %2966 = vtanh.f32 %v2395_v20 }
0x55e1   :  { %v2967_v22 = vpop.eup %2966 }
0x55e2   :  { %2404 = vrot.lane.b32.xlu0 %v2967_v22, %s2997_s15  ;;  %v2397_v23 = vmul.f32 0.5, %v2967_v22 }
0x55e4   :  { %v2398_v24 = vadd.f32 0.5, %v2397_v23 }
0x55e6   :  { %v2402_v50 = vmul.f32 %v2400_v29, %v2398_v24 }
0x5654   :  { %v2405_v25 = vpop.permute.xlu0 %2404 }
0x5655   :  { %v2407_v26 = vmul.f32 %v2405_v25, %v2398_v24 }
0x5657   :  { %2409 = vrot.lane.b32.xlu1 %v2407_v26, %s3001_s25 }
0x565b   :  { %2423 = vrot.lane.b32.xlu1 %v2422_v28, %s3000_s24 }
0x56c9   :  { %v2410_v30 = vpop.permute.xlu1 %2409 }
0x56ca   :  { %v2412_v31 = vadd.f32 %v2410_v30, %v2402_v50 }
0x56cc   :  { %2968 = vtanh.f32 %v2412_v31 }
0x56cd   :  { %v2424_v34 = vpop.permute.xlu1 %2423 }
0x56d6   :  { %v2969_v32 = vpop.eup %2968 }
0x56d7   :  { %2415 = vrot.lane.b32.xlu0 %v2969_v32, %s2997_s15 }
0x5749   :  { %v2416_v33 = vpop.permute.xlu0 %2415 }
0x574a   :  { %v2418_v35 = vmul.f32 %v2416_v33, %v2398_v24 }
0x574c   :  { %v2426_v36 = vmul.f32 %v2424_v34, %v2418_v35 }
0x574e   :  { %2428 = vrot.lane.b32.xlu0 %v2426_v36, %s3001_s25 }
0x57c0   :  { %v2429_v37 = vpop.permute.xlu0 %2428 }
0x57c1   :  { %v2432_v38 = vsel %vm2431_vm2, %v2429_v37, 0.0 }
0x57c2   :  { %2433 = vadd.xlane.f32.xlu1 %v2432_v38 }
0x584f   :  { %v2434_v41 = vpop.xlane.xlu1 %2433 }
0x5850   :  { %v2438_v42 = vadd.f32 %v2436_v40, %v2434_v41 }
0x5852   :  { %2440 = vst.msk [vmem:[#allocation2 - $0x7] sm:$0x80] %vm2439_vm3, %v2438_v42 }
0x5853   :  { %2983 = shalt.err (!%p2980_p4)
}
0x5854   :  { %s2984_s1 = scalar_lea.hbm %s3480_s2, 16 }
0x5855   :  { %p2985_p5 = scmp.ne.s32.totalorder %s3480_s2, %s2984_s1  ;;  %p2988_p6 = scmp.lt.u32.totalorder %s2984_s1, %s3480_s2 }
0x5857   :  { %p2990_p7 = pnand %p2988_p6, %p2985_p5 }
0x5859   :  { %2993 = shalt.err (!%p2990_p7)
}
0x585a   :  { %2450 = dma.vmem_to_hbm [thread:$0]  %s2448_s12, 16, %s3480_s2, [#allocation3]  }
0x585b   :  { %2994 = dma.done.wait [#allocation3], 16  }
0x585c   :  { %2995 = vsyncadd [#allocation3], 4294967280 }
0x585d   :  { %2454 = vsyncpa [#allocation3], 1 }

</bundles_post_ra>
